<compile_context>
chip_gen: v6e
topology: v6e:2x2x1
jax: 0.10.0
libtpu: 0.0.40
codegen_flags: <defaults>
</compile_context>

<pallas_src>
import functools

import numpy as np
import jax
import jax.numpy as jnp
from jax import lax
from jax.experimental import pallas as pl
from jax.experimental.pallas import tpu as pltpu


_MASK_NEG = -1e30                  # additive mask for non-neighborhood keys (exp -> exactly 0)
_VMEM_LIMIT = 48 * 1024 * 1024     # explicit scoped-VMEM budget (v5e default ~16 MiB, v6e/v7x 32 MiB)


# ----------------------------------------------------------------------------- helpers
def _gelu_exact(x):
    # Exact GELU: x * 0.5 * (1 + erf(x / sqrt(2))).
    # erf via Abramowitz & Stegun 7.1.26 (|err| <= 1.5e-7); used because lax.erf
    # has no guaranteed Mosaic lowering.
    z = x * 0.7071067811865476
    s = jnp.where(z >= 0.0, 1.0, -1.0)
    a = jnp.abs(z)
    t = 1.0 / (1.0 + 0.3275911 * a)
    poly = t * (0.254829592 + t * (-0.284496736 + t * (1.421413741
               + t * (-1.453152027 + t * 1.061405429))))
    erf = s * (1.0 - poly * jnp.exp(-a * a))
    return x * 0.5 * (1.0 + erf)


def _layernorm_f32(x, w, b, eps=1e-5):
    mu = jnp.mean(x, axis=-1, keepdims=True)
    xc = x - mu
    var = jnp.mean(xc * xc, axis=-1, keepdims=True)
    return xc * lax.rsqrt(var + eps) * w + b


def _attn_tiling(hw):
    """Lane-dense query tile (multiple of 128, capped at 256 for v7x VMEM) plus the
    padded token count, so non-128-multiple maps (e.g. 56x56=3136) never fall back
    to a single full-HW tile."""
    tq = 256 if hw >= 256 else 128
    hw_pad = ((hw + tq - 1) // tq) * tq
    return hw_pad, tq


# ----------------------------------------------------------------------------- Pallas kernels
def _ln_qkv_t_kernel(x_ref, nw_ref, nb_ref, wt_ref, bt_ref, o_ref):
    # Fused LayerNorm -> qkv projection, emitting *transposed* qkv ((3C, tq), tokens
    # on lanes) so no XLA transpose sits between this kernel and attention.
    # bf16 MXU operands, f32 accumulation; q scale is pre-folded into wt/bt.
    x = x_ref[...].astype(jnp.float32)                                   # (tq, C)
    xn = _layernorm_f32(x, nw_ref[...].astype(jnp.float32),
                        nb_ref[...].astype(jnp.float32))
    xn = xn.astype(jnp.bfloat16)
    # wt: (3C, C); contract last dims of both operands ('NT' form) -> (3C, tq)
    yT = lax.dot_general(wt_ref[...], xn, (((1,), (1,)), ((), ())),
                         preferred_element_type=jnp.float32)
    yT = yT + bt_ref[...].astype(jnp.float32)                            # (3C, 1) broadcast
    o_ref[...] = yT.astype(o_ref.dtype)


def _na_attn_kernel(qT_ref, kT_ref, vT_ref, bT_ref, o_ref):
    # Masked dense neighborhood attention, fully transposed (tokens on lanes):
    #   qT (hd, tq)  kT (hd, HWp)  vT (hd, HWp)  bT (HWp, tq)  ->  o (hd, tq)
    # Both contractions run on the MXU with bf16 operands / f32 accumulation;
    # the neighborhood structure + rel-pos bias live in the additive bf16 bias.
    qT = qT_ref[...]
    kT = kT_ref[...]
    bT = bT_ref[...].astype(jnp.float32)
    # 'TN' form: contract leading (head_dim) axes -> (HWp, tq)
    logitsT = lax.dot_general(kT, qT, (((0,), (0,)), ((), ())),
                              preferred_element_type=jnp.float32) + bT
    m = jnp.max(logitsT, axis=0, keepdims=True)
    p = jnp.exp(logitsT - m)                                             # masked keys -> 0
    denom = jnp.sum(p, axis=0, keepdims=True)
    p = (p * pl.reciprocal(denom, approx=True)).astype(jnp.bfloat16)     # divide on the EUP
    ctxT = jnp.dot(vT_ref[...], p, preferred_element_type=jnp.float32)   # (hd, tq)
    o_ref[...] = ctxT.astype(o_ref.dtype)


def _proj_mlp_kernel(ctxT_ref, sc_ref, pw_ref, pb_ref, n2w_ref, n2b_ref,
                     f1w_ref, f1b_ref, f2w_ref, f2b_ref, o_ref):
    # Fused tail:
    #   x2 = shortcut + ctx @ Wp + bp
    #   o  = x2 + GELU(LN(x2) @ W1 + b1) @ W2 + b2
    # ctx arrives transposed (C, tq); its transpose is folded into the first
    # matmul's dimension numbers.  The (tq, Hd) hidden never leaves VMEM.
    ctxT = ctxT_ref[...]                                                 # (C, tq) bf16
    x2 = lax.dot_general(ctxT, pw_ref[...], (((0,), (0,)), ((), ())),
                         preferred_element_type=jnp.float32)             # (tq, C)
    x2 = x2 + pb_ref[...].astype(jnp.float32) + sc_ref[...].astype(jnp.float32)
    xn = _layernorm_f32(x2, n2w_ref[...].astype(jnp.float32),
                        n2b_ref[...].astype(jnp.float32)).astype(jnp.bfloat16)
    h = jnp.dot(xn, f1w_ref[...], preferred_element_type=jnp.float32) \
        + f1b_ref[...].astype(jnp.float32)
    h = _gelu_exact(h).astype(jnp.bfloat16)
    y = jnp.dot(h, f2w_ref[...], preferred_element_type=jnp.float32) \
        + f2b_ref[...].astype(jnp.float32)
    o_ref[...] = (x2 + y).astype(o_ref.dtype)


# ----------------------------------------------------------------------------- Pallas wrappers
def ln_qkv_pallas(x_seq, nw, nb, qkv_wT, qkv_bT, tq):
    B, HWp, C = x_seq.shape
    threeC = qkv_wT.shape[0]
    T = HWp // tq
    return pl.pallas_call(
        _ln_qkv_t_kernel,
        out_shape=jax.ShapeDtypeStruct((B, threeC, HWp), jnp.bfloat16),
        grid=(B, T),
        in_specs=[
            pl.BlockSpec((None, tq, C), lambda b, t: (b, t, 0)),
            pl.BlockSpec((1, C), lambda b, t: (0, 0)),
            pl.BlockSpec((1, C), lambda b, t: (0, 0)),
            pl.BlockSpec((threeC, C), lambda b, t: (0, 0)),
            pl.BlockSpec((threeC, 1), lambda b, t: (0, 0)),
        ],
        out_specs=pl.BlockSpec((None, threeC, tq), lambda b, t: (b, 0, t)),
        compiler_params=pltpu.CompilerParams(
            dimension_semantics=("parallel", "parallel"),
            vmem_limit_bytes=_VMEM_LIMIT),
    )(x_seq, nw.reshape(1, C), nb.reshape(1, C), qkv_wT, qkv_bT)


def na_attention_pallas(qkvT, biasT, *, num_heads, head_dim, tq):
    B, threeC, HWp = qkvT.shape
    C = threeC // 3
    T = HWp // tq
    heads = num_heads
    # Grid: heads outermost (v7x cores split by head, each with its own bias stream),
    # batch innermost so the (HWp, tq) bias block index (h, 0, t) is constant across
    # consecutive batch steps -> Pallas skips its re-DMA.  q/k/v per head are sliced
    # straight out of the transposed qkv tensor via BlockSpec index maps.
    return pl.pallas_call(
        _na_attn_kernel,
        out_shape=jax.ShapeDtypeStruct((B, C, HWp), jnp.bfloat16),
        grid=(heads, T, B),
        in_specs=[
            pl.BlockSpec((None, head_dim, tq), lambda h, t, b: (b, h, t)),
            pl.BlockSpec((None, head_dim, HWp), lambda h, t, b: (b, heads + h, 0)),
            pl.BlockSpec((None, head_dim, HWp), lambda h, t, b: (b, 2 * heads + h, 0)),
            pl.BlockSpec((None, HWp, tq), lambda h, t, b: (h, 0, t)),
        ],
        out_specs=pl.BlockSpec((None, head_dim, tq), lambda h, t, b: (b, h, t)),
        compiler_params=pltpu.CompilerParams(
            dimension_semantics=("parallel", "parallel", "parallel"),
            vmem_limit_bytes=_VMEM_LIMIT),
    )(qkvT, qkvT, qkvT, biasT)


def proj_mlp_pallas(ctxT, shortcut, pw, pb, n2w, n2b, f1w, f1b, f2w, f2b, tq):
    B, C, HWp = ctxT.shape
    Hd = f1w.shape[1]
    T = HWp // tq
    return pl.pallas_call(
        _proj_mlp_kernel,
        out_shape=jax.ShapeDtypeStruct((B, HWp, C), shortcut.dtype),
        grid=(B, T),
        in_specs=[
            pl.BlockSpec((None, C, tq), lambda b, t: (b, 0, t)),
            pl.BlockSpec((None, tq, C), lambda b, t: (b, t, 0)),
            pl.BlockSpec((C, C), lambda b, t: (0, 0)),
            pl.BlockSpec((1, C), lambda b, t: (0, 0)),
            pl.BlockSpec((1, C), lambda b, t: (0, 0)),
            pl.BlockSpec((1, C), lambda b, t: (0, 0)),
            pl.BlockSpec((C, Hd), lambda b, t: (0, 0)),
            pl.BlockSpec((1, Hd), lambda b, t: (0, 0)),
            pl.BlockSpec((Hd, C), lambda b, t: (0, 0)),
            pl.BlockSpec((1, C), lambda b, t: (0, 0)),
        ],
        out_specs=pl.BlockSpec((None, tq, C), lambda b, t: (b, t, 0)),
        compiler_params=pltpu.CompilerParams(
            dimension_semantics=("parallel", "parallel"),
            vmem_limit_bytes=_VMEM_LIMIT),
    )(ctxT, shortcut, pw, pb.reshape(1, C), n2w.reshape(1, C), n2b.reshape(1, C),
      f1w, f1b.reshape(1, Hd), f2w, f2b.reshape(1, C))


# ----------------------------------------------------------------------------- NATTEN index math (static, numpy)
def _window_start(i, L, K, d):
    ns = K // 2
    if d <= 1:
        start = max(i - ns, 0)
        if i + ns >= L:
            start += L - i - ns - 1
        return start
    if i - ns * d < 0:
        return i % d
    if i + ns * d >= L:
        imodd = i % d
        a = (L // d) * d
        b = L - a
        if imodd < b:
            return L - b + imodd - 2 * ns * d
        return a + imodd - K * d
    return i - ns * d


def _pb_start(i, L, K, d):
    ns = K // 2
    if d <= 1:
        pi = ns
        if i < ns:
            pi += ns - i
        if i + ns >= L:
            pi += L - i - 1 - ns
        return pi
    if i - ns * d < 0:
        return K - 1 - (i // d)
    if i + ns * d >= L:
        return (L - i - 1) // d
    return ns


def build_neighborhood_indices(H, W, K, dil):
    ki = np.array([[_window_start(i, H, K, dil) + a * dil for a in range(K)] for i in range(H)],
                  dtype=np.int32)
    kj = np.array([[_window_start(j, W, K, dil) + a * dil for a in range(K)] for j in range(W)],
                  dtype=np.int32)
    ri = np.array([[_pb_start(i, H, K, dil) + a for a in range(K)] for i in range(H)],
                  dtype=np.int32)
    rj = np.array([[_pb_start(j, W, K, dil) + a for a in range(K)] for j in range(W)],
                  dtype=np.int32)
    return ki, kj, ri, rj


def build_dense_bias_T(rpb, H, W, K, dil, hw_pad):
    """Per-head dense additive attention bias, transposed & token-padded:
    shape (heads, key_pos, query_pos), bf16.

    bias[h, k, q] = rpb value if key k is inside query q's neighborhood, else -1e30;
    padded key rows / query columns stay fully masked.  Window keys for a given
    query are distinct (ws + a*dil, a unique), so the scatter has no duplicate
    (key, query) pairs.  Only the rpb gather + scatter is traced.
    TODO(synk): replace with halo tiling so the bias stays O(tile) instead of O(HW^2).
    """
    heads = rpb.shape[0]
    HW, KK = H * W, K * K
    ki, kj, ri, rj = build_neighborhood_indices(H, W, K, dil)
    nbr = (ki[:, None, :, None] * W + kj[None, :, None, :]).reshape(HW, KK)
    rpb_idx = (ri[:, None, :, None] * (2 * K - 1) + rj[None, :, None, :]).reshape(HW, KK)
    q_idx = np.repeat(np.arange(HW, dtype=np.int32), KK)
    k_idx = nbr.reshape(-1).astype(np.int32)
    vals = rpb.reshape(heads, -1)[:, rpb_idx.reshape(-1)]                 # (heads, HW*KK)
    dense = jnp.full((heads, hw_pad, hw_pad), _MASK_NEG, jnp.float32)
    dense = dense.at[:, k_idx, q_idx].set(vals.astype(jnp.float32))       # [head, key, query]
    return dense.astype(jnp.bfloat16)


# (used only by the pure-JAX reference)
def gather_windows(t, ki, kj):
    g = t[:, :, ki]
    g = g[:, :, :, :, kj]
    return jnp.transpose(g, (0, 1, 2, 4, 3, 5, 6))


def gather_rpb(rpb, ri, rj):
    g = rpb[:, ri]
    g = g[:, :, :, rj]
    return jnp.transpose(g, (0, 1, 3, 2, 4))


# ----------------------------------------------------------------------------- NATBlock forward
def nat_block_forward(x, params, num_heads, kernel_size, dilation):
    B, H, W, C = x.shape
    heads, hd = num_heads, C // num_heads
    K, dil = kernel_size, dilation
    HW = H * W
    scale = hd ** -0.5
    if H < K * dil or W < K * dil:
        # TODO(synk): NA edge padding branch (H/W < kernel_size*dilation) not exercised here.
        raise NotImplementedError("choose H, W >= kernel_size * dilation")
    assert C % heads == 0 and hd % 8 == 0, "head_dim must be a multiple of 8"

    HW_pad, tq = _attn_tiling(HW)
    x_seq = x.reshape(B, HW, C)
    if HW_pad != HW:
        x_seq = jnp.pad(x_seq, ((0, 0), (0, HW_pad - HW), (0, 0)))

    # ---- parameter prep (one-time / constant-folded under jit) ----
    # q scale folded into the q columns of the qkv projection; weight pre-transposed
    # so the kernel emits transposed qkv with no per-step weight transpose; matmul
    # weights carried in bf16 (operands at native MXU rate, f32 accumulation).
    qs = jnp.concatenate([jnp.full((C,), scale, jnp.float32),
                          jnp.ones((2 * C,), jnp.float32)])
    qkv_wT = (params["qkv_w"] * qs[None, :]).T.astype(jnp.bfloat16)       # (3C, C)
    qkv_bT = (params["qkv_b"] * qs).reshape(3 * C, 1).astype(jnp.float32)

    # ---- fused norm1 + qkv -> transposed (B, 3C, HW_pad) bf16 (Pallas) ----
    qkvT = ln_qkv_pallas(x_seq, params["norm1_w"], params["norm1_b"], qkv_wT, qkv_bT, tq)

    # ---- per-head dense neighborhood bias (mask + rpb), bf16, no B broadcast ----
    biasT = build_dense_bias_T(params["rpb"], H, W, K, dil, HW_pad)       # (heads, HWp, HWp)

    # ---- attention core (Pallas, MXU matmuls, lane-dense transposed output) ----
    ctxT = na_attention_pallas(qkvT, biasT, num_heads=heads, head_dim=hd, tq=tq)

    # ---- fused proj + residual + norm2 + MLP + residual (Pallas) ----
    out = proj_mlp_pallas(ctxT, x_seq,
                          params["proj_w"].astype(jnp.bfloat16), params["proj_b"],
                          params["norm2_w"], params["norm2_b"],
                          params["fc1_w"].astype(jnp.bfloat16), params["fc1_b"],
                          params["fc2_w"].astype(jnp.bfloat16), params["fc2_b"], tq)
    if HW_pad != HW:
        out = out[:, :HW, :]
    return out.reshape(B, H, W, C)


# ----------------------------------------------------------------------------- pure-JAX reference (f32, for validation)
def nat_block_reference(x, params, num_heads, kernel_size, dilation):
    B, H, W, C = x.shape
    heads, hd = num_heads, C // num_heads
    K, dil = kernel_size, dilation
    scale = hd ** -0.5
    N = B * H * W

    def ln(v, w, b):
        mu = v.mean(-1, keepdims=True)
        var = ((v - mu) ** 2).mean(-1, keepdims=True)
        return (v - mu) / jnp.sqrt(var + 1e-5) * w + b

    xf = x.reshape(N, C)
    shortcut = xf
    xn = ln(xf, params["norm1_w"], params["norm1_b"])
    qkv = xn @ params["qkv_w"] + params["qkv_b"]
    qkv = jnp.transpose(qkv.reshape(B, H, W, 3, heads, hd), (3, 0, 4, 1, 2, 5))
    q, k, v = qkv[0] * scale, qkv[1], qkv[2]

    ki, kj, ri, rj = build_neighborhood_indices(H, W, K, dil)
    kwin = gather_windows(k, ki, kj).reshape(B, heads, H * W, K * K, hd)
    vwin = gather_windows(v, ki, kj).reshape(B, heads, H * W, K * K, hd)
    bias = gather_rpb(params["rpb"], ri, rj).reshape(1, heads, H * W, K * K)
    qf = q.reshape(B, heads, H * W, hd)

    logits = jnp.einsum("bhnd,bhnkd->bhnk", qf, kwin) + bias
    p = jax.nn.softmax(logits, axis=-1)
    ctx = jnp.einsum("bhnk,bhnkd->bhnd", p, vwin)
    ctx = jnp.transpose(ctx.reshape(B, heads, H, W, hd), (0, 2, 3, 1, 4)).reshape(N, C)

    x2 = shortcut + (ctx @ params["proj_w"] + params["proj_b"])
    xn2 = ln(x2, params["norm2_w"], params["norm2_b"])
    hdn = jax.nn.gelu(xn2 @ params["fc1_w"] + params["fc1_b"], approximate=False)
    out = x2 + (hdn @ params["fc2_w"] + params["fc2_b"])
    return out.reshape(B, H, W, C)


# ----------------------------------------------------------------------------- main
if __name__ == "__main__":
    # Small shapes consistent with the module: dim=32, heads=4, kernel=7.
    B, C = 2, 32
    num_heads, kernel_size = 4, 7
    mlp_hidden = int(C * 4.0)

    key = jax.random.PRNGKey(0)
    ks = jax.random.split(key, 12)

    def init(k, shape, s=0.02):
        return (s * jax.random.normal(k, shape)).astype(jnp.float32)

    params = {
        "norm1_w": jnp.ones((C,), jnp.float32),
        "norm1_b": jnp.zeros((C,), jnp.float32),
        # weights stored as (in, out); equivalent to PyTorch nn.Linear weight.T
        "qkv_w": init(ks[0], (C, 3 * C)),
        "qkv_b": init(ks[1], (3 * C,)),
        "rpb": init(ks[2], (num_heads, 2 * kernel_size - 1, 2 * kernel_size - 1), s=0.5),
        "proj_w": init(ks[3], (C, C)),
        "proj_b": init(ks[4], (C,)),
        "norm2_w": jnp.ones((C,), jnp.float32),
        "norm2_b": jnp.zeros((C,), jnp.float32),
        "fc1_w": init(ks[5], (C, mlp_hidden)),
        "fc1_b": init(ks[6], (mlp_hidden,)),
        "fc2_w": init(ks[7], (mlp_hidden, C)),
        "fc2_b": init(ks[8], (C,)),
    }
    # layer_scale=None, drop=attn_drop=drop_path=0.0 -> identity paths (module defaults).

    # Two configs: non-dilated 16x16 (no padding, single query tile) and dilated 20x20
    # (exercises dilation>1, token padding to 512 and multi-tile query axis).
    configs = ((1, 16, 16, ks[9]), (2, 20, 20, ks[10]))
    for dilation, Hc, Wc, xk in configs:
        x = jax.random.normal(xk, (B, Hc, Wc, C), jnp.float32)
        fwd = functools.partial(nat_block_forward, num_heads=num_heads,
                                kernel_size=kernel_size, dilation=dilation)
        out = jax.jit(lambda a: fwd(a, params))(x)
        out = jax.block_until_ready(out)

        ref = nat_block_reference(x, params, num_heads, kernel_size, dilation)
        err = float(jnp.max(jnp.abs(out - ref)))
        assert out.shape == (B, Hc, Wc, C)
        assert np.isfinite(np.asarray(out)).all()
        # bf16 MXU operands (f32 accumulation) vs f32 reference -> relaxed tolerance.
        assert err < 2e-2, f"dilation={dilation}: mismatch vs reference: {err}"

    print("KERNEL_OK")
</pallas_src>

<mosaic_0001>
module attributes {stable_mosaic.version = 11 : i64} {
  func.func @_na_attn_kernel(%arg0: i32, %arg1: i32, %arg2: i32, %arg3: memref<1x8x256xbf16, #tpu.memory_space<vmem>>, %arg4: memref<1x8x256xbf16, #tpu.memory_space<vmem>>, %arg5: memref<1x8x256xbf16, #tpu.memory_space<vmem>>, %arg6: memref<1x256x256xbf16, #tpu.memory_space<vmem>>, %arg7: memref<1x8x256xbf16, #tpu.memory_space<vmem>>) attributes {dimension_semantics = [#tpu.dimension_semantics<parallel>, #tpu.dimension_semantics<parallel>, #tpu.dimension_semantics<parallel>], iteration_bounds = array<i64: 4, 1, 2>, scalar_prefetch = 0 : i64, scratch_operands = 0 : i64, tpu.core_type = #tpu.core_type<tc>, window_params = [{transform_indices = @transform_0, window_bounds = array<i64: 1, 8, 256>}, {transform_indices = @transform_1, window_bounds = array<i64: 1, 8, 256>}, {transform_indices = @transform_2, window_bounds = array<i64: 1, 8, 256>}, {transform_indices = @transform_3, window_bounds = array<i64: 1, 256, 256>}, {transform_indices = @transform_4, window_bounds = array<i64: 1, 8, 256>}]} {
    %c0 = arith.constant 0 : index
    %c0_0 = arith.constant 0 : index
    %c0_1 = arith.constant 0 : index
    %0 = vector.load %arg3[%c0, %c0_0, %c0_1] : memref<1x8x256xbf16, #tpu.memory_space<vmem>>, vector<1x8x256xbf16>
    %1 = vector.shape_cast %0 : vector<1x8x256xbf16> to vector<8x256xbf16>
    %c0_2 = arith.constant 0 : index
    %c0_3 = arith.constant 0 : index
    %c0_4 = arith.constant 0 : index
    %2 = vector.load %arg4[%c0_2, %c0_3, %c0_4] : memref<1x8x256xbf16, #tpu.memory_space<vmem>>, vector<1x8x256xbf16>
    %3 = vector.shape_cast %2 : vector<1x8x256xbf16> to vector<8x256xbf16>
    %c0_5 = arith.constant 0 : index
    %c0_6 = arith.constant 0 : index
    %c0_7 = arith.constant 0 : index
    %4 = vector.load %arg6[%c0_5, %c0_6, %c0_7] : memref<1x256x256xbf16, #tpu.memory_space<vmem>>, vector<1x256x256xbf16>
    %5 = vector.shape_cast %4 : vector<1x256x256xbf16> to vector<256x256xbf16>
    %6 = arith.extf %5 : vector<256x256xbf16> to vector<256x256xf32>
    %cst = arith.constant dense<0.000000e+00> : vector<256x256xf32>
    %7 = tpu.matmul %3, %1, %cst {dimension_numbers = #tpu.dot_dimension_numbers<[0], [0], [1], [1], [0, 1, 1, 1], [], []>} : vector<8x256xbf16>, vector<8x256xbf16>, vector<256x256xf32> -> vector<256x256xf32>
    %8 = arith.addf %7, %6 : vector<256x256xf32>
    %cst_8 = arith.constant dense<0xFF800000> : vector<256xf32>
    %9 = vector.multi_reduction <maximumf>, %8, %cst_8 [0] : vector<256x256xf32> to vector<256xf32>
    %10 = vector.shape_cast %9 : vector<256xf32> to vector<1x256xf32>
    %11 = vector.broadcast %10 : vector<1x256xf32> to vector<256x256xf32>
    %12 = arith.subf %8, %11 : vector<256x256xf32>
    %13 = math.exp %12 : vector<256x256xf32>
    %cst_9 = arith.constant dense<0.000000e+00> : vector<256xf32>
    %14 = vector.multi_reduction <add>, %13, %cst_9 [0] : vector<256x256xf32> to vector<256xf32>
    %15 = vector.shape_cast %14 : vector<256xf32> to vector<1x256xf32>
    %16 = tpu.reciprocal %15 {approx = true} : vector<1x256xf32> -> vector<1x256xf32>
    %17 = vector.broadcast %16 : vector<1x256xf32> to vector<256x256xf32>
    %18 = arith.mulf %13, %17 : vector<256x256xf32>
    %19 = arith.truncf %18 : vector<256x256xf32> to vector<256x256xbf16>
    %c0_10 = arith.constant 0 : index
    %c0_11 = arith.constant 0 : index
    %c0_12 = arith.constant 0 : index
    %20 = vector.load %arg5[%c0_10, %c0_11, %c0_12] : memref<1x8x256xbf16, #tpu.memory_space<vmem>>, vector<1x8x256xbf16>
    %21 = vector.shape_cast %20 : vector<1x8x256xbf16> to vector<8x256xbf16>
    %cst_13 = arith.constant dense<0.000000e+00> : vector<8x256xf32>
    %22 = tpu.matmul %21, %19, %cst_13 {dimension_numbers = #tpu.dot_dimension_numbers<[1], [0], [0], [1], [0, 0, 1, 1], [], []>} : vector<8x256xbf16>, vector<256x256xbf16>, vector<8x256xf32> -> vector<8x256xf32>
    %23 = arith.truncf %22 : vector<8x256xf32> to vector<8x256xbf16>
    %c0_14 = arith.constant 0 : index
    %c0_15 = arith.constant 0 : index
    %c0_16 = arith.constant 0 : index
    %24 = vector.load %arg7[%c0_14, %c0_15, %c0_16] : memref<1x8x256xbf16, #tpu.memory_space<vmem>>, vector<1x8x256xbf16>
    %25 = vector.shape_cast %24 : vector<1x8x256xbf16> to vector<8x256xbf16>
    %26 = vector.shape_cast %23 : vector<8x256xbf16> to vector<1x8x256xbf16>
    tpu.vector_store %arg7[%c0_14, %c0_15, %c0_16], %26 {strides = array<i32>} : memref<1x8x256xbf16, #tpu.memory_space<vmem>>, vector<1x8x256xbf16>,
    return
  }
  func.func @transform_0(%arg0: i32, %arg1: i32, %arg2: i32) -> (i32, i32, i32) {
    %c0_i32 = arith.constant 0 : i32
    return %arg2, %arg0, %arg1 : i32, i32, i32
  }
  func.func @transform_1(%arg0: i32, %arg1: i32, %arg2: i32) -> (i32, i32, i32) {
    %c4_i32 = arith.constant 4 : i32
    %0 = arith.addi %c4_i32, %arg0 : i32
    %c0_i32 = arith.constant 0 : i32
    %c0_i32_0 = arith.constant 0 : i32
    return %arg2, %0, %c0_i32 : i32, i32, i32
  }
  func.func @transform_2(%arg0: i32, %arg1: i32, %arg2: i32) -> (i32, i32, i32) {
    %c8_i32 = arith.constant 8 : i32
    %0 = arith.addi %c8_i32, %arg0 : i32
    %c0_i32 = arith.constant 0 : i32
    %c0_i32_0 = arith.constant 0 : i32
    return %arg2, %0, %c0_i32 : i32, i32, i32
  }
  func.func @transform_3(%arg0: i32, %arg1: i32, %arg2: i32) -> (i32, i32, i32) {
    %c0_i32 = arith.constant 0 : i32
    %c0_i32_0 = arith.constant 0 : i32
    return %arg0, %c0_i32, %arg1 : i32, i32, i32
  }
  func.func @transform_4(%arg0: i32, %arg1: i32, %arg2: i32) -> (i32, i32, i32) {
    %c0_i32 = arith.constant 0 : i32
    return %arg2, %arg0, %arg1 : i32, i32, i32
  }
}

module attributes {stable_mosaic.version = 11 : i64} {
  func.func @_ln_qkv_t_kernel(%arg0: i32, %arg1: i32, %arg2: memref<1x256x32xf32, #tpu.memory_space<vmem>>, %arg3: memref<1x32xf32, #tpu.memory_space<vmem>>, %arg4: memref<1x32xf32, #tpu.memory_space<vmem>>, %arg5: memref<96x32xbf16, #tpu.memory_space<vmem>>, %arg6: memref<96x1xf32, #tpu.memory_space<vmem>>, %arg7: memref<1x96x256xbf16, #tpu.memory_space<vmem>>) attributes {dimension_semantics = [#tpu.dimension_semantics<parallel>, #tpu.dimension_semantics<parallel>], iteration_bounds = array<i64: 2, 1>, scalar_prefetch = 0 : i64, scratch_operands = 0 : i64, tpu.core_type = #tpu.core_type<tc>, window_params = [{transform_indices = @transform_0, window_bounds = array<i64: 1, 256, 32>}, {pipeline_mode = #tpu.pipeline_mode<synchronous>, transform_indices = @transform_1, window_bounds = array<i64: 1, 32>}, {pipeline_mode = #tpu.pipeline_mode<synchronous>, transform_indices = @transform_2, window_bounds = array<i64: 1, 32>}, {pipeline_mode = #tpu.pipeline_mode<synchronous>, transform_indices = @transform_3, window_bounds = array<i64: 96, 32>}, {pipeline_mode = #tpu.pipeline_mode<synchronous>, transform_indices = @transform_4, window_bounds = array<i64: 96, 1>}, {transform_indices = @transform_5, window_bounds = array<i64: 1, 96, 256>}]} {
    %c0 = arith.constant 0 : index
    %c0_0 = arith.constant 0 : index
    %c0_1 = arith.constant 0 : index
    %0 = vector.load %arg2[%c0, %c0_0, %c0_1] : memref<1x256x32xf32, #tpu.memory_space<vmem>>, vector<1x256x32xf32>
    %1 = vector.shape_cast %0 : vector<1x256x32xf32> to vector<256x32xf32>
    %c0_2 = arith.constant 0 : index
    %c0_3 = arith.constant 0 : index
    %2 = vector.load %arg3[%c0_2, %c0_3] : memref<1x32xf32, #tpu.memory_space<vmem>>, vector<1x32xf32>
    %c0_4 = arith.constant 0 : index
    %c0_5 = arith.constant 0 : index
    %3 = vector.load %arg4[%c0_4, %c0_5] : memref<1x32xf32, #tpu.memory_space<vmem>>, vector<1x32xf32>
    %cst = arith.constant dense<0.000000e+00> : vector<256xf32>
    %4 = vector.multi_reduction <add>, %1, %cst [1] : vector<256x32xf32> to vector<256xf32>
    %5 = vector.shape_cast %4 : vector<256xf32> to vector<256x1xf32>
    %cst_6 = arith.constant 3.200000e+01 : f32
    %6 = vector.broadcast %cst_6 : f32 to vector<256x1xf32>
    %7 = arith.divf %5, %6 : vector<256x1xf32>
    %8 = vector.broadcast %7 : vector<256x1xf32> to vector<256x32xf32>
    %9 = arith.subf %1, %8 : vector<256x32xf32>
    %10 = arith.mulf %9, %9 : vector<256x32xf32>
    %cst_7 = arith.constant dense<0.000000e+00> : vector<256xf32>
    %11 = vector.multi_reduction <add>, %10, %cst_7 [1] : vector<256x32xf32> to vector<256xf32>
    %12 = vector.shape_cast %11 : vector<256xf32> to vector<256x1xf32>
    %cst_8 = arith.constant 3.200000e+01 : f32
    %13 = vector.broadcast %cst_8 : f32 to vector<256x1xf32>
    %14 = arith.divf %12, %13 : vector<256x1xf32>
    %cst_9 = arith.constant 9.99999974E-6 : f32
    %15 = vector.broadcast %cst_9 : f32 to vector<256x1xf32>
    %16 = arith.addf %14, %15 : vector<256x1xf32>
    %17 = math.rsqrt %16 : vector<256x1xf32>
    %18 = vector.broadcast %17 : vector<256x1xf32> to vector<256x32xf32>
    %19 = arith.mulf %9, %18 : vector<256x32xf32>
    %20 = vector.broadcast %2 : vector<1x32xf32> to vector<256x32xf32>
    %21 = arith.mulf %19, %20 : vector<256x32xf32>
    %22 = vector.broadcast %3 : vector<1x32xf32> to vector<256x32xf32>
    %23 = arith.addf %21, %22 : vector<256x32xf32>
    %24 = arith.truncf %23 : vector<256x32xf32> to vector<256x32xbf16>
    %c0_10 = arith.constant 0 : index
    %c0_11 = arith.constant 0 : index
    %25 = vector.load %arg5[%c0_10, %c0_11] : memref<96x32xbf16, #tpu.memory_space<vmem>>, vector<96x32xbf16>
    %cst_12 = arith.constant dense<0.000000e+00> : vector<96x256xf32>
    %26 = tpu.matmul %25, %24, %cst_12 {dimension_numbers = #tpu.dot_dimension_numbers<[1], [1], [0], [0], [0, 0, 1, 0], [], []>} : vector<96x32xbf16>, vector<256x32xbf16>, vector<96x256xf32> -> vector<96x256xf32>
    %c0_13 = arith.constant 0 : index
    %c0_14 = arith.constant 0 : index
    %27 = vector.load %arg6[%c0_13, %c0_14] : memref<96x1xf32, #tpu.memory_space<vmem>>, vector<96x1xf32>
    %28 = vector.broadcast %27 : vector<96x1xf32> to vector<96x256xf32>
    %29 = arith.addf %26, %28 : vector<96x256xf32>
    %30 = arith.truncf %29 : vector<96x256xf32> to vector<96x256xbf16>
    %c0_15 = arith.constant 0 : index
    %c0_16 = arith.constant 0 : index
    %c0_17 = arith.constant 0 : index
    %31 = vector.load %arg7[%c0_15, %c0_16, %c0_17] : memref<1x96x256xbf16, #tpu.memory_space<vmem>>, vector<1x96x256xbf16>
    %32 = vector.shape_cast %31 : vector<1x96x256xbf16> to vector<96x256xbf16>
    %33 = vector.shape_cast %30 : vector<96x256xbf16> to vector<1x96x256xbf16>
    tpu.vector_store %arg7[%c0_15, %c0_16, %c0_17], %33 {strides = array<i32>} : memref<1x96x256xbf16, #tpu.memory_space<vmem>>, vector<1x96x256xbf16>,
    return
  }
  func.func @transform_0(%arg0: i32, %arg1: i32) -> (i32, i32, i32) {
    %c0_i32 = arith.constant 0 : i32
    %c0_i32_0 = arith.constant 0 : i32
    return %arg0, %arg1, %c0_i32 : i32, i32, i32
  }
  func.func @transform_1(%arg0: i32, %arg1: i32) -> (i32, i32) {
    %c0_i32 = arith.constant 0 : i32
    %c0_i32_0 = arith.constant 0 : i32
    %c0_i32_1 = arith.constant 0 : i32
    return %c0_i32, %c0_i32_0 : i32, i32
  }
  func.func @transform_2(%arg0: i32, %arg1: i32) -> (i32, i32) {
    %c0_i32 = arith.constant 0 : i32
    %c0_i32_0 = arith.constant 0 : i32
    %c0_i32_1 = arith.constant 0 : i32
    return %c0_i32, %c0_i32_0 : i32, i32
  }
  func.func @transform_3(%arg0: i32, %arg1: i32) -> (i32, i32) {
    %c0_i32 = arith.constant 0 : i32
    %c0_i32_0 = arith.constant 0 : i32
    %c0_i32_1 = arith.constant 0 : i32
    return %c0_i32, %c0_i32_0 : i32, i32
  }
  func.func @transform_4(%arg0: i32, %arg1: i32) -> (i32, i32) {
    %c0_i32 = arith.constant 0 : i32
    %c0_i32_0 = arith.constant 0 : i32
    %c0_i32_1 = arith.constant 0 : i32
    return %c0_i32, %c0_i32_0 : i32, i32
  }
  func.func @transform_5(%arg0: i32, %arg1: i32) -> (i32, i32, i32) {
    %c0_i32 = arith.constant 0 : i32
    %c0_i32_0 = arith.constant 0 : i32
    return %arg0, %c0_i32, %arg1 : i32, i32, i32
  }
}

module attributes {stable_mosaic.version = 11 : i64} {
  func.func @_proj_mlp_kernel(%arg0: i32, %arg1: i32, %arg2: memref<1x32x256xbf16, #tpu.memory_space<vmem>>, %arg3: memref<1x256x32xf32, #tpu.memory_space<vmem>>, %arg4: memref<32x32xbf16, #tpu.memory_space<vmem>>, %arg5: memref<1x32xf32, #tpu.memory_space<vmem>>, %arg6: memref<1x32xf32, #tpu.memory_space<vmem>>, %arg7: memref<1x32xf32, #tpu.memory_space<vmem>>, %arg8: memref<32x128xbf16, #tpu.memory_space<vmem>>, %arg9: memref<1x128xf32, #tpu.memory_space<vmem>>, %arg10: memref<128x32xbf16, #tpu.memory_space<vmem>>, %arg11: memref<1x32xf32, #tpu.memory_space<vmem>>, %arg12: memref<1x256x32xf32, #tpu.memory_space<vmem>>) attributes {dimension_semantics = [#tpu.dimension_semantics<parallel>, #tpu.dimension_semantics<parallel>], iteration_bounds = array<i64: 2, 1>, scalar_prefetch = 0 : i64, scratch_operands = 0 : i64, tpu.core_type = #tpu.core_type<tc>, window_params = [{transform_indices = @transform_0, window_bounds = array<i64: 1, 32, 256>}, {transform_indices = @transform_1, window_bounds = array<i64: 1, 256, 32>}, {pipeline_mode = #tpu.pipeline_mode<synchronous>, transform_indices = @transform_2, window_bounds = array<i64: 32, 32>}, {pipeline_mode = #tpu.pipeline_mode<synchronous>, transform_indices = @transform_3, window_bounds = array<i64: 1, 32>}, {pipeline_mode = #tpu.pipeline_mode<synchronous>, transform_indices = @transform_4, window_bounds = array<i64: 1, 32>}, {pipeline_mode = #tpu.pipeline_mode<synchronous>, transform_indices = @transform_5, window_bounds = array<i64: 1, 32>}, {pipeline_mode = #tpu.pipeline_mode<synchronous>, transform_indices = @transform_6, window_bounds = array<i64: 32, 128>}, {pipeline_mode = #tpu.pipeline_mode<synchronous>, transform_indices = @transform_7, window_bounds = array<i64: 1, 128>}, {pipeline_mode = #tpu.pipeline_mode<synchronous>, transform_indices = @transform_8, window_bounds = array<i64: 128, 32>}, {pipeline_mode = #tpu.pipeline_mode<synchronous>, transform_indices = @transform_9, window_bounds = array<i64: 1, 32>}, {transform_indices = @transform_10, window_bounds = array<i64: 1, 256, 32>}]} {
    %c0 = arith.constant 0 : index
    %c0_0 = arith.constant 0 : index
    %c0_1 = arith.constant 0 : index
    %0 = vector.load %arg2[%c0, %c0_0, %c0_1] : memref<1x32x256xbf16, #tpu.memory_space<vmem>>, vector<1x32x256xbf16>
    %1 = vector.shape_cast %0 : vector<1x32x256xbf16> to vector<32x256xbf16>
    %c0_2 = arith.constant 0 : index
    %c0_3 = arith.constant 0 : index
    %2 = vector.load %arg4[%c0_2, %c0_3] : memref<32x32xbf16, #tpu.memory_space<vmem>>, vector<32x32xbf16>
    %cst = arith.constant dense<0.000000e+00> : vector<256x32xf32>
    %3 = tpu.matmul %1, %2, %cst {dimension_numbers = #tpu.dot_dimension_numbers<[0], [0], [1], [1], [0, 1, 1, 1], [], []>} : vector<32x256xbf16>, vector<32x32xbf16>, vector<256x32xf32> -> vector<256x32xf32>
    %c0_4 = arith.constant 0 : index
    %c0_5 = arith.constant 0 : index
    %4 = vector.load %arg5[%c0_4, %c0_5] : memref<1x32xf32, #tpu.memory_space<vmem>>, vector<1x32xf32>
    %5 = vector.broadcast %4 : vector<1x32xf32> to vector<256x32xf32>
    %6 = arith.addf %3, %5 : vector<256x32xf32>
    %c0_6 = arith.constant 0 : index
    %c0_7 = arith.constant 0 : index
    %c0_8 = arith.constant 0 : index
    %7 = vector.load %arg3[%c0_6, %c0_7, %c0_8] : memref<1x256x32xf32, #tpu.memory_space<vmem>>, vector<1x256x32xf32>
    %8 = vector.shape_cast %7 : vector<1x256x32xf32> to vector<256x32xf32>
    %9 = arith.addf %6, %8 : vector<256x32xf32>
    %c0_9 = arith.constant 0 : index
    %c0_10 = arith.constant 0 : index
    %10 = vector.load %arg6[%c0_9, %c0_10] : memref<1x32xf32, #tpu.memory_space<vmem>>, vector<1x32xf32>
    %c0_11 = arith.constant 0 : index
    %c0_12 = arith.constant 0 : index
    %11 = vector.load %arg7[%c0_11, %c0_12] : memref<1x32xf32, #tpu.memory_space<vmem>>, vector<1x32xf32>
    %cst_13 = arith.constant dense<0.000000e+00> : vector<256xf32>
    %12 = vector.multi_reduction <add>, %9, %cst_13 [1] : vector<256x32xf32> to vector<256xf32>
    %13 = vector.shape_cast %12 : vector<256xf32> to vector<256x1xf32>
    %cst_14 = arith.constant 3.200000e+01 : f32
    %14 = vector.broadcast %cst_14 : f32 to vector<256x1xf32>
    %15 = arith.divf %13, %14 : vector<256x1xf32>
    %16 = vector.broadcast %15 : vector<256x1xf32> to vector<256x32xf32>
    %17 = arith.subf %9, %16 : vector<256x32xf32>
    %18 = arith.mulf %17, %17 : vector<256x32xf32>
    %cst_15 = arith.constant dense<0.000000e+00> : vector<256xf32>
    %19 = vector.multi_reduction <add>, %18, %cst_15 [1] : vector<256x32xf32> to vector<256xf32>
    %20 = vector.shape_cast %19 : vector<256xf32> to vector<256x1xf32>
    %cst_16 = arith.constant 3.200000e+01 : f32
    %21 = vector.broadcast %cst_16 : f32 to vector<256x1xf32>
    %22 = arith.divf %20, %21 : vector<256x1xf32>
    %cst_17 = arith.constant 9.99999974E-6 : f32
    %23 = vector.broadcast %cst_17 : f32 to vector<256x1xf32>
    %24 = arith.addf %22, %23 : vector<256x1xf32>
    %25 = math.rsqrt %24 : vector<256x1xf32>
    %26 = vector.broadcast %25 : vector<256x1xf32> to vector<256x32xf32>
    %27 = arith.mulf %17, %26 : vector<256x32xf32>
    %28 = vector.broadcast %10 : vector<1x32xf32> to vector<256x32xf32>
    %29 = arith.mulf %27, %28 : vector<256x32xf32>
    %30 = vector.broadcast %11 : vector<1x32xf32> to vector<256x32xf32>
    %31 = arith.addf %29, %30 : vector<256x32xf32>
    %32 = arith.truncf %31 : vector<256x32xf32> to vector<256x32xbf16>
    %c0_18 = arith.constant 0 : index
    %c0_19 = arith.constant 0 : index
    %33 = vector.load %arg8[%c0_18, %c0_19] : memref<32x128xbf16, #tpu.memory_space<vmem>>, vector<32x128xbf16>
    %cst_20 = arith.constant dense<0.000000e+00> : vector<256x128xf32>
    %34 = tpu.matmul %32, %33, %cst_20 {dimension_numbers = #tpu.dot_dimension_numbers<[1], [0], [0], [1], [0, 0, 1, 1], [], []>} : vector<256x32xbf16>, vector<32x128xbf16>, vector<256x128xf32> -> vector<256x128xf32>
    %c0_21 = arith.constant 0 : index
    %c0_22 = arith.constant 0 : index
    %35 = vector.load %arg9[%c0_21, %c0_22] : memref<1x128xf32, #tpu.memory_space<vmem>>, vector<1x128xf32>
    %36 = vector.broadcast %35 : vector<1x128xf32> to vector<256x128xf32>
    %37 = arith.addf %34, %36 : vector<256x128xf32>
    %cst_23 = arith.constant 0.707106769 : f32
    %38 = vector.broadcast %cst_23 : f32 to vector<256x128xf32>
    %39 = arith.mulf %37, %38 : vector<256x128xf32>
    %cst_24 = arith.constant 0.000000e+00 : f32
    %40 = vector.broadcast %cst_24 : f32 to vector<256x128xf32>
    %41 = arith.cmpf oge, %39, %40 : vector<256x128xf32>
    %cst_25 = arith.constant 1.000000e+00 : f32
    %cst_26 = arith.constant -1.000000e+00 : f32
    %42 = vector.broadcast %cst_25 : f32 to vector<256x128xf32>
    %43 = vector.broadcast %cst_26 : f32 to vector<256x128xf32>
    %44 = arith.select %41, %42, %43 : vector<256x128xi1>, vector<256x128xf32>
    %45 = math.absf %39 : vector<256x128xf32>
    %cst_27 = arith.constant 0.327591091 : f32
    %46 = vector.broadcast %cst_27 : f32 to vector<256x128xf32>
    %47 = arith.mulf %46, %45 : vector<256x128xf32>
    %cst_28 = arith.constant 1.000000e+00 : f32
    %48 = vector.broadcast %cst_28 : f32 to vector<256x128xf32>
    %49 = arith.addf %48, %47 : vector<256x128xf32>
    %cst_29 = arith.constant 1.000000e+00 : f32
    %50 = vector.broadcast %cst_29 : f32 to vector<256x128xf32>
    %51 = arith.divf %50, %49 : vector<256x128xf32>
    %cst_30 = arith.constant 1.06140542 : f32
    %52 = vector.broadcast %cst_30 : f32 to vector<256x128xf32>
    %53 = arith.mulf %51, %52 : vector<256x128xf32>
    %cst_31 = arith.constant -1.45315206 : f32
    %54 = vector.broadcast %cst_31 : f32 to vector<256x128xf32>
    %55 = arith.addf %54, %53 : vector<256x128xf32>
    %56 = arith.mulf %51, %55 : vector<256x128xf32>
    %cst_32 = arith.constant 1.42141378 : f32
    %57 = vector.broadcast %cst_32 : f32 to vector<256x128xf32>
    %58 = arith.addf %57, %56 : vector<256x128xf32>
    %59 = arith.mulf %51, %58 : vector<256x128xf32>
    %cst_33 = arith.constant -0.284496725 : f32
    %60 = vector.broadcast %cst_33 : f32 to vector<256x128xf32>
    %61 = arith.addf %60, %59 : vector<256x128xf32>
    %62 = arith.mulf %51, %61 : vector<256x128xf32>
    %cst_34 = arith.constant 0.254829586 : f32
    %63 = vector.broadcast %cst_34 : f32 to vector<256x128xf32>
    %64 = arith.addf %63, %62 : vector<256x128xf32>
    %65 = arith.mulf %51, %64 : vector<256x128xf32>
    %cst_35 = arith.constant 0.000000e+00 : f32
    %66 = vector.broadcast %cst_35 : f32 to vector<256x128xf32>
    %67 = arith.subf %66, %45 : vector<256x128xf32>
    %68 = arith.mulf %67, %45 : vector<256x128xf32>
    %69 = math.exp %68 : vector<256x128xf32>
    %70 = arith.mulf %65, %69 : vector<256x128xf32>
    %cst_36 = arith.constant 1.000000e+00 : f32
    %71 = vector.broadcast %cst_36 : f32 to vector<256x128xf32>
    %72 = arith.subf %71, %70 : vector<256x128xf32>
    %73 = arith.mulf %44, %72 : vector<256x128xf32>
    %cst_37 = arith.constant 5.000000e-01 : f32
    %74 = vector.broadcast %cst_37 : f32 to vector<256x128xf32>
    %75 = arith.mulf %37, %74 : vector<256x128xf32>
    %cst_38 = arith.constant 1.000000e+00 : f32
    %76 = vector.broadcast %cst_38 : f32 to vector<256x128xf32>
    %77 = arith.addf %76, %73 : vector<256x128xf32>
    %78 = arith.mulf %75, %77 : vector<256x128xf32>
    %79 = arith.truncf %78 : vector<256x128xf32> to vector<256x128xbf16>
    %c0_39 = arith.constant 0 : index
    %c0_40 = arith.constant 0 : index
    %80 = vector.load %arg10[%c0_39, %c0_40] : memref<128x32xbf16, #tpu.memory_space<vmem>>, vector<128x32xbf16>
    %cst_41 = arith.constant dense<0.000000e+00> : vector<256x32xf32>
    %81 = tpu.matmul %79, %80, %cst_41 {dimension_numbers = #tpu.dot_dimension_numbers<[1], [0], [0], [1], [0, 0, 1, 1], [], []>} : vector<256x128xbf16>, vector<128x32xbf16>, vector<256x32xf32> -> vector<256x32xf32>
    %c0_42 = arith.constant 0 : index
    %c0_43 = arith.constant 0 : index
    %82 = vector.load %arg11[%c0_42, %c0_43] : memref<1x32xf32, #tpu.memory_space<vmem>>, vector<1x32xf32>
    %83 = vector.broadcast %82 : vector<1x32xf32> to vector<256x32xf32>
    %84 = arith.addf %81, %83 : vector<256x32xf32>
    %85 = arith.addf %9, %84 : vector<256x32xf32>
    %c0_44 = arith.constant 0 : index
    %c0_45 = arith.constant 0 : index
    %c0_46 = arith.constant 0 : index
    %86 = vector.load %arg12[%c0_44, %c0_45, %c0_46] : memref<1x256x32xf32, #tpu.memory_space<vmem>>, vector<1x256x32xf32>
    %87 = vector.shape_cast %86 : vector<1x256x32xf32> to vector<256x32xf32>
    %88 = vector.shape_cast %85 : vector<256x32xf32> to vector<1x256x32xf32>
    tpu.vector_store %arg12[%c0_44, %c0_45, %c0_46], %88 {strides = array<i32>} : memref<1x256x32xf32, #tpu.memory_space<vmem>>, vector<1x256x32xf32>,
    return
  }
  func.func @transform_0(%arg0: i32, %arg1: i32) -> (i32, i32, i32) {
    %c0_i32 = arith.constant 0 : i32
    %c0_i32_0 = arith.constant 0 : i32
    return %arg0, %c0_i32, %arg1 : i32, i32, i32
  }
  func.func @transform_1(%arg0: i32, %arg1: i32) -> (i32, i32, i32) {
    %c0_i32 = arith.constant 0 : i32
    %c0_i32_0 = arith.constant 0 : i32
    return %arg0, %arg1, %c0_i32 : i32, i32, i32
  }
  func.func @transform_2(%arg0: i32, %arg1: i32) -> (i32, i32) {
    %c0_i32 = arith.constant 0 : i32
    %c0_i32_0 = arith.constant 0 : i32
    %c0_i32_1 = arith.constant 0 : i32
    return %c0_i32, %c0_i32_0 : i32, i32
  }
  func.func @transform_3(%arg0: i32, %arg1: i32) -> (i32, i32) {
    %c0_i32 = arith.constant 0 : i32
    %c0_i32_0 = arith.constant 0 : i32
    %c0_i32_1 = arith.constant 0 : i32
    return %c0_i32, %c0_i32_0 : i32, i32
  }
  func.func @transform_4(%arg0: i32, %arg1: i32) -> (i32, i32) {
    %c0_i32 = arith.constant 0 : i32
    %c0_i32_0 = arith.constant 0 : i32
    %c0_i32_1 = arith.constant 0 : i32
    return %c0_i32, %c0_i32_0 : i32, i32
  }
  func.func @transform_5(%arg0: i32, %arg1: i32) -> (i32, i32) {
    %c0_i32 = arith.constant 0 : i32
    %c0_i32_0 = arith.constant 0 : i32
    %c0_i32_1 = arith.constant 0 : i32
    return %c0_i32, %c0_i32_0 : i32, i32
  }
  func.func @transform_6(%arg0: i32, %arg1: i32) -> (i32, i32) {
    %c0_i32 = arith.constant 0 : i32
    %c0_i32_0 = arith.constant 0 : i32
    %c0_i32_1 = arith.constant 0 : i32
    return %c0_i32, %c0_i32_0 : i32, i32
  }
  func.func @transform_7(%arg0: i32, %arg1: i32) -> (i32, i32) {
    %c0_i32 = arith.constant 0 : i32
    %c0_i32_0 = arith.constant 0 : i32
    %c0_i32_1 = arith.constant 0 : i32
    return %c0_i32, %c0_i32_0 : i32, i32
  }
  func.func @transform_8(%arg0: i32, %arg1: i32) -> (i32, i32) {
    %c0_i32 = arith.constant 0 : i32
    %c0_i32_0 = arith.constant 0 : i32
    %c0_i32_1 = arith.constant 0 : i32
    return %c0_i32, %c0_i32_0 : i32, i32
  }
  func.func @transform_9(%arg0: i32, %arg1: i32) -> (i32, i32) {
    %c0_i32 = arith.constant 0 : i32
    %c0_i32_0 = arith.constant 0 : i32
    %c0_i32_1 = arith.constant 0 : i32
    return %c0_i32, %c0_i32_0 : i32, i32
  }
  func.func @transform_10(%arg0: i32, %arg1: i32) -> (i32, i32, i32) {
    %c0_i32 = arith.constant 0 : i32
    %c0_i32_0 = arith.constant 0 : i32
    return %arg0, %arg1, %c0_i32 : i32, i32, i32
  }
}

</mosaic_0001>

<bundles_post_ra>
// kernel: _lambda_.4
= control target key start
LH: loop header
LB: loop body
LE: loop exit
PB: predicated region body
PF: predicated region fallthrough
CT: control target
= control target key end

     0   :  { %9 = vsyncpa [#allocation3], 0  ;;  %s3113_s0 = inlined_call_operand.vmem [shape: bf16[2,96,256], index: 0, kind: input, shape index: {}, may-alias: {0,1,2}]   ;;  %s3114_s1 = inlined_call_operand.vmem [shape: bf16[2,96,256], index: 1, kind: input, shape index: {}, may-alias: {0,1,2}]   ;;  %s3115_s2 = inlined_call_operand.vmem [shape: bf16[2,96,256], index: 2, kind: input, shape index: {}, may-alias: {0,1,2}]   ;;  %s3116_s3 = inlined_call_operand.hbm [shape: bf16[4,256,256], index: 3, kind: input, shape index: {}]   ;;  %s3117_s4 = inlined_call_operand.vmem [shape: bf16[2,32,256], index: 4, kind: output, shape index: {}]  }
   0x1   :  { %11 = vsyncpa [#allocation3 + $0x1], 0  ;;  %s1850_s15 = smov 0   ;;  %s1852_s16 = smov 0  }
   0x2   :  { %s1854_s17 = smov 0   ;;  %s1856_s18 = smov 0  }
   0x3   :  { %s1858_s19 = smov 0   ;;  %s1860_s20 = smov 0  }
   0x4   :  { %s1862_s21 = smov 0   ;;  %s1864_s22 = smov 0  }
   0x5 LB: > { %s1466_s23 = sadd.s32 4294967295, %s1819_s22   ;;  %s29_s24 = sadd.s32 1, %s1811_s20  ;;  %s1819_s22 = sphi %s1864_s22, %s17_s22   ;;  %s1815_s21 = sphi %s1862_s21, %s3327_s21   ;;  %s1811_s20 = sphi %s1860_s20, %s3326_s20   ;;  %s1807_s19 = sphi %s1858_s19, %s3325_s19   ;;  %s1803_s18 = sphi %s1856_s18, %s3324_s18   ;;  %s1799_s17 = sphi %s1854_s17, %s3323_s17   ;;  %s1795_s16 = sphi %s1852_s16, %s3322_s16   ;;  %s1791_s15 = sphi %s1850_s15, %s3321_s15  }
   0x6   : > { %p30_p0 = scmp.ge.s32.totalorder %s29_s24, 2  ;;  %s36_s25 = sadd.s32 1, %s1815_s21 }
   0x7   : > { %s135_s26 = sadd.s32 1, %s1799_s17  ;;  %p142_p1 = scmp.ne.s32.totalorder %s1799_s17, %s1795_s16 }
   0x8   : > { %s3329_s24 = smov (%p30_p0, %s29_s24), 0  ;;  %s3331_s25 = smov (!%p30_p0, %s36_s25), %s1815_s21 }
   0x9   : > { %p143_p2 = scmp.eq.s32.totalorder %s1819_s22, 0  ;;  %p148_p3 = scmp.ne.s32.totalorder %s1795_s16, %s1791_s15 }
   0xa   : > { %p38_p4 = scmp.ge.s32.totalorder %s3331_s25, 4  ;;  %p149_p5 = scmp.eq.s32.totalorder %s1466_s23, 0 }
   0xb   : > { %p1899_p6 = por %p143_p2, %p142_p1  ;;  %p1519_p8 = scmp.lt.s32.totalorder %s1819_s22, 8 }
   0xc   : > { %s3333_s25 = smov (%p38_p4, %s3331_s25), 0  ;;  %p1905_p7 = por %p149_p5, %p148_p3 }
   0xd   : > { %s130_s29 = ssub.s32 %s1815_s21, %s3333_s25  ;;  %s247_s30 = sand.u32 1, %s1799_s17  }
   0xe   : > { %p133_p9 = scmp.eq.s32.totalorder %s130_s29, 0  ;;  %s1470_s5 = sshll.u32 %s247_s30, 8 }
   0xf   : > { %s1510_s6 = sshll.u32 %s1815_s21, 12  ;;  %s251_s11 = scalar_lea.vmem [#allocation2], %s1470_s5 }
  0x10   : > { %s1915_s7 = scalar_select %p133_p9, %s1799_s17, %s135_s26  }
  0x11   : > { %s259_s10 = scalar_lea.hbm %s3116_s3, %s1510_s6  ;;  %s260_s12 = sshll.u32 %s251_s11, 4  ;;  %s261_s12 = int_to_ptr.vmem [resolvable:$true] %s260_s12 }
  0x12   : > { %p1922_p10 = pnand %p1519_p8, %p1899_p6  ;;  %s248_s14 = scalar_lea.sflag [#allocation3], %s247_s30 }
  0x13   : > { %s1738_s15 = scalar_lea.vmem %s261_s12, 4096  ;;  %s1821_s23 = smov [#allocation2]  }
  0x14   : > { %p1727_p11 = pneg %p1922_p10  ;;  %p1739_p12 = scmp.ne.s32.totalorder %s261_s12, %s1738_s15 }
  0x15   : > { %s1743_s26 = sshll.u32 %s1821_s23, 4  ;;  %s1744_s26 = int_to_ptr.vmem [resolvable:$false] %s1743_s26 }
  0x16   : > { %p1741_p13 = pnand %p1739_p12, %p1727_p11  ;;  %s1745_s29 = scalar_lea.vmem %s1744_s26, 8192 }
  0x17   : > { %p1746_p1 = scmp.lt.s32.totalorder %s261_s12, %s1744_s26  ;;  %p1747_p2 = scmp.lt.s32.totalorder %s1745_s29, %s1738_s15 }
  0x18   : > { %p1742_p0 = pneg %p1741_p13 }
  0x19   : > { %p1748_p3 = por %p1747_p2, %p1746_p1 }
  0x1b   : > { %p1749_p4 = pnand %p1748_p3, %p1742_p0 }
  0x1d   : > { %1752 = shalt.err (!%p1749_p4)
}
  0x1e   : > { %s1822_s27 = smov 128   ;;  %s1823_s30 = smov 8  }
  0x1f   : > { %1518 = dma.hbm_to_vmem [thread:$0]  (!%p1922_p10), %s259_s10, 4096, %s261_s12, %s248_s14, %s1822_s27, %s1822_s27, %s1823_s30  }
  0x20   : > { %p1473_p5 = scmp.ge.s32.totalorder %s1819_s22, 1  ;;  %p268_p6 = scmp.lt.s32.totalorder %s1819_s22, 9 }
  0x22   : > { %p269_p8 = pnand %p1473_p5, %p268_p6 }
  0x24   : > { %272 = sbr.rel (%p269_p8) target bundleno = 895 (0x37f), region = 36 }
  0x29   : > { %s274_s5 = sand.u32 1, %s1795_s16  }
  0x2a   : > { %s1474_s6 = sshll.u32 %s274_s5, 8  ;;  %s275_s8 = scalar_lea.sflag [#allocation3], %s274_s5 }
  0x2b   : > { %s1933_s9 = scalar_lea.vmem [#allocation2], %s1474_s6 }
  0x2c   : > { %1786 = dma.done.wait (%p1905_p7), %s275_s8, 4096  }
  0x2d   : > { %1788 = vsyncadd (%p1905_p7), %s275_s8, 4294963200  ;;  %p345_p9 = scmp.lt.s32.totalorder %s1803_s18, 1  ;;  %s358_s10 = sadd.s32 4, %s1807_s19  ;;  %v1824_v0 = vmov 0   ;;  %vm587_vm0 = vcmask 1043456   ;;  %vm538_vm1 = vcmask 64512  }
  0x2e   : > { %p361_p10 = scmp.lt.s32.totalorder %s358_s10, 11  ;;  %626 = vmatprep.mubr.bf16.mxu0 %v1824_v0  ;;  %p347_p7 = scmp.lt.s32.totalorder %s1807_s19, 11  ;;  %v398_v25 = vld [vmem:[%s1933_s9] sm:$0xff]  ;;  %v400_v27 = vld [vmem:[%s1933_s9 + $0x10] sm:$0xff]  ;;  %v399_v31 = vld [vmem:[%s1933_s9 + $0x8] sm:$0xff] }
  0x2f   : > { %s3335_s18 = smov (!%p345_p9, %s1803_s18), 1  ;;  %v430_v29 = vunpack.c.l.bf16 %v398_v25  ;;  %v434_v30 = vunpack.c.l.bf16 %v400_v27  ;;  %v401_v33 = vld [vmem:[%s1933_s9 + $0x18] sm:$0xff]  ;;  %v431_v34 = vunpack.c.h.bf16 %v398_v25  ;;  %v435_v35 = vunpack.c.h.bf16 %v400_v27  ;;  %v402_v43 = vld [vmem:[%s1933_s9 + $0x20] sm:$0xff]  ;;  %v403_v54 = vld [vmem:[%s1933_s9 + $0x28] sm:$0xff]  ;;  %p384_p12 = scmp.lt.s32.totalorder %s1807_s19, 3 }
  0x30   : > { %s3337_s10 = smov (!%p361_p10, %s358_s10), 11  ;;  %s1946_s11 = smul.u32 24, %s3335_s18  ;;  %v432_v38 = vunpack.c.l.bf16 %v399_v31  ;;  %v436_v40 = vunpack.c.l.bf16 %v401_v33  ;;  %v433_v41 = vunpack.c.h.bf16 %v399_v31  ;;  %v437_v47 = vunpack.c.h.bf16 %v401_v33  ;;  %v407_v27 = vld [vmem:[%s1933_s9 + $0x48] sm:$0xff] }
  0x31   : > { %s1477_s28 = sshll.u32 %s3337_s10, 1  ;;  %v438_v52 = vunpack.c.l.bf16 %v402_v43  ;;  %v439_v58 = vunpack.c.h.bf16 %v402_v43  ;;  %v440_v62 = vunpack.c.l.bf16 %v403_v54 }
  0x32   : > { %s365_s12 = sadd.s32 %s1946_s11, %s1477_s28 }
  0x33   : > { %s1478_s13 = sshll.u32 %s365_s12, 2 }
  0x34   : > { %s367_s23 = scalar_lea.vmem %s3114_s1, %s1478_s13 }
  0x35   : > { %v397_v1 = vld [vmem:[%s367_s23] sm:$0xff]  ;;  %s348_s26 = scalar_select %p347_p7, %s1807_s19, 11 }
  0x36   : > { %v1484_v2 = vcombine.low %v397_v1, %v397_v1  ;;  %v1485_v7 = vcombine.high %v397_v1, %v397_v1  ;;  %s1482_s23 = sshll.u32 %s3335_s18, 3 }
  0x37   : > { %s1475_s29 = sshll.u32 %s348_s26, 1 }
  0x38   : > { %501 = vxpose.xlu0.c.b16.start.end [1/1] (short) %v1484_v2, 128  ;;  %s354_s27 = sadd.s32 %s1946_s11, %s1475_s29 }
  0x39   : > { %s1476_s30 = sshll.u32 %s354_s27, 2 }
  0x3a   : > { %s356_s8 = scalar_lea.vmem %s3113_s0, %s1476_s30 }
  0x3b   : > { %v396_v3 = vld [vmem:[%s356_s8] sm:$0xff] }
  0x3c   : > { %v1487_v4 = vcombine.high %v396_v3, %v396_v3  ;;  %v1486_v5 = vcombine.low %v396_v3, %v396_v3  ;;  %v441_v3 = vunpack.c.h.bf16 %v403_v54 }
  0x3e   : > { %1488 = vmatprep.subr.msk.bf16.mxu0 %vm587_vm0, %v1487_v4  ;;  %v589_v6 = vsel %vm587_vm0, %v1486_v5, 0 }
  0x3f   : > { %609 = vmatpush1.bf16.msra.mxu0 %v589_v6 }
  0x55   : > { %517 = vxpose.xlu0.c.b16.start.end [1/1] (short) %v1485_v7, 128 }
  0x9a   : > { %v509_v8 = vpop.trf.xlu0 }
  0x9b   : > { %1489 = vmatmul.mubr.msk.bf16.vlgmr.msra.gmra.mxu0 %vm538_vm1, %v509_v8 }
  0x9c   : > { %636 = vmatprep.mubr.bf16.mxu0 %v1824_v0 }
  0x9e   : > { %v510_v9 = vpop.trf.xlu0 }
  0xa2   : > { %v511_v10 = vpop.trf.xlu0 }
  0xa3   : > { %1490 = vmatmul.mubr.msk.bf16.gmra.mxu0 %vm538_vm1, %v510_v9  ;;  %v405_v9 = vld [vmem:[%s1933_s9 + $0x38] sm:$0xff] }
  0xa4   : > { %646 = vmatprep.mubr.bf16.mxu0 %v1824_v0 }
  0xa6   : > { %v512_v11 = vpop.trf.xlu0 }
  0xaa   : > { %v513_v12 = vpop.trf.xlu0 }
  0xab   : > { %1491 = vmatmul.mubr.msk.bf16.gmra.mxu0 %vm538_vm1, %v511_v10 }
  0xac   : > { %656 = vmatprep.mubr.bf16.mxu0 %v1824_v0 }
  0xae   : > { %v514_v13 = vpop.trf.xlu0 }
  0xb2   : > { %v515_v14 = vpop.trf.xlu0 }
  0xb3   : > { %1492 = vmatmul.mubr.msk.bf16.gmra.mxu0 %vm538_vm1, %v512_v11 }
  0xb4   : > { %666 = vmatprep.mubr.bf16.mxu0 %v1824_v0 }
  0xb6   : > { %v516_v15 = vpop.trf.xlu0 }
  0xba   : > { %v525_v16 = vpop.trf.xlu0 }
  0xbb   : > { %1493 = vmatmul.mubr.msk.bf16.gmra.mxu0 %vm538_vm1, %v513_v12 }
  0xbc   : > { %676 = vmatprep.mubr.bf16.mxu0 %v1824_v0 }
  0xbe   : > { %v526_v17 = vpop.trf.xlu0 }
  0xc2   : > { %v527_v18 = vpop.trf.xlu0 }
  0xc3   : > { %1494 = vmatmul.mubr.msk.bf16.gmra.mxu0 %vm538_vm1, %v514_v13 }
  0xc4   : > { %686 = vmatprep.mubr.bf16.mxu0 %v1824_v0 }
  0xc6   : > { %v528_v19 = vpop.trf.xlu0 }
  0xca   : > { %v529_v20 = vpop.trf.xlu0 }
  0xcb   : > { %1495 = vmatmul.mubr.msk.bf16.gmra.mxu0 %vm538_vm1, %v515_v14 }
  0xcc   : > { %696 = vmatprep.mubr.bf16.mxu0 %v1824_v0 }
  0xce   : > { %v530_v21 = vpop.trf.xlu0 }
  0xd2   : > { %v531_v22 = vpop.trf.xlu0 }
  0xd3   : > { %1496 = vmatmul.mubr.msk.bf16.gmra.mxu0 %vm538_vm1, %v516_v15 }
  0xd4   : > { %706 = vmatprep.mubr.bf16.mxu0 %v1824_v0 }
  0xd6   : > { %v532_v23 = vpop.trf.xlu0 }
  0xdb   : > { %1497 = vmatmul.mubr.msk.bf16.gmra.mxu0 %vm538_vm1, %v525_v16  ;;  %v444_v16 = vunpack.c.l.bf16 %v405_v9 }
  0xdc   : > { %716 = vmatprep.mubr.bf16.mxu0 %v1824_v0 }
  0xe3   : > { %1498 = vmatmul.mubr.msk.bf16.gmra.mxu0 %vm538_vm1, %v526_v17 }
  0xe4   : > { %726 = vmatprep.mubr.bf16.mxu0 %v1824_v0 }
  0xeb   : > { %1499 = vmatmul.mubr.msk.bf16.gmra.mxu0 %vm538_vm1, %v527_v18  ;;  %v406_v18 = vld [vmem:[%s1933_s9 + $0x40] sm:$0xff] }
  0xec   : > { %736 = vmatprep.mubr.bf16.mxu0 %v1824_v0  ;;  %v446_v25 = vunpack.c.l.bf16 %v406_v18 }
  0xf3   : > { %1500 = vmatmul.mubr.msk.bf16.gmra.mxu0 %vm538_vm1, %v528_v19 }
  0xf4   : > { %746 = vmatprep.mubr.bf16.mxu0 %v1824_v0 }
  0xfb   : > { %1501 = vmatmul.mubr.msk.bf16.gmra.mxu0 %vm538_vm1, %v529_v20 }
  0xfc   : > { %756 = vmatprep.mubr.bf16.mxu0 %v1824_v0 }
 0x103   : > { %1502 = vmatmul.mubr.msk.bf16.gmra.mxu0 %vm538_vm1, %v530_v21  ;;  %v445_v21 = vunpack.c.h.bf16 %v405_v9 }
 0x104   : > { %766 = vmatprep.mubr.bf16.mxu0 %v1824_v0 }
 0x10b   : > { %1503 = vmatmul.mubr.msk.bf16.gmra.mxu0 %vm538_vm1, %v531_v22 }
 0x10c   : > { %776 = vmatprep.mubr.bf16.mxu0 %v1824_v0  ;;  %v404_v0 = vld [vmem:[%s1933_s9 + $0x30] sm:$0xff] }
 0x10d   : > { %v442_v7 = vunpack.c.l.bf16 %v404_v0  ;;  %v443_v12 = vunpack.c.h.bf16 %v404_v0 }
 0x113   : > { %1504 = vmatmul.mubr.msk.bf16.gmra.mxu0 %vm538_vm1, %v532_v23 }
 0x15b   : > { %v628_v24 = vpop.f32.mrf.mxu0 }
 0x15c   : > { %v1993_v37 = vadd.f32 %v628_v24, %v430_v29 }
 0x15d   : > { %v630_v26 = vpop.f32.mrf.mxu0 }
 0x15e   : > { %3169 = vst [vmem:[#allocation5_spill] sm:$0xff] %v1993_v37  ;;  %v1998_v44 = vadd.f32 %v630_v26, %v431_v34  ;;  %v448_v34 = vunpack.c.l.bf16 %v407_v27 }
 0x15f   : > { %v632_v28 = vpop.f32.mrf.mxu0 }
 0x160   : > { %3171 = vst [vmem:[#allocation7_spill] sm:$0xff] %v1998_v44  ;;  %v2004_v49 = vadd.f32 %v632_v28, %v432_v38 }
 0x161   : > { %v634_v32 = vpop.f32.mrf.mxu0 }
 0x162   : > { %3173 = vst [vmem:[#allocation9_spill] sm:$0xff] %v2004_v49  ;;  %v2011_v55 = vadd.f32 %v634_v32, %v433_v41  ;;  %v449_v41 = vunpack.c.h.bf16 %v407_v27 }
 0x163   : > { %v638_v36 = vpop.f32.mrf.mxu0 }
 0x164   : > { %v1995_v39 = vadd.f32 %v638_v36, %v434_v30  ;;  %3175 = vst [vmem:[#allocation11_spill] sm:$0xff] %v2011_v55  ;;  %v447_v30 = vunpack.c.h.bf16 %v406_v18  ;;  %v408_v36 = vld [vmem:[%s1933_s9 + $0x50] sm:$0xff] }
 0x165   : > { %v640_v42 = vpop.f32.mrf.mxu0 }
 0x166   : > { %3170 = vst [vmem:[#allocation6_spill] sm:$0xff] %v1995_v39  ;;  %v787_v45 = vmax.f32 %v1993_v37, %v1995_v39  ;;  %v2002_v46 = vadd.f32 %v640_v42, %v435_v35  ;;  %v2207_v39 = vld [vmem:[%s1933_s9 + $0xe0] sm:$0xff] }
 0x167   : > { %v642_v48 = vpop.f32.mrf.mxu0 }
 0x168   : > { %3172 = vst [vmem:[#allocation8_spill] sm:$0xff] %v2002_v46  ;;  %v824_v50 = vmax.f32 %v1998_v44, %v2002_v46  ;;  %v2008_v51 = vadd.f32 %v642_v48, %v436_v40  ;;  %v2185_v44 = vld [vmem:[%s1933_s9 + $0xc0] sm:$0xff] }
 0x169   : > { %v644_v53 = vpop.f32.mrf.mxu0 }
 0x16a   : > { %3174 = vst [vmem:[#allocation10_spill] sm:$0xff] %v2008_v51  ;;  %v788_v56 = vmax.f32 %v2004_v49, %v2008_v51  ;;  %v2015_v57 = vadd.f32 %v644_v53, %v437_v47  ;;  %v450_v47 = vunpack.c.l.bf16 %v408_v36  ;;  %v451_v53 = vunpack.c.h.bf16 %v408_v36  ;;  %v2134_v36 = vld [vmem:[%s1933_s9 + $0x70] sm:$0xff] }
 0x16b   : > { %v648_v59 = vpop.f32.mrf.mxu0 }
 0x16c   : > { %3176 = vst [vmem:[#allocation12_spill] sm:$0xff] %v2015_v57  ;;  %v825_v60 = vmax.f32 %v2011_v55, %v2015_v57  ;;  %v2019_v61 = vadd.f32 %v648_v59, %v438_v52  ;;  %v2166_v57 = vld [vmem:[%s1933_s9 + $0xa8] sm:$0xff] }
 0x16d   : > { %v650_v63 = vpop.f32.mrf.mxu0 }
 0x16e   : > { %3177 = vst [vmem:[#allocation13_spill] sm:$0xff] %v2019_v61  ;;  %v789_v1 = vmax.f32 %v787_v45, %v2019_v61  ;;  %v2023_v2 = vadd.f32 %v650_v63, %v439_v58  ;;  %v2188_v61 = vld [vmem:[%s1933_s9 + $0xc8] sm:$0xff] }
 0x16f   : > { %v652_v4 = vpop.f32.mrf.mxu0 }
 0x170   : > { %3178 = vst [vmem:[#allocation14_spill] sm:$0xff] %v2023_v2  ;;  %v826_v5 = vmax.f32 %v824_v50, %v2023_v2  ;;  %v2026_v6 = vadd.f32 %v652_v4, %v440_v62 }
 0x171   : > { %v654_v8 = vpop.f32.mrf.mxu0 }
 0x172   : > { %3179 = vst [vmem:[#allocation15_spill] sm:$0xff] %v2026_v6  ;;  %v790_v10 = vmax.f32 %v788_v56, %v2026_v6  ;;  %v2030_v11 = vadd.f32 %v654_v8, %v441_v3 }
 0x173   : > { %v658_v13 = vpop.f32.mrf.mxu0 }
 0x174   : > { %3180 = vst [vmem:[#allocation16_spill] sm:$0xff] %v2030_v11  ;;  %v827_v14 = vmax.f32 %v825_v60, %v2030_v11  ;;  %v2033_v15 = vadd.f32 %v658_v13, %v442_v7  ;;  %v458_v11 = vunpack.c.l.bf16 %v2134_v36 }
 0x175   : > { %v660_v17 = vpop.f32.mrf.mxu0 }
 0x176   : > { %3181 = vst [vmem:[#allocation17_spill] sm:$0xff] %v2033_v15  ;;  %v791_v19 = vmax.f32 %v789_v1, %v2033_v15  ;;  %v2037_v20 = vadd.f32 %v660_v17, %v443_v12  ;;  %v2197_v15 = vld [vmem:[%s1933_s9 + $0xd0] sm:$0xff] }
 0x177   : > { %v662_v22 = vpop.f32.mrf.mxu0 }
 0x178   : > { %3182 = vst [vmem:[#allocation18_spill] sm:$0xff] %v2037_v20  ;;  %v828_v23 = vmax.f32 %v826_v5, %v2037_v20  ;;  %v2040_v24 = vadd.f32 %v662_v22, %v444_v16 }
 0x179   : > { %v664_v26 = vpop.f32.mrf.mxu0 }
 0x17a   : > { %3183 = vst [vmem:[#allocation19_spill] sm:$0xff] %v2040_v24  ;;  %v792_v28 = vmax.f32 %v790_v10, %v2040_v24  ;;  %v2044_v29 = vadd.f32 %v664_v26, %v445_v21 }
 0x17b   : > { %v668_v31 = vpop.f32.mrf.mxu0 }
 0x17c   : > { %3184 = vst [vmem:[#allocation20_spill] sm:$0xff] %v2044_v29  ;;  %v829_v32 = vmax.f32 %v827_v14, %v2044_v29  ;;  %v2047_v33 = vadd.f32 %v668_v31, %v446_v25  ;;  %v409_v31 = vld [vmem:[%s1933_s9 + $0x58] sm:$0xff] }
 0x17d   : > { %v670_v35 = vpop.f32.mrf.mxu0 }
 0x17e   : > { %3185 = vst [vmem:[#allocation21_spill] sm:$0xff] %v2047_v33  ;;  %v2051_v38 = vmax.f32 %v791_v19, %v2047_v33  ;;  %v2053_v40 = vadd.f32 %v670_v35, %v447_v30  ;;  %v2131_v35 = vld [vmem:[%s1933_s9 + $0x68] sm:$0xff]  ;;  %v2176_v33 = vld [vmem:[%s1933_s9 + $0xb8] sm:$0xff] }
 0x17f   : > { %v672_v42 = vpop.f32.mrf.mxu0  ;;  %v456_v60 = vunpack.c.l.bf16 %v2131_v35  ;;  %v457_v20 = vunpack.c.h.bf16 %v2131_v35  ;;  %3193 = vst [vmem:[#allocation29_spill] sm:$0xff] %v2176_v33  ;;  %v2225_v33 = vld [vmem:[%s1933_s9 + $0xf0] sm:$0xff] }
 0x180   : > { %3186 = vst [vmem:[#allocation22_spill] sm:$0xff] %v2053_v40  ;;  %v2056_v43 = vmax.f32 %v828_v23, %v2053_v40  ;;  %v2058_v45 = vadd.f32 %v672_v42, %v448_v34  ;;  %v2128_v34 = vld [vmem:[%s1933_s9 + $0x60] sm:$0xff]  ;;  %v2154_v40 = vld [vmem:[%s1933_s9 + $0x98] sm:$0xff] }
 0x181   : > { %v674_v48 = vpop.f32.mrf.mxu0  ;;  %v455_v0 = vunpack.c.h.bf16 %v2128_v34  ;;  %v468_v6 = vunpack.c.l.bf16 %v2154_v40 }
 0x182   : > { %3187 = vst [vmem:[#allocation23_spill] sm:$0xff] %v2058_v45  ;;  %v2061_v50 = vmax.f32 %v792_v28, %v2058_v45  ;;  %v2063_v52 = vadd.f32 %v674_v48, %v449_v41  ;;  %v2137_v41 = vld [vmem:[%s1933_s9 + $0x78] sm:$0xff]  ;;  %v2142_v48 = vld [vmem:[%s1933_s9 + $0x80] sm:$0xff]  ;;  %v2173_v45 = vld [vmem:[%s1933_s9 + $0xb0] sm:$0xff] }
 0x183   : > { %v678_v54 = vpop.f32.mrf.mxu0  ;;  %v460_v2 = vunpack.c.l.bf16 %v2137_v41  ;;  %v461_v46 = vunpack.c.h.bf16 %v2137_v41  ;;  %v462_v55 = vunpack.c.l.bf16 %v2142_v48 }
 0x184   : > { %3188 = vst [vmem:[#allocation24_spill] sm:$0xff] %v2063_v52  ;;  %v2066_v56 = vmax.f32 %v829_v32, %v2063_v52  ;;  %v2068_v58 = vadd.f32 %v678_v54, %v450_v47  ;;  %v452_v47 = vunpack.c.l.bf16 %v409_v31  ;;  %v453_v54 = vunpack.c.h.bf16 %v409_v31  ;;  %v2151_v52 = vld [vmem:[%s1933_s9 + $0x90] sm:$0xff] }
 0x185   : > { %v680_v59 = vpop.f32.mrf.mxu0  ;;  %v459_v31 = vunpack.c.h.bf16 %v2134_v36 }
 0x186   : > { %v2072_v62 = vadd.f32 %v680_v59, %v451_v53  ;;  %v2145_v53 = vld [vmem:[%s1933_s9 + $0x88] sm:$0xff]  ;;  %v454_v59 = vunpack.c.l.bf16 %v2128_v34  ;;  %v2163_v34 = vld [vmem:[%s1933_s9 + $0xa0] sm:$0xff] }
 0x187   : > { %v2074_v63 = vpop.f32.mrf.mxu0  ;;  %v464_v35 = vunpack.c.l.bf16 %v2145_v53  ;;  %v465_v24 = vunpack.c.h.bf16 %v2145_v53 }
 0x189   : > { %v2078_v1 = vpop.f32.mrf.mxu0 }
 0x18b   : > { %v2080_v3 = vpop.f32.mrf.mxu0 }
 0x18d   : > { %v2082_v4 = vpop.f32.mrf.mxu0 }
 0x18f   : > { %v2084_v5 = vpop.f32.mrf.mxu0 }
 0x191   : > { %v2086_v7 = vpop.f32.mrf.mxu0 }
 0x192   : > { %v2250_v53 = vadd.f32 %v2086_v7, %v457_v20 }
 0x193   : > { %v2088_v8 = vpop.f32.mrf.mxu0 }
 0x195   : > { %v2090_v9 = vpop.f32.mrf.mxu0 }
 0x197   : > { %v2092_v10 = vpop.f32.mrf.mxu0 }
 0x198   : > { %v2262_v49 = vadd.f32 %v2092_v10, %v460_v2 }
 0x199   : > { %v2094_v12 = vpop.f32.mrf.mxu0 }
 0x19a   : > { %v2271_v7 = vadd.f32 %v2094_v12, %v461_v46  ;;  %v3198_v46 = vmax.f32 %v2056_v43, %v2072_v62 }
 0x19b   : > { %v2096_v13 = vpop.f32.mrf.mxu0 }
 0x19c   : > { %v2280_v10 = vadd.f32 %v2096_v13, %v462_v55 }
 0x19d   : > { %v2098_v14 = vpop.f32.mrf.mxu0 }
 0x19f   : > { %v2100_v16 = vpop.f32.mrf.mxu0 }
 0x1a1   : > { %v2102_v17 = vpop.f32.mrf.mxu0 }
 0x1a3   : > { %v2104_v18 = vpop.f32.mrf.mxu0 }
 0x1a5   : > { %v2106_v19 = vpop.f32.mrf.mxu0 }
 0x1a7   : > { %v2108_v21 = vpop.f32.mrf.mxu0 }
 0x1a9   : > { %v2110_v22 = vpop.f32.mrf.mxu0 }
 0x1ab   : > { %v2112_v23 = vpop.f32.mrf.mxu0 }
 0x1ad   : > { %v2114_v25 = vpop.f32.mrf.mxu0 }
 0x1af   : > { %v2116_v26 = vpop.f32.mrf.mxu0 }
 0x1b1   : > { %v2118_v27 = vpop.f32.mrf.mxu0 }
 0x1b3   : > { %v2120_v28 = vpop.f32.mrf.mxu0 }
 0x1b5   : > { %v2122_v30 = vpop.f32.mrf.mxu0 }
 0x1b6   : > { %3189 = vst [vmem:[#allocation25_spill] sm:$0xff] %v2122_v30 }
 0x1b7   : > { %v2125_v32 = vpop.f32.mrf.mxu0 }
 0x1b8   : > { %3190 = vst [vmem:[#allocation26_spill] sm:$0xff] %v2125_v32  ;;  %v2239_v32 = vadd.f32 %v2084_v5, %v456_v60  ;;  %v2259_v5 = vadd.f32 %v2088_v8, %v458_v11  ;;  %v3197_v11 = vmax.f32 %v2051_v38, %v2068_v58 }
 0x1b9   : > { %v2139_v42 = vpop.f32.mrf.mxu0 }
 0x1ba   : > { %3191 = vst [vmem:[#allocation27_spill] sm:$0xff] %v2139_v42  ;;  %v2204_v42 = vld [vmem:[%s1933_s9 + $0xd8] sm:$0xff] }
 0x1bb   : > { %v2156_v29 = vpop.f32.mrf.mxu0 }
 0x1bc   : > { %3192 = vst [vmem:[#allocation28_spill] sm:$0xff] %v2156_v29  ;;  %v2219_v29 = vadd.f32 %v2074_v63, %v452_v47  ;;  %v486_v63 = vunpack.c.l.bf16 %v2207_v39  ;;  %v2236_v47 = vadd.f32 %v2080_v3, %v454_v59 }
 0x1bd   : > { %v2178_v36 = vpop.f32.mrf.mxu0 }
 0x1be   : > { %3194 = vst [vmem:[#allocation30_spill] sm:$0xff] %v2178_v36  ;;  %v2216_v36 = vld [vmem:[%s1933_s9 + $0xe8] sm:$0xff]  ;;  %v796_v60 = vmax.f32 %v2061_v50, %v2219_v29  ;;  %v797_v2 = vmax.f32 %v3197_v11, %v2236_v47  ;;  %v3202_v11 = vunpack.c.h.bf16 %v2154_v40 }
 0x1bf   : > { %v2194_v37 = vpop.f32.mrf.mxu0  ;;  %v488_v51 = vunpack.c.l.bf16 %v2216_v36  ;;  %v489_v3 = vunpack.c.h.bf16 %v2216_v36 }
 0x1c0   : > { %3195 = vst [vmem:[#allocation31_spill] sm:$0xff] %v2194_v37  ;;  %v2228_v37 = vadd.f32 %v2078_v1, %v453_v54  ;;  %v2244_v1 = vld [vmem:[%s1933_s9 + $0xf8] sm:$0xff]  ;;  %v2247_v54 = vadd.f32 %v2082_v4, %v455_v0  ;;  %v2268_v4 = vadd.f32 %v2090_v9, %v459_v31  ;;  %v798_v8 = vmax.f32 %v796_v60, %v2239_v32  ;;  %s369_s9 = sadd.s32 8, %s1807_s19  ;;  %s3341_s19 = smov (!%p384_p12, %s1807_s19), 3 }
 0x1c1   : > { %v2213_v41 = vpop.f32.mrf.mxu0  ;;  %v3199_v31 = vunpack.c.h.bf16 %v2142_v48  ;;  %v2296_v60 = vadd.f32 %v2102_v17, %v465_v24  ;;  %v799_v13 = vmax.f32 %v797_v2, %v2259_v5  ;;  %v3201_v24 = vunpack.c.h.bf16 %v2151_v52  ;;  %p372_p11 = scmp.lt.s32.totalorder %s369_s9, 11 }
 0x1c2   : > { %3196 = vst [vmem:[#allocation32_spill] sm:$0xff] %v2213_v41  ;;  %v833_v20 = vmax.f32 %v2066_v56, %v2228_v37  ;;  %v2283_v56 = vadd.f32 %v2100_v16, %v464_v35  ;;  %v834_v9 = vmax.f32 %v3198_v46, %v2247_v54  ;;  %v800_v16 = vmax.f32 %v798_v8, %v2262_v49 }
 0x1c3   : > { %v2230_v30 = vpop.f32.mrf.mxu0  ;;  %v2293_v38 = vadd.f32 %v2098_v14, %v3199_v31  ;;  %v3200_v35 = vunpack.c.l.bf16 %v2151_v52  ;;  %v2313_v17 = vadd.f32 %v2106_v19, %v3201_v24  ;;  %v2318_v2 = vadd.f32 %v2110_v22, %v3202_v11  ;;  %v3211_v24 = vld [vmem:[#allocation26_spill] sm:$0xff]  ;;  %s3339_s9 = smov (!%p372_p11, %s369_s9), 11 }
 0x1c4   : > { %v835_v12 = vmax.f32 %v833_v20, %v2250_v53  ;;  %v2306_v20 = vadd.f32 %v2108_v21, %v468_v6  ;;  %v836_v48 = vmax.f32 %v834_v9, %v2268_v4  ;;  %v802_v6 = vmax.f32 %v800_v16, %v2283_v56  ;;  %s1479_s10 = sshll.u32 %s3339_s9, 1 }
 0x1c5   : > { %v2252_v41 = vpop.f32.mrf.mxu0  ;;  %v2303_v43 = vadd.f32 %v2104_v18, %v3200_v35  ;;  %v801_v18 = vmax.f32 %v799_v13, %v2280_v10  ;;  %v3203_v21 = vunpack.c.l.bf16 %v2163_v34  ;;  %v3204_v52 = vunpack.c.l.bf16 %v2166_v57  ;;  %s376_s28 = sadd.s32 %s1946_s11, %s1479_s10  ;;  %s1481_s11 = sshll.u32 %s3341_s19, 1 }
 0x1c6   : > { %v837_v14 = vmax.f32 %v835_v12, %v2271_v7  ;;  %v838_v40 = vmax.f32 %v836_v48, %v2293_v38  ;;  %v3205_v9 = vunpack.c.h.bf16 %v2163_v34  ;;  %v3206_v31 = vunpack.c.h.bf16 %v2166_v57  ;;  %s1480_s12 = sshll.u32 %s376_s28, 2  ;;  %s391_s26 = sadd.s32 %s1482_s23, %s1481_s11 }
 0x1c7   : > { %v762_v59 = vpop.f32.mrf.mxu0  ;;  %v2325_v46 = vadd.f32 %v2112_v23, %v3203_v21  ;;  %v2330_v19 = vadd.f32 %v2116_v26, %v3204_v52  ;;  %v803_v16 = vmax.f32 %v801_v18, %v2303_v43  ;;  %v804_v26 = vmax.f32 %v802_v6, %v2306_v20  ;;  %v3213_v21 = vld [vmem:[#allocation25_spill] sm:$0xff]  ;;  %v3216_v52 = vld [vmem:[#allocation27_spill] sm:$0xff]  ;;  %s378_s15 = scalar_lea.vmem %s3115_s2, %s1480_s12  ;;  %s1483_s29 = sshll.u32 %s391_s26, 2 }
 0x1c8   : > { %v839_v22 = vmax.f32 %v837_v14, %v2296_v60  ;;  %v2337_v12 = vadd.f32 %v2114_v25, %v3205_v9  ;;  %v2342_v13 = vadd.f32 %v2118_v27, %v3206_v31  ;;  %v3208_v35 = vunpack.c.l.bf16 %v2173_v45  ;;  %v3209_v14 = vld [vmem:[#allocation29_spill] sm:$0xff]  ;;  %s393_s5 = scalar_lea.vmem %s3117_s4, %s1483_s29 }
 0x1c9   : > { %v764_v55 = vpop.f32.mrf.mxu0  ;;  %v3210_v34 = vunpack.c.l.bf16 %v3209_v14  ;;  %v840_v57 = vmax.f32 %v838_v40, %v2313_v17  ;;  %v3212_v11 = vunpack.c.h.bf16 %v2173_v45  ;;  %v3215_v6 = vunpack.c.h.bf16 %v3209_v14  ;;  %v3219_v40 = vld [vmem:[#allocation28_spill] sm:$0xff] }
 0x1ca   : > { %3207 = vst [vmem:[#allocation33_spill] sm:$0xff] %v2342_v13  ;;  %v2349_v48 = vadd.f32 %v2120_v28, %v3208_v35  ;;  %v841_v27 = vmax.f32 %v839_v22, %v2318_v2  ;;  %v805_v31 = vmax.f32 %v803_v16, %v2325_v46  ;;  %v806_v35 = vmax.f32 %v804_v26, %v2330_v19  ;;  %v3221_v22 = vld [vmem:[#allocation31_spill] sm:$0xff]  ;;  %v3226_v50 = vld [vmem:[#allocation32_spill] sm:$0xff] }
 0x1cb   : > { %v768_v8 = vpop.f32.mrf.mxu0  ;;  %v2354_v25 = vadd.f32 %v3211_v24, %v3210_v34  ;;  %v2361_v18 = vadd.f32 %v3213_v21, %v3212_v11  ;;  %v2366_v9 = vadd.f32 %v3216_v52, %v3215_v6  ;;  %v3218_v34 = vunpack.c.l.bf16 %v2185_v44  ;;  %v3223_v52 = vld [vmem:[#allocation30_spill] sm:$0xff] }
 0x1cc   : > { %v3220_v45 = vunpack.c.l.bf16 %v2188_v61  ;;  %v842_v14 = vmax.f32 %v840_v57, %v2337_v12  ;;  %v843_v21 = vmax.f32 %v841_v27, %v2342_v13  ;;  %v3222_v6 = vunpack.c.h.bf16 %v2185_v44 }
 0x1cd   : > { %v770_v23 = vpop.f32.mrf.mxu0  ;;  %3214 = vst [vmem:[#allocation29_spill] sm:$0xff] %v2361_v18  ;;  %3217 = vst [vmem:[#allocation26_spill] sm:$0xff] %v2366_v9  ;;  %v2373_v24 = vadd.f32 %v3219_v40, %v3218_v34  ;;  %v3225_v26 = vunpack.c.h.bf16 %v2188_v61  ;;  %v807_v40 = vmax.f32 %v805_v31, %v2349_v48  ;;  %v3229_v44 = vunpack.c.l.bf16 %v2204_v42 }
 0x1ce   : > { %v2378_v11 = vadd.f32 %v3221_v22, %v3220_v45  ;;  %v2385_v16 = vadd.f32 %v3223_v52, %v3222_v6  ;;  %v808_v45 = vmax.f32 %v806_v35, %v2354_v25  ;;  %v3228_v22 = vunpack.c.l.bf16 %v2197_v15 }
 0x1cf   : > { %v772_v28 = vpop.f32.mrf.mxu0  ;;  %v2390_v0 = vadd.f32 %v3226_v50, %v3225_v26  ;;  %v2401_v27 = vadd.f32 %v762_v59, %v3229_v44  ;;  %v844_v6 = vmax.f32 %v842_v14, %v2361_v18  ;;  %v845_v61 = vmax.f32 %v843_v21, %v2366_v9 }
 0x1d0   : > { %3224 = vst [vmem:[#allocation25_spill] sm:$0xff] %v2385_v16  ;;  %v2397_v57 = vadd.f32 %v2230_v30, %v3228_v22  ;;  %v3230_v50 = vunpack.c.h.bf16 %v2197_v15  ;;  %v3231_v31 = vunpack.c.h.bf16 %v2204_v42  ;;  %v809_v30 = vmax.f32 %v807_v40, %v2373_v24 }
 0x1d1   : > { %3227 = vst [vmem:[#allocation27_spill] sm:$0xff] %v2390_v0  ;;  %v774_v34 = vpop.f32.mrf.mxu0  ;;  %v810_v22 = vmax.f32 %v808_v45, %v2378_v11  ;;  %v2418_v59 = vadd.f32 %v768_v8, %v486_v63  ;;  %v2422_v14 = vadd.f32 %v772_v28, %v488_v51  ;;  %v846_v15 = vmax.f32 %v844_v6, %v2385_v16 }
 0x1d2   : > { %v2408_v52 = vadd.f32 %v2252_v41, %v3230_v50  ;;  %v2412_v35 = vadd.f32 %v764_v55, %v3231_v31  ;;  %v847_v41 = vmax.f32 %v845_v61, %v2390_v0  ;;  %v3232_v42 = vunpack.c.h.bf16 %v2207_v39 }
 0x1d3   : > { %v778_v26 = vpop.f32.mrf.mxu0  ;;  %v493_v40 = vunpack.c.h.bf16 %v2244_v1  ;;  %v811_v45 = vmax.f32 %v809_v30, %v2397_v57  ;;  %v812_v63 = vmax.f32 %v810_v22, %v2401_v27  ;;  %v2435_v8 = vadd.f32 %v774_v34, %v489_v3 }
 0x1d4   : > { %v2428_v55 = vadd.f32 %v770_v23, %v3232_v42  ;;  %v3233_v51 = vunpack.c.l.bf16 %v2225_v33  ;;  %v848_v44 = vmax.f32 %v846_v15, %v2408_v52  ;;  %v849_v39 = vmax.f32 %v847_v41, %v2412_v35 }
 0x1d5   : > { %v780_v21 = vpop.f32.mrf.mxu0  ;;  %v813_v6 = vmax.f32 %v811_v45, %v2418_v59  ;;  %v814_v61 = vmax.f32 %v812_v63, %v2422_v14  ;;  %v3234_v50 = vunpack.c.h.bf16 %v2225_v33  ;;  %v3235_v36 = vunpack.c.l.bf16 %v2244_v1 }
 0x1d6   : > { %v2439_v28 = vadd.f32 %v778_v26, %v3233_v51  ;;  %v850_v34 = vmax.f32 %v848_v44, %v2428_v55  ;;  %v851_v30 = vmax.f32 %v849_v39, %v2435_v8 }
 0x1d7   : > { %v782_v23 = vpop.f32.mrf.mxu0  ;;  %v2447_v31 = vadd.f32 %v780_v21, %v3234_v50 }
 0x1d8   : > { %v2451_v3 = vadd.f32 %v782_v23, %v3235_v36  ;;  %v815_v22 = vmax.f32 %v813_v6, %v2439_v28 }
 0x1d9   : > { %v784_v26 = vpop.f32.mrf.mxu0  ;;  %v852_v42 = vmax.f32 %v850_v34, %v2447_v31 }
 0x1da   : > { %v816_v15 = vmax.f32 %v814_v61, %v2451_v3  ;;  %v2457_v41 = vadd.f32 %v784_v26, %v493_v40  ;;  %v3236_v61 = vld [vmem:[#allocation5_spill] sm:$0xff] }
 0x1db   : > { %v3237_v26 = vld [vmem:[#allocation9_spill] sm:$0xff] }
 0x1dc   : > { %v817_v33 = vmax.f32 %v815_v22, %v816_v15  ;;  %v853_v21 = vmax.f32 %v851_v30, %v2457_v41  ;;  %v3238_v22 = vld [vmem:[#allocation6_spill] sm:$0xff] }
 0x1dd   : > { %v3239_v15 = vld [vmem:[#allocation10_spill] sm:$0xff] }
 0x1de   : > { %v818_v45 = vrot.slane %v817_v33, 4  ;;  %v854_v1 = vmax.f32 %v852_v42, %v853_v21 }
 0x1e0   : > { %v819_v63 = vmax.f32 %v817_v33, %v818_v45  ;;  %v855_v51 = vrot.slane %v854_v1, 4  ;;  %v3240_v33 = vld [vmem:[#allocation13_spill] sm:$0xff]  ;;  %v3241_v45 = vld [vmem:[#allocation15_spill] sm:$0xff] }
 0x1e2   : > { %v820_v23 = vrot.slane %v819_v63, 2  ;;  %v856_v50 = vmax.f32 %v854_v1, %v855_v51 }
 0x1e4   : > { %v821_v44 = vmax.f32 %v819_v63, %v820_v23  ;;  %v857_v6 = vrot.slane %v856_v50, 2  ;;  %v3242_v63 = vld [vmem:[#allocation17_spill] sm:$0xff]  ;;  %v3243_v23 = vld [vmem:[#allocation19_spill] sm:$0xff] }
 0x1e6   : > { %v822_v36 = vrot.slane %v821_v44, 1  ;;  %v858_v0 = vmax.f32 %v856_v50, %v857_v6 }
 0x1e8   : > { %v2461_v39 = vmax.f32 %v821_v44, %v822_v36  ;;  %v3244_v36 = vld [vmem:[#allocation21_spill] sm:$0xff]  ;;  %v859_v50 = vrot.slane %v858_v0, 1 }
 0x1ea   : > { %v861_v40 = vsub.f32 %v3236_v61, %v2461_v39  ;;  %v863_v34 = vsub.f32 %v3237_v26, %v2461_v39  ;;  %v865_v30 = vsub.f32 %v3238_v22, %v2461_v39  ;;  %v867_v42 = vsub.f32 %v3239_v15, %v2461_v39  ;;  %v3245_v26 = vld [vmem:[#allocation23_spill] sm:$0xff] }
 0x1eb   : > { %v869_v21 = vsub.f32 %v3240_v33, %v2461_v39  ;;  %v871_v1 = vsub.f32 %v3241_v45, %v2461_v39  ;;  %v873_v51 = vsub.f32 %v3242_v63, %v2461_v39  ;;  %v875_v44 = vsub.f32 %v3243_v23, %v2461_v39 }
 0x1ec   : > { %v877_v61 = vsub.f32 %v3244_v36, %v2461_v39  ;;  %v879_v22 = vsub.f32 %v3245_v26, %v2461_v39  ;;  %v881_v15 = vsub.f32 %v2068_v58, %v2461_v39  ;;  %v925_v45 = vmul.f32 1.442695, %v861_v40  ;;  %v3246_v36 = vld [vmem:[#allocation7_spill] sm:$0xff]  ;;  %v3255_v26 = vld [vmem:[#allocation24_spill] sm:$0xff] }
 0x1ed   : > { %v929_v58 = vmul.f32 1.442695, %v863_v34  ;;  %v933_v33 = vmul.f32 1.442695, %v865_v30  ;;  %v937_v16 = vmul.f32 1.442695, %v867_v42  ;;  %v2511_v9 = vmax.f32 %v858_v0, %v859_v50 }
 0x1ee   : > { %1593 = vpow2.f32 %v925_v45  ;;  %v941_v6 = vmul.f32 1.442695, %v869_v21  ;;  %v945_v63 = vmul.f32 1.442695, %v871_v1  ;;  %v949_v23 = vmul.f32 1.442695, %v873_v51 }
 0x1ef   : > { %1595 = vpow2.f32 %v929_v58  ;;  %v953_v18 = vmul.f32 1.442695, %v875_v44  ;;  %v862_v13 = vsub.f32 %v3246_v36, %v2511_v9  ;;  %v3247_v40 = vld [vmem:[#allocation11_spill] sm:$0xff]  ;;  %v3248_v30 = vld [vmem:[#allocation8_spill] sm:$0xff]  ;;  %v957_v0 = vmul.f32 1.442695, %v877_v61 }
 0x1f0   : > { %1597 = vpow2.f32 %v933_v33  ;;  %v3249_v42 = vld [vmem:[#allocation12_spill] sm:$0xff]  ;;  %v3252_v33 = vld [vmem:[#allocation18_spill] sm:$0xff]  ;;  %v883_v44 = vsub.f32 %v2219_v29, %v2461_v39  ;;  %v961_v36 = vmul.f32 1.442695, %v879_v22  ;;  %v885_v58 = vsub.f32 %v2236_v47, %v2461_v39 }
 0x1f1   : > { %1599 = vpow2.f32 %v937_v16  ;;  %v3250_v16 = vld [vmem:[#allocation14_spill] sm:$0xff]  ;;  %v3251_v51 = vld [vmem:[#allocation16_spill] sm:$0xff]  ;;  %v965_v45 = vmul.f32 1.442695, %v881_v15  ;;  %v887_v29 = vsub.f32 %v2239_v32, %v2461_v39 }
 0x1f2   : > { %1601 = vpow2.f32 %v941_v6  ;;  %v3254_v50 = vld [vmem:[#allocation22_spill] sm:$0xff]  ;;  %v969_v47 = vmul.f32 1.442695, %v883_v44 }
 0x1f3   : > { %1603 = vpow2.f32 %v945_v63  ;;  %v3253_v63 = vld [vmem:[#allocation20_spill] sm:$0xff]  ;;  %v977_v6 = vmul.f32 1.442695, %v887_v29 }
 0x1f4   : > { %1605 = vpow2.f32 %v949_v23 }
 0x1f5   : > { %1607 = vpow2.f32 %v953_v18  ;;  %v889_v18 = vsub.f32 %v2259_v5, %v2461_v39 }
 0x1f6   : > { %1609 = vpow2.f32 %v957_v0  ;;  %v973_v0 = vmul.f32 1.442695, %v885_v58  ;;  %v891_v58 = vsub.f32 %v2262_v49, %v2461_v39 }
 0x1f7   : > { %1611 = vpow2.f32 %v961_v36  ;;  %v981_v5 = vmul.f32 1.442695, %v889_v18  ;;  %v927_v18 = vmul.f32 1.442695, %v862_v13  ;;  %v3262_v13 = vsub.f32 %v2306_v20, %v2461_v39 }
 0x1f8   : > { %1613 = vpow2.f32 %v965_v45  ;;  %v985_v49 = vmul.f32 1.442695, %v891_v58  ;;  %v3265_v20 = vsub.f32 %v3250_v16, %v2511_v9  ;;  %v3268_v16 = vsub.f32 %v2349_v48, %v2461_v39 }
 0x1f9   : > { %1615 = vpow2.f32 %v969_v47  ;;  %v3271_v48 = vsub.f32 %v3253_v63, %v2511_v9  ;;  %v3276_v63 = vsub.f32 %v2378_v11, %v2461_v39 }
 0x1fa   : > { %1617 = vpow2.f32 %v973_v0 }
 0x1fb   : > { %v2535_v1 = vpop.eup %1593  ;;  %1619 = vpow2.f32 %v977_v6  ;;  %v3260_v6 = vsub.f32 %v3247_v40, %v2511_v9 }
 0x1fc   : > { %3256 = vst [vmem:[#allocation28_spill] sm:$0xff] %v2535_v1  ;;  %v2539_v23 = vpop.eup %1595  ;;  %1621 = vpow2.f32 %v981_v5  ;;  %v3261_v5 = vsub.f32 %v3248_v30, %v2511_v9  ;;  %v3264_v30 = vsub.f32 %v2325_v46, %v2461_v39  ;;  %v3267_v46 = vsub.f32 %v3251_v51, %v2511_v9 }
 0x1fd   : > { %3257 = vst [vmem:[#allocation31_spill] sm:$0xff] %v2539_v23  ;;  %v1053_v21 = vadd.f32 %v2539_v23, %v2535_v1  ;;  %v2549_v34 = vpop.eup %1597  ;;  %1623 = vpow2.f32 %v985_v49  ;;  %v1001_v49 = vmul.f32 1.442695, %v3262_v13  ;;  %v3270_v51 = vsub.f32 %v2354_v25, %v2461_v39 }
 0x1fe   : > { %3258 = vst [vmem:[#allocation30_spill] sm:$0xff] %v2549_v34  ;;  %v2556_v15 = vpop.eup %1599  ;;  %v3274_v25 = vsub.f32 %v3254_v50, %v2511_v9 }
 0x1ff   : > { %v1054_v22 = vadd.f32 %v2549_v34, %v1053_v21  ;;  %3259 = vst [vmem:[#allocation32_spill] sm:$0xff] %v2556_v15  ;;  %v2569_v44 = vpop.eup %1601  ;;  %v895_v21 = vsub.f32 %v2283_v56, %v2461_v39 }
 0x200   : > { %v2576_v23 = vpop.eup %1603 }
 0x201   : > { %v1055_v32 = vadd.f32 %v2556_v15, %v1054_v22  ;;  %v893_v22 = vsub.f32 %v2280_v10, %v2461_v39  ;;  %v2583_v36 = vpop.eup %1605  ;;  %v993_v10 = vmul.f32 1.442695, %v895_v21  ;;  %v935_v21 = vmul.f32 1.442695, %v3261_v5 }
 0x202   : > { %v2586_v47 = vpop.eup %1607  ;;  %v1013_v5 = vmul.f32 1.442695, %v3268_v16 }
 0x203   : > { %v1056_v45 = vadd.f32 %v2569_v44, %v1055_v32  ;;  %v897_v32 = vsub.f32 %v2303_v43, %v2461_v39  ;;  %v989_v1 = vmul.f32 1.442695, %v893_v22  ;;  %v2591_v0 = vpop.eup %1609 }
 0x204   : > { %v2597_v58 = vpop.eup %1611 }
 0x205   : > { %v1057_v61 = vadd.f32 %v2576_v23, %v1056_v45  ;;  %1625 = vpow2.f32 %v989_v1  ;;  %v997_v15 = vmul.f32 1.442695, %v897_v32  ;;  %v2603_v22 = vpop.eup %1613  ;;  %v3263_v1 = vsub.f32 %v3249_v42, %v2511_v9 }
 0x206   : > { %1627 = vpow2.f32 %v993_v10  ;;  %v2612_v32 = vpop.eup %1615  ;;  %v1005_v10 = vmul.f32 1.442695, %v3264_v30  ;;  %v3266_v42 = vsub.f32 %v2330_v19, %v2461_v39  ;;  %v3269_v19 = vsub.f32 %v3252_v33, %v2511_v9 }
 0x207   : > { %v1058_v29 = vadd.f32 %v2583_v36, %v1057_v61  ;;  %v931_v61 = vmul.f32 1.442695, %v3260_v6  ;;  %1629 = vpow2.f32 %v927_v18  ;;  %v943_v18 = vmul.f32 1.442695, %v3265_v20 }
 0x208   : > { %v1009_v6 = vmul.f32 1.442695, %v3266_v42  ;;  %v951_v13 = vmul.f32 1.442695, %v3269_v19  ;;  %v3272_v33 = vsub.f32 %v2373_v24, %v2461_v39 }
 0x209   : > { %v1059_v56 = vadd.f32 %v2586_v47, %v1058_v29  ;;  %1631 = vpow2.f32 %v931_v61  ;;  %v939_v29 = vmul.f32 1.442695, %v3263_v1  ;;  %v947_v61 = vmul.f32 1.442695, %v3267_v46 }
 0x20a   : > { %1633 = vpow2.f32 %v997_v15  ;;  %v884_v46 = vsub.f32 %v2228_v37, %v2511_v9  ;;  %v3281_v37 = vsub.f32 %v2072_v62, %v2511_v9 }
 0x20b   : > { %v1060_v45 = vadd.f32 %v2591_v0, %v1059_v56  ;;  %1635 = vpow2.f32 %v935_v21 }
 0x20c   : > { %1637 = vpow2.f32 %v1001_v49  ;;  %v971_v62 = vmul.f32 1.442695, %v884_v46  ;;  %v3285_v46 = vsub.f32 %v2422_v14, %v2461_v39  ;;  %v894_v14 = vsub.f32 %v2293_v38, %v2511_v9 }
 0x20d   : > { %v1061_v43 = vadd.f32 %v2597_v58, %v1060_v45  ;;  %v2621_v45 = vpop.eup %1617  ;;  %1639 = vpow2.f32 %v939_v29  ;;  %v955_v29 = vmul.f32 1.442695, %v3271_v48 }
 0x20e   : > { %1641 = vpow2.f32 %v1005_v10  ;;  %v1021_v10 = vmul.f32 1.442695, %v3272_v33 }
 0x20f   : > { %v1062_v40 = vadd.f32 %v2603_v22, %v1061_v43  ;;  %v2630_v43 = vpop.eup %1619  ;;  %1643 = vpow2.f32 %v943_v18  ;;  %v959_v18 = vmul.f32 1.442695, %v3274_v25 }
 0x210   : > { %v2639_v49 = vpop.eup %1621  ;;  %1645 = vpow2.f32 %v1009_v6  ;;  %v1025_v6 = vmul.f32 1.442695, %v3276_v63 }
 0x211   : > { %v1063_v56 = vadd.f32 %v2612_v32, %v1062_v40  ;;  %v1017_v40 = vmul.f32 1.442695, %v3270_v51  ;;  %1647 = vpow2.f32 %v947_v61  ;;  %v2648_v30 = vpop.eup %1623  ;;  %v3278_v61 = vsub.f32 %v3255_v26, %v2511_v9 }
 0x212   : > { %1649 = vpow2.f32 %v1013_v5  ;;  %v3280_v5 = vsub.f32 %v2397_v57, %v2461_v39  ;;  %v967_v26 = vmul.f32 1.442695, %v3281_v37  ;;  %v3282_v57 = vsub.f32 %v2401_v27, %v2461_v39 }
 0x213   : > { %v1064_v15 = vadd.f32 %v2621_v45, %v1063_v56  ;;  %v2653_v56 = vpop.eup %1625  ;;  %1651 = vpow2.f32 %v951_v13  ;;  %v963_v50 = vmul.f32 1.442695, %v3278_v61  ;;  %v890_v27 = vsub.f32 %v2268_v4, %v2511_v9 }
 0x214   : > { %3273 = vst [vmem:[#allocation5_spill] sm:$0xff] %v2653_v56  ;;  %v2659_v42 = vpop.eup %1627  ;;  %1653 = vpow2.f32 %v1017_v40  ;;  %v1029_v11 = vmul.f32 1.442695, %v3280_v5  ;;  %v1041_v61 = vmul.f32 1.442695, %v3285_v46 }
 0x215   : > { %v1065_v21 = vadd.f32 %v2630_v43, %v1064_v15  ;;  %3275 = vst [vmem:[#allocation9_spill] sm:$0xff] %v2659_v42  ;;  %v2664_v15 = vpop.eup %1629  ;;  %1655 = vpow2.f32 %v955_v29 }
 0x216   : > { %3277 = vst [vmem:[#allocation6_spill] sm:$0xff] %v2664_v15  ;;  %v2672_v16 = vpop.eup %1631  ;;  %1657 = vpow2.f32 %v1021_v10 }
 0x217   : > { %v1066_v1 = vadd.f32 %v2639_v49, %v1065_v21  ;;  %3279 = vst [vmem:[#allocation10_spill] sm:$0xff] %v2672_v16  ;;  %v886_v21 = vsub.f32 %v2247_v54, %v2511_v9  ;;  %v2679_v19 = vpop.eup %1633  ;;  %1659 = vpow2.f32 %v959_v18  ;;  %v1090_v51 = vadd.f32 %v2672_v16, %v2664_v15 }
 0x218   : > { %v2687_v40 = vpop.eup %1635  ;;  %1661 = vpow2.f32 %v1025_v6  ;;  %v888_v54 = vsub.f32 %v2250_v53, %v2511_v9 }
 0x219   : > { %v1067_v20 = vadd.f32 %v2648_v30, %v1066_v1  ;;  %v1033_v1 = vmul.f32 1.442695, %v3282_v57  ;;  %v2694_v48 = vpop.eup %1637  ;;  %1663 = vpow2.f32 %v963_v50  ;;  %v1091_v33 = vadd.f32 %v2687_v40, %v1090_v51 }
 0x21a   : > { %v2698_v10 = vpop.eup %1639  ;;  %1665 = vpow2.f32 %v1029_v11  ;;  %v975_v63 = vmul.f32 1.442695, %v886_v21  ;;  %v979_v5 = vmul.f32 1.442695, %v888_v54  ;;  %v983_v51 = vmul.f32 1.442695, %v890_v27 }
 0x21b   : > { %v1068_v24 = vadd.f32 %v2653_v56, %v1067_v20  ;;  %3283 = vst [vmem:[#allocation13_spill] sm:$0xff] %v2698_v10  ;;  %v3284_v20 = vsub.f32 %v2418_v59, %v2461_v39  ;;  %v2705_v18 = vpop.eup %1641  ;;  %1667 = vpow2.f32 %v967_v26  ;;  %v1092_v6 = vadd.f32 %v2698_v10, %v1091_v33 }
 0x21c   : > { %1669 = vpow2.f32 %v1033_v1  ;;  %v892_v59 = vsub.f32 %v2271_v7, %v2511_v9  ;;  %v3287_v54 = vsub.f32 %v2451_v3, %v2461_v39  ;;  %v898_v27 = vsub.f32 %v2313_v17, %v2511_v9 }
 0x21d   : > { %v1069_v13 = vadd.f32 %v2659_v42, %v1068_v24  ;;  %v1037_v25 = vmul.f32 1.442695, %v3284_v20  ;;  %v2709_v24 = vpop.eup %1643  ;;  %1671 = vpow2.f32 %v971_v62 }
 0x21e   : > { %v2716_v50 = vpop.eup %1645  ;;  %v1093_v11 = vadd.f32 %v2709_v24, %v1092_v6  ;;  %v987_v33 = vmul.f32 1.442695, %v892_v59 }
 0x21f   : > { %v1070_v29 = vadd.f32 %v2679_v19, %v1069_v13  ;;  %v2720_v21 = vpop.eup %1647  ;;  %1673 = vpow2.f32 %v1037_v25  ;;  %v3286_v13 = vsub.f32 %v2439_v28, %v2461_v39  ;;  %v896_v28 = vsub.f32 %v2296_v60, %v2511_v9 }
 0x220   : > { %v2727_v26 = vpop.eup %1649  ;;  %1675 = vpow2.f32 %v975_v63  ;;  %v1094_v57 = vadd.f32 %v2720_v21, %v1093_v11  ;;  %v991_v60 = vmul.f32 1.442695, %v894_v14  ;;  %v999_v11 = vmul.f32 1.442695, %v898_v27  ;;  %v3288_v14 = vld [vmem:[#allocation33_spill] sm:$0xff] }
 0x221   : > { %v1071_v53 = vadd.f32 %v2694_v48, %v1070_v29  ;;  %v1045_v37 = vmul.f32 1.442695, %v3286_v13  ;;  %v2731_v1 = vpop.eup %1651  ;;  %1677 = vpow2.f32 %v1041_v61  ;;  %v1049_v29 = vmul.f32 1.442695, %v3287_v54 }
 0x222   : > { %v2738_v62 = vpop.eup %1653  ;;  %1679 = vpow2.f32 %v979_v5  ;;  %v1095_v20 = vadd.f32 %v2731_v1, %v1094_v57  ;;  %v995_v61 = vmul.f32 1.442695, %v896_v28  ;;  %v3289_v54 = vsub.f32 %v2318_v2, %v2511_v9 }
 0x223   : > { %v1072_v4 = vadd.f32 %v2705_v18, %v1071_v53  ;;  %v2742_v25 = vpop.eup %1655  ;;  %1681 = vpow2.f32 %v1045_v37 }
 0x224   : > { %v2746_v53 = vpop.eup %1657  ;;  %1683 = vpow2.f32 %v983_v51  ;;  %v1096_v39 = vadd.f32 %v2742_v25, %v1095_v20 }
 0x225   : > { %v1073_v7 = vadd.f32 %v2716_v50, %v1072_v4  ;;  %v2750_v63 = vpop.eup %1659  ;;  %1685 = vpow2.f32 %v1049_v29  ;;  %v1003_v29 = vmul.f32 1.442695, %v3289_v54 }
 0x226   : > { %v2752_v6 = vpop.eup %1661  ;;  %1687 = vpow2.f32 %v987_v33  ;;  %v1097_v59 = vadd.f32 %v2750_v63, %v1096_v39  ;;  %v3290_v33 = vld [vmem:[#allocation29_spill] sm:$0xff] }
 0x227   : > { %v1074_v38 = vadd.f32 %v2727_v26, %v1073_v7  ;;  %v2756_v17 = vpop.eup %1663  ;;  %1689 = vpow2.f32 %v991_v60  ;;  %v904_v7 = vsub.f32 %v3288_v14, %v2511_v9  ;;  %v906_v20 = vsub.f32 %v3290_v33, %v2511_v9 }
 0x228   : > { %v2758_v4 = vpop.eup %1665  ;;  %v1098_v13 = vadd.f32 %v2756_v17, %v1097_v59  ;;  %1691 = vpow2.f32 %v995_v61  ;;  %v3291_v60 = vsub.f32 %v2337_v12, %v2511_v9  ;;  %v3292_v61 = vld [vmem:[#allocation26_spill] sm:$0xff]  ;;  %v3293_v12 = vld [vmem:[#allocation25_spill] sm:$0xff] }
 0x229   : > { %v1075_v3 = vadd.f32 %v2738_v62, %v1074_v38  ;;  %v2762_v37 = vpop.eup %1667  ;;  %1693 = vpow2.f32 %v999_v11  ;;  %v908_v59 = vsub.f32 %v3292_v61, %v2511_v9  ;;  %v1011_v14 = vmul.f32 1.442695, %v904_v7 }
 0x22a   : > { %v2766_v51 = vpop.eup %1669  ;;  %v1099_v28 = vadd.f32 %v2762_v37, %v1098_v13  ;;  %v1007_v39 = vmul.f32 1.442695, %v3291_v60  ;;  %1695 = vpow2.f32 %v1003_v29  ;;  %v910_v54 = vsub.f32 %v3293_v12, %v2511_v9  ;;  %v3294_v29 = vld [vmem:[#allocation27_spill] sm:$0xff] }
 0x22b   : > { %v1076_v46 = vadd.f32 %v2746_v53, %v1075_v3  ;;  %v2773_v38 = vpop.eup %1671  ;;  %v1015_v60 = vmul.f32 1.442695, %v906_v20  ;;  %v912_v7 = vsub.f32 %v3294_v29, %v2511_v9  ;;  %v1019_v12 = vmul.f32 1.442695, %v908_v59 }
 0x22c   : > { %v2777_v27 = vpop.eup %1673  ;;  %1697 = vpow2.f32 %v1007_v39 }
 0x22d   : > { %v1077_v5 = vadd.f32 %v2752_v6, %v1076_v46  ;;  %v1100_v46 = vadd.f32 %v2773_v38, %v1099_v28  ;;  %v2784_v2 = vpop.eup %1675  ;;  %1699 = vpow2.f32 %v1011_v14 }
 0x22e   : > { %1701 = vpow2.f32 %v1015_v60  ;;  %v3297_v60 = vsub.f32 %v2408_v52, %v2511_v9 }
 0x22f   : > { %v1078_v57 = vadd.f32 %v2758_v4, %v1077_v5  ;;  %v2788_v5 = vpop.eup %1677  ;;  %v1101_v11 = vadd.f32 %v2784_v2, %v1100_v46  ;;  %1703 = vpow2.f32 %v1019_v12  ;;  %v3298_v12 = vsub.f32 %v2412_v35, %v2511_v9 }
 0x230   : > { %v3301_v35 = vsub.f32 %v2435_v8, %v2511_v9  ;;  %v3303_v8 = vsub.f32 %v2457_v41, %v2511_v9 }
 0x231   : > { %v1079_v3 = vadd.f32 %v2766_v51, %v1078_v57  ;;  %v2792_v57 = vpop.eup %1679 }
 0x232   : > { %v2796_v28 = vpop.eup %1681  ;;  %v1102_v61 = vadd.f32 %v2792_v57, %v1101_v11 }
 0x233   : > { %v1080_v13 = vadd.f32 %v2777_v27, %v1079_v3  ;;  %v2800_v42 = vpop.eup %1683 }
 0x234   : > { %v2805_v3 = vpop.eup %1685  ;;  %v1103_v56 = vadd.f32 %v2800_v42, %v1102_v61 }
 0x235   : > { %v1081_v33 = vadd.f32 %v2788_v5, %v1080_v13  ;;  %v2809_v39 = vpop.eup %1687  ;;  %v1023_v13 = vmul.f32 1.442695, %v910_v54  ;;  %v1031_v54 = vmul.f32 1.442695, %v3297_v60  ;;  %v3300_v60 = vsub.f32 %v2428_v55, %v2511_v9 }
 0x236   : > { %v1104_v11 = vadd.f32 %v2809_v39, %v1103_v56  ;;  %v2813_v29 = vpop.eup %1689  ;;  %v3302_v55 = vsub.f32 %v2447_v31, %v2511_v9 }
 0x237   : > { %v1082_v46 = vadd.f32 %v2796_v28, %v1081_v33  ;;  %3295 = vst [vmem:[#allocation15_spill] sm:$0xff] %v2813_v29  ;;  %v1027_v33 = vmul.f32 1.442695, %v912_v7  ;;  %v2816_v14 = vpop.eup %1691  ;;  %1705 = vpow2.f32 %v1023_v13  ;;  %v2832_v13 = vld [vmem:[%s378_s15] sm:$0xff] }
 0x238   : > { %v1105_v59 = vadd.f32 %v2813_v29, %v1104_v11  ;;  %3296 = vst [vmem:[#allocation17_spill] sm:$0xff] %v2816_v14  ;;  %3299 = vst [vmem:[#allocation19_spill] sm:$0xff] %v2832_v13  ;;  %v1506_v11 = vcombine.high %v2832_v13, %v2832_v13 }
 0x239   : > { %v1083_v20 = vadd.f32 %v2805_v3, %v1082_v46  ;;  %v2823_v46 = vpop.eup %1693  ;;  %1707 = vpow2.f32 %v1027_v33 }
 0x23a   : > { %v1106_v56 = vadd.f32 %v2816_v14, %v1105_v59  ;;  %v2834_v52 = vpop.eup %1695  ;;  %1709 = vpow2.f32 %v1031_v54  ;;  %v1039_v14 = vmul.f32 1.442695, %v3300_v60  ;;  %1265 = vmatprep.mubr.bf16.mxu1 %v1506_v11  ;;  %v1047_v54 = vmul.f32 1.442695, %v3302_v55 }
 0x23b   : > { %v1084_v16 = vrot.slane %v1083_v20, 4  ;;  %v2842_v29 = vpop.eup %1697 }
 0x23c   : > { %v2848_v13 = vpop.eup %1699 }
 0x23d   : > { %v1085_v61 = vadd.f32 %v1084_v16, %v1083_v20  ;;  %v1035_v16 = vmul.f32 1.442695, %v3298_v12  ;;  %v1107_v20 = vadd.f32 %v2823_v46, %v1106_v56  ;;  %v1043_v56 = vmul.f32 1.442695, %v3301_v35 }
 0x23f   : > { %v1086_v7 = vrot.slane %v1085_v61, 2  ;;  %v1108_v33 = vadd.f32 %v2834_v52, %v1107_v20  ;;  %1711 = vpow2.f32 %v1035_v16  ;;  %v2854_v20 = vpop.eup %1701  ;;  %v1051_v16 = vmul.f32 1.442695, %v3303_v8 }
 0x240   : > { %1713 = vpow2.f32 %v1039_v14  ;;  %v2860_v60 = vpop.eup %1703 }
 0x241   : > { %v1087_v59 = vadd.f32 %v1086_v7, %v1085_v61  ;;  %v1109_v15 = vadd.f32 %v2842_v29, %v1108_v33  ;;  %1715 = vpow2.f32 %v1043_v56 }
 0x243   : > { %v1088_v12 = vrot.slane %v1087_v59, 1  ;;  %v1110_v7 = vadd.f32 %v2848_v13, %v1109_v15 }
 0x245   : > { %v1089_v61 = vadd.f32 %v1088_v12, %v1087_v59  ;;  %v1111_v11 = vadd.f32 %v2854_v20, %v1110_v7  ;;  %v2863_v59 = vpop.eup %1705 }
 0x246   : > { %v2866_v15 = vpop.eup %1707 }
 0x247   : > { %1717 = vrcp.f32 %v1089_v61  ;;  %v1112_v14 = vadd.f32 %v2860_v60, %v1111_v11  ;;  %v2869_v35 = vpop.eup %1709 }
 0x248   : > { %1719 = vpow2.f32 %v1047_v54 }
 0x249   : > { %1721 = vpow2.f32 %v1051_v16  ;;  %v1113_v31 = vadd.f32 %v2863_v59, %v1112_v14 }
 0x24b   : > { %v1114_v33 = vadd.f32 %v2866_v15, %v1113_v31 }
 0x24c   : > { %v2872_v41 = vpop.eup %1711 }
 0x24d   : > { %v1115_v9 = vadd.f32 %v2869_v35, %v1114_v33  ;;  %v1714_v12 = vpop.eup %1713 }
 0x24e   : > { %v1716_v61 = vpop.eup %1715 }
 0x24f   : > { %v1116_v56 = vadd.f32 %v2872_v41, %v1115_v9 }
 0x251   : > { %v1117_v55 = vadd.f32 %v1714_v12, %v1116_v56 }
 0x253   : > { %v1118_v7 = vadd.f32 %v1716_v61, %v1117_v55 }
 0x254   : > { %v2875_v54 = vpop.eup %1717 }
 0x255   : > { %v1157_v8 = vmul.f32 %v2875_v54, %v2639_v49  ;;  %v1159_v16 = vmul.f32 %v2875_v54, %v2648_v30  ;;  %v1720_v11 = vpop.eup %1719  ;;  %v2883_v9 = vmul.f32 %v2875_v54, %v2796_v28  ;;  %v2887_v56 = vmul.f32 %v2875_v54, %v2805_v3 }
 0x256   : > { %v1119_v14 = vadd.f32 %v1720_v11, %v1118_v7  ;;  %v1722_v33 = vpop.eup %1721  ;;  %v2891_v49 = vmul.f32 %v2875_v54, %v2777_v27  ;;  %v2895_v30 = vmul.f32 %v2875_v54, %v2788_v5  ;;  %v2901_v28 = vmul.f32 %v2875_v54, %v2758_v4 }
 0x257   : > { %v1207_v31 = vpack.c.bf16 %v1159_v16, %v1157_v8  ;;  %v2905_v3 = vmul.f32 %v2875_v54, %v2766_v51  ;;  %v2911_v8 = vmul.f32 %v2875_v54, %v2746_v53  ;;  %v2925_v5 = vmul.f32 %v2875_v54, %v2738_v62 }
 0x258   : > { %v1120_v34 = vadd.f32 %v1722_v33, %v1119_v14  ;;  %v2929_v53 = vmul.f32 %v2875_v54, %v2705_v18  ;;  %v2935_v16 = vmul.f32 %v2875_v54, %v2716_v50  ;;  %v2943_v14 = vmul.f32 %v2875_v54, %v2694_v48 }
 0x25a   : > { %v1121_v10 = vrot.slane %v1120_v34, 4  ;;  %v1213_v51 = vpack.c.bf16 %v2935_v16, %v2929_v53 }
 0x25c   : > { %v1122_v55 = vadd.f32 %v1121_v10, %v1120_v34  ;;  %v2915_v34 = vmul.f32 %v2875_v54, %v2752_v6  ;;  %v2919_v10 = vmul.f32 %v2875_v54, %v2727_v26  ;;  %v2939_v26 = vmul.f32 %v2875_v54, %v2679_v19 }
 0x25d   : > { %v1153_v6 = vmul.f32 %v2875_v54, %v2621_v45 }
 0x25e   : > { %v1123_v4 = vrot.slane %v1122_v55, 2  ;;  %v1215_v18 = vpack.c.bf16 %v2925_v5, %v2919_v10  ;;  %v3319_v5 = vpack.c.bf16 %v2943_v14, %v2939_v26 }
 0x260   : > { %v1124_v62 = vadd.f32 %v1123_v4, %v1122_v55 }
 0x262   : > { %v1125_v50 = vrot.slane %v1124_v62, 1 }
 0x264   : > { %v1126_v27 = vadd.f32 %v1125_v50, %v1124_v62 }
 0x266   : > { %1723 = vrcp.f32 %v1126_v27  ;;  %v1155_v27 = vmul.f32 %v2875_v54, %v2630_v43 }
 0x268   : > { %v1205_v45 = vpack.c.bf16 %v1155_v27, %v1153_v6 }
 0x273   : > { %v2951_v7 = vpop.eup %1723 }
 0x274   : > { %v1158_v19 = vmul.f32 %v2951_v7, %v2800_v42  ;;  %v1160_v48 = vmul.f32 %v2951_v7, %v2809_v39  ;;  %v1154_v55 = vmul.f32 %v2951_v7, %v2784_v2  ;;  %v1156_v4 = vmul.f32 %v2951_v7, %v2792_v57 }
 0x275   : > { %v1150_v42 = vmul.f32 %v2951_v7, %v2762_v37  ;;  %v1152_v39 = vmul.f32 %v2951_v7, %v2773_v38  ;;  %v1149_v2 = vmul.f32 %v2875_v54, %v2603_v22  ;;  %v1151_v57 = vmul.f32 %v2875_v54, %v2612_v32 }
 0x276   : > { %v1208_v62 = vpack.c.bf16 %v1160_v48, %v1158_v19  ;;  %v1206_v50 = vpack.c.bf16 %v1156_v4, %v1154_v55  ;;  %v1146_v43 = vmul.f32 %v2951_v7, %v2750_v63  ;;  %v2976_v19 = vmul.f32 %v2951_v7, %v1720_v11 }
 0x277   : > { %v2979_v37 = vmul.f32 %v2951_v7, %v1722_v33  ;;  %v1148_v38 = vmul.f32 %v2951_v7, %v2756_v17  ;;  %v2984_v22 = vmul.f32 %v2951_v7, %v1714_v12  ;;  %v2987_v32 = vmul.f32 %v2951_v7, %v1716_v61 }
 0x278   : > { %1233 = vmatprep.subr.bf16.mxu1 %v1208_v62  ;;  %v1204_v63 = vpack.c.bf16 %v1152_v39, %v1150_v42  ;;  %v1184_v33 = vmul.f32 %v2951_v7, %v2872_v41  ;;  %v1178_v17 = vmul.f32 %v2951_v7, %v2863_v59  ;;  %v1180_v61 = vmul.f32 %v2951_v7, %v2866_v15 }
 0x279   : > { %1234 = vmatpush1.bf16.msra.mxu1 %v1207_v31  ;;  %v2991_v31 = vmul.f32 %v2951_v7, %v2869_v35  ;;  %v1224_v11 = vpack.c.bf16 %v2979_v37, %v2976_v19  ;;  %v1222_v12 = vpack.c.bf16 %v2987_v32, %v2984_v22  ;;  %v1174_v35 = vmul.f32 %v2951_v7, %v2854_v20  ;;  %v3307_v32 = vld [vmem:[#allocation6_spill] sm:$0xff] }
 0x27a   : > { %1235 = vmatprep.subr.bf16.mxu1 %v1206_v50  ;;  %v1176_v6 = vmul.f32 %v2951_v7, %v2860_v60  ;;  %v1170_v41 = vmul.f32 %v2951_v7, %v2842_v29  ;;  %v1172_v59 = vmul.f32 %v2951_v7, %v2848_v13  ;;  %v1166_v55 = vmul.f32 %v2951_v7, %v2823_v46 }
 0x27b   : > { %v1220_v48 = vpack.c.bf16 %v1184_v33, %v2991_v31  ;;  %v1218_v15 = vpack.c.bf16 %v1180_v61, %v1178_v17  ;;  %v1168_v20 = vmul.f32 %v2951_v7, %v2834_v52  ;;  %v1203_v27 = vpack.c.bf16 %v1151_v57, %v1149_v2  ;;  %v3308_v31 = vld [vmem:[#allocation10_spill] sm:$0xff]  ;;  %v3309_v33 = vld [vmem:[#allocation28_spill] sm:$0xff]  ;;  %v3310_v61 = vld [vmem:[#allocation31_spill] sm:$0xff] }
 0x27c   : > { %v1216_v4 = vpack.c.bf16 %v1176_v6, %v1174_v35  ;;  %v1145_v60 = vmul.f32 %v2875_v54, %v2591_v0  ;;  %v1147_v62 = vmul.f32 %v2875_v54, %v2597_v58  ;;  %v1214_v29 = vpack.c.bf16 %v1172_v59, %v1170_v41 }
 0x27d   : > { %1236 = vmatpush1.bf16.msra.mxu1 %v1205_v45  ;;  %v1202_v50 = vpack.c.bf16 %v1148_v38, %v1146_v43  ;;  %v1142_v13 = vmul.f32 %v2951_v7, %v2731_v1  ;;  %v1144_v46 = vmul.f32 %v2951_v7, %v2742_v25  ;;  %v1212_v42 = vpack.c.bf16 %v1168_v20, %v1166_v55  ;;  %v3304_v43 = vld [vmem:[#allocation13_spill] sm:$0xff]  ;;  %v3306_v38 = vld [vmem:[#allocation32_spill] sm:$0xff] }
 0x27e   : > { %1237 = vmatprep.subr.bf16.mxu1 %v1204_v63  ;;  %v1201_v39 = vpack.c.bf16 %v1147_v62, %v1145_v60  ;;  %v1141_v52 = vmul.f32 %v2875_v54, %v2583_v36  ;;  %v1143_v0 = vmul.f32 %v2875_v54, %v2586_v47  ;;  %v1138_v58 = vmul.f32 %v2951_v7, %v2709_v24 }
 0x27f   : > { %v1200_v2 = vpack.c.bf16 %v1144_v46, %v1142_v13  ;;  %v1140_v1 = vmul.f32 %v2951_v7, %v2720_v21  ;;  %v1137_v57 = vmul.f32 %v2875_v54, %v2569_v44  ;;  %v1139_v45 = vmul.f32 %v2875_v54, %v2576_v23  ;;  %v3305_v21 = vld [vmem:[#allocation30_spill] sm:$0xff] }
 0x280   : > { %v1199_v25 = vpack.c.bf16 %v1143_v0, %v1141_v52  ;;  %v1134_v47 = vmul.f32 %v2951_v7, %v2687_v40  ;;  %v1136_v19 = vmul.f32 %v2951_v7, %v3304_v43  ;;  %v1133_v37 = vmul.f32 %v2875_v54, %v3305_v21 }
 0x281   : > { %1238 = vmatpush1.bf16.msra.mxu1 %v1203_v27  ;;  %v1198_v36 = vpack.c.bf16 %v1140_v1, %v1138_v58  ;;  %v1197_v24 = vpack.c.bf16 %v1139_v45, %v1137_v57  ;;  %v1135_v22 = vmul.f32 %v2875_v54, %v3306_v38  ;;  %v1130_v23 = vmul.f32 %v2951_v7, %v3307_v32 }
 0x282   : > { %1239 = vmatprep.subr.bf16.mxu1 %v1202_v50  ;;  %v1196_v44 = vpack.c.bf16 %v1136_v19, %v1134_v47  ;;  %v1132_v63 = vmul.f32 %v2951_v7, %v3308_v31  ;;  %v1129_v17 = vmul.f32 %v2875_v54, %v3309_v33  ;;  %v1131_v35 = vmul.f32 %v2875_v54, %v3310_v61 }
 0x283   : > { %v1195_v40 = vpack.c.bf16 %v1135_v22, %v1133_v37  ;;  %v3311_v59 = vpack.c.bf16 %v2887_v56, %v2883_v9  ;;  %v3312_v55 = vpack.c.bf16 %v2895_v30, %v2891_v49  ;;  %v3313_v20 = vpack.c.bf16 %v2905_v3, %v2901_v28  ;;  %v3315_v9 = vld [vmem:[#allocation15_spill] sm:$0xff]  ;;  %v3316_v49 = vld [vmem:[#allocation17_spill] sm:$0xff] }
 0x284   : > { %v1194_v6 = vpack.c.bf16 %v1132_v63, %v1130_v23  ;;  %v1193_v41 = vpack.c.bf16 %v1131_v35, %v1129_v17  ;;  %v3314_v27 = vpack.c.bf16 %v2915_v34, %v2911_v8  ;;  %v1162_v56 = vmul.f32 %v2951_v7, %v3315_v9  ;;  %v3317_v28 = vld [vmem:[#allocation5_spill] sm:$0xff] }
 0x285   : > { %1240 = vmatpush1.bf16.msra.mxu1 %v1201_v39  ;;  %v1164_v30 = vmul.f32 %v2951_v7, %v3316_v49  ;;  %v1161_v3 = vmul.f32 %v2875_v54, %v3317_v28  ;;  %v3318_v8 = vld [vmem:[#allocation9_spill] sm:$0xff] }
 0x286   : > { %1241 = vmatprep.subr.bf16.mxu1 %v1200_v2  ;;  %v1163_v34 = vmul.f32 %v2875_v54, %v3318_v8 }
 0x287   : > { %v1210_v10 = vpack.c.bf16 %v1164_v30, %v1162_v56 }
 0x289   : > { %1242 = vmatpush1.bf16.msra.mxu1 %v1199_v25 }
 0x28a   : > { %1243 = vmatprep.subr.bf16.mxu1 %v1198_v36 }
 0x28d   : > { %1244 = vmatpush1.bf16.msra.mxu1 %v1197_v24 }
 0x28e   : > { %1245 = vmatprep.subr.bf16.mxu1 %v1196_v44 }
 0x291   : > { %1246 = vmatpush1.bf16.msra.mxu1 %v1195_v40 }
 0x292   : > { %1247 = vmatprep.subr.bf16.mxu1 %v1194_v6 }
 0x295   : > { %1248 = vmatpush1.bf16.msra.mxu1 %v1193_v41 }
 0x296   : > { %1249 = vmatprep.subr.bf16.mxu1 %v1224_v11  ;;  %v3320_v11 = vld [vmem:[#allocation19_spill] sm:$0xff] }
 0x297   : > { %v1505_v7 = vcombine.low %v3320_v11, %v3320_v11 }
 0x299   : > { %1250 = vmatpush2.bf16.msra.mxu1 %v3311_v59 }
 0x29a   : > { %1251 = vmatprep.subr.bf16.mxu1 %v1222_v12 }
 0x29d   : > { %1252 = vmatpush2.bf16.msra.mxu1 %v3312_v55 }
 0x29e   : > { %1253 = vmatprep.subr.bf16.mxu1 %v1220_v48 }
 0x2a1   : > { %1254 = vmatpush2.bf16.msra.mxu1 %v3313_v20 }
 0x2a2   : > { %1255 = vmatprep.subr.bf16.mxu1 %v1218_v15 }
 0x2a5   : > { %1256 = vmatpush2.bf16.msra.mxu1 %v3314_v27 }
 0x2a6   : > { %1257 = vmatprep.subr.bf16.mxu1 %v1216_v4 }
 0x2a9   : > { %1258 = vmatpush2.bf16.msra.mxu1 %v1215_v18  ;;  %v1209_v18 = vpack.c.bf16 %v1163_v34, %v1161_v3 }
 0x2aa   : > { %1259 = vmatprep.subr.bf16.mxu1 %v1214_v29 }
 0x2ad   : > { %1260 = vmatpush2.bf16.msra.mxu1 %v1213_v51 }
 0x2ae   : > { %1261 = vmatprep.subr.bf16.mxu1 %v1212_v42 }
 0x2b1   : > { %1262 = vmatpush2.bf16.msra.mxu1 %v3319_v5 }
 0x2b2   : > { %1263 = vmatprep.subr.bf16.mxu1 %v1210_v10 }
 0x2b5   : > { %1264 = vmatpush2.bf16.msra.mxu1 %v1209_v18 }
 0x2b8   : > { %1266 = vmatmul.mubr.bf16.vlgmr.msra.gmra.mxu1 %v1505_v7 }
 0x378   : > { %v1267_v51 = vpop.f32.mrf.mxu1 }
 0x37a   : > { %v1269_v54 = vpop.f32.mrf.mxu1 }
 0x37b   : > { %v1511_v53 = vpack.c.bf16 %v1269_v54, %v1267_v51 }
 0x37c   : > { %v1271_v16 = vpop.f32.mrf.mxu1 }
 0x37d   : > { %1282 = vst [vmem:[%s393_s5] sm:$0xff] %v1511_v53 }
 0x37e   : > { %v1272_v26 = vpop.f32.mrf.mxu1 }
 0x37f PF: > { %s17_s22 = sadd.s32 1, %s1819_s22   ;;  %s3321_s15 = smov %s1795_s16 }
 0x380   : > { %p14_p13 = scmp.ge.s32.totalorder %s17_s22, 10   ;;  %s3322_s16 = smov %s1799_s17 }
 0x381   : > { %s3323_s17 = smov %s1915_s7  ;;  %s3324_s18 = smov %s1811_s20 }
 0x382   : > { %s3325_s19 = smov %s1815_s21  ;;  %s3326_s20 = smov %s3329_s24 }
 0x383   : > { %s3327_s21 = smov %s3333_s25  ;;  %16 = sbr.rel (!%p14_p13) target bundleno = 5 (0x5), region = 85 }
 0x388   :  { %1321 = vsyncpa [#allocation3], 1 }
 0x389   :  { %1323 = vsyncpa [#allocation3 + $0x1], 1 }

// kernel: _lambda_.3
= control target key start
LH: loop header
LB: loop body
LE: loop exit
PB: predicated region body
PF: predicated region fallthrough
CT: control target
= control target key end

     0   :  { %10 = vsyncpa [#allocation3], 0  ;;  %s2427_s0 = inlined_call_operand.hbm [shape: f32[2,256,32], index: 0, kind: input, shape index: {}]   ;;  %s2428_s1 = inlined_call_operand.vmem [shape: f32[1,32], index: 1, kind: input, shape index: {}]   ;;  %s2429_s2 = inlined_call_operand.vmem [shape: f32[1,32], index: 2, kind: input, shape index: {}]   ;;  %s2430_s3 = inlined_call_operand.hbm [shape: bf16[96,32], index: 3, kind: input, shape index: {}]   ;;  %s2431_s4 = inlined_call_operand.hbm [shape: f32[96,1], index: 4, kind: input, shape index: {}]   ;;  %s2432_s5 = inlined_call_operand.vmem [shape: bf16[2,96,256], index: 5, kind: output, shape index: {}]  }
   0x1   :  { %12 = vsyncpa [#allocation3 + $0x1], 0 }
   0x2   :  { %13 = vsyncpa [#allocation5], 0  ;;  %s1761_s18 = smov 0   ;;  %s1763_s19 = smov 0  }
   0x3   :  { %s1765_s20 = smov 0   ;;  %s1767_s21 = smov 0  }
   0x4   :  { %s1769_s22 = smov 0   ;;  %s1771_s23 = smov 0  }
   0x5 LB: > { %s1318_s24 = sadd.s32 4294967295, %s1721_s23   ;;  %p53_p0 = scmp.ne.s32.totalorder %s1705_s19, %s1701_s18  ;;  %s1721_s23 = sphi %s1771_s23, %s19_s23   ;;  %s1717_s22 = sphi %s1769_s22, %s2446_s22   ;;  %s1713_s21 = sphi %s1767_s21, %s2445_s21   ;;  %s1709_s20 = sphi %s1765_s20, %s2444_s20   ;;  %s1705_s19 = sphi %s1763_s19, %s2443_s19   ;;  %s1701_s18 = sphi %s1761_s18, %s2442_s18  }
   0x6   : > { %p1791_p1 = scmp.eq.s32.totalorder %s1318_s24, 0  ;;  %p1320_p2 = scmp.ge.s32.totalorder %s1721_s23, 1 }
   0x7   : > { %p176_p3 = scmp.lt.s32.totalorder %s1721_s23, 3  ;;  %s1723_s28 = smov [#allocation4]  }
   0x8   : > { %s2435_s25 = scalar_select %p1791_p1, 1, 0 }
   0x9   : > { %p1799_p4 = por %p1791_p1, %p53_p0  ;;  %p1803_p5 = pnand %p1320_p2, %p176_p3 }
   0xa   : > { %s194_s29 = sshll.u32 %s1723_s28, 4  ;;  %s1724_s6 = smov [#allocation6]   ;;  %s195_s29 = int_to_ptr.vmem [resolvable:$true] %s194_s29 }
   0xb   : > { %p1444_p6 = pneg %p1803_p5  ;;  %s207_s7 = sshll.u32 %s1724_s6, 4  ;;  %s208_s7 = int_to_ptr.vmem [resolvable:$true] %s207_s7 }
   0xc   : > { %s1598_s8 = scalar_lea.vmem %s195_s29, 768  ;;  %p1606_p12 = scmp.lt.s32.totalorder %s195_s29, %s195_s29 }
   0xd   : > { %p1811_p7 = pnand %p1444_p6, %p1791_p1  ;;  %p1599_p9 = scmp.ne.s32.totalorder %s195_s29, %s1598_s8 }
   0xe   : > { %p1607_p13 = scmp.lt.s32.totalorder %s1598_s8, %s1598_s8 }
   0xf   : > { %p1589_p8 = pneg %p1811_p7 }
  0x10   : > { %p1608_p0 = por %p1607_p13, %p1606_p12 }
  0x11   : > { %p1601_p10 = pnand %p1599_p9, %p1589_p8 }
  0x13   : > { %p1602_p11 = pneg %p1601_p10 }
  0x15   : > { %p1609_p2 = pnand %p1608_p0, %p1602_p11 }
  0x17   : > { %1612 = shalt.err (!%p1609_p2)
}
  0x18   : > { %s1725_s9 = smov 64   ;;  %s1726_s10 = smov 4  }
  0x19   : > { %1447 = dma.hbm_to_vmem [thread:$0]  (!%p1811_p7), %s2430_s3, 768, %s195_s29, [#allocation5], %s1725_s9, %s1725_s9, %s1726_s10  }
  0x1a   : > { %s1624_s13 = scalar_lea.vmem %s208_s7, 1536  ;;  %p1632_p10 = scmp.lt.s32.totalorder %s208_s7, %s208_s7 }
  0x1b   : > { %p1625_p3 = scmp.ne.s32.totalorder %s208_s7, %s1624_s13  ;;  %p1633_p1 = scmp.lt.s32.totalorder %s1624_s13, %s1624_s13 }
  0x1d   : > { %p1627_p6 = pnand %p1625_p3, %p1589_p8  ;;  %p1634_p12 = por %p1633_p1, %p1632_p10 }
  0x1f   : > { %p1628_p9 = pneg %p1627_p6 }
  0x21   : > { %p1635_p11 = pnand %p1634_p12, %p1628_p9 }
  0x23   : > { %1638 = shalt.err (!%p1635_p11)
}
  0x24   : > { %s1727_s14 = smov 128   ;;  %s1728_s15 = smov 8  }
  0x25   : > { %1450 = dma.hbm_to_vmem [thread:$0]  (!%p1811_p7), %s2431_s4, 1536, %s208_s7, [#allocation5], %s1727_s14, %s1727_s14, %s1728_s15  }
  0x26   : > { %s31_s18 = sadd.s32 1, %s1717_s22  ;;  %s40_s24 = sadd.s32 1, %s1709_s20 }
  0x27   : > { %p33_p1 = scmp.ge.s32.totalorder %s31_s18, 2  ;;  %p47_p8 = scmp.ne.s32.totalorder %s1709_s20, %s1705_s19 }
  0x28   : > { %p48_p13 = scmp.eq.s32.totalorder %s1721_s23, 0  ;;  %p1457_p0 = scmp.lt.s32.totalorder %s1721_s23, 2 }
  0x29   : > { %s2448_s18 = smov (%p33_p1, %s31_s18), 0  ;;  %s221_s28 = sand.u32 1, %s1709_s20  }
  0x2a   : > { %p49_p2 = por %p48_p13, %p47_p8  ;;  %s35_s29 = ssub.s32 %s1717_s22, %s2448_s18 }
  0x2b   : > { %p38_p3 = scmp.eq.s32.totalorder %s35_s29, 0  ;;  %s1324_s30 = sshll.u32 %s221_s28, 8 }
  0x2c   : > { %s1360_s6 = sshll.u32 %s1717_s22, 12  ;;  %s225_s11 = scalar_lea.vmem [#allocation2], %s1324_s30 }
  0x2d   : > { %s1849_s8 = scalar_select %p38_p3, %s1709_s20, %s40_s24  }
  0x2e   : > { %s233_s10 = scalar_lea.hbm %s2427_s0, %s1360_s6  ;;  %s234_s12 = sshll.u32 %s225_s11, 4  ;;  %s235_s12 = int_to_ptr.vmem [resolvable:$true] %s234_s12 }
  0x2f   : > { %p1856_p7 = pnand %p1457_p0, %p49_p2  ;;  %s222_s16 = scalar_lea.sflag [#allocation3], %s221_s28 }
  0x30   : > { %s1652_s17 = scalar_lea.vmem %s235_s12, 4096  ;;  %s1729_s24 = smov [#allocation2]  }
  0x31   : > { %p1641_p6 = pneg %p1856_p7  ;;  %p1653_p9 = scmp.ne.s32.totalorder %s235_s12, %s1652_s17 }
  0x32   : > { %s1657_s29 = sshll.u32 %s1729_s24, 4  ;;  %s1658_s29 = int_to_ptr.vmem [resolvable:$false] %s1657_s29 }
  0x33   : > { %p1655_p10 = pnand %p1653_p9, %p1641_p6  ;;  %s1659_s6 = scalar_lea.vmem %s1658_s29, 8192 }
  0x34   : > { %p1660_p11 = scmp.lt.s32.totalorder %s235_s12, %s1658_s29  ;;  %p1661_p1 = scmp.lt.s32.totalorder %s1659_s6, %s1652_s17 }
  0x35   : > { %p1656_p12 = pneg %p1655_p10 }
  0x36   : > { %p1662_p8 = por %p1661_p1, %p1660_p11 }
  0x38   : > { %p1663_p13 = pnand %p1662_p8, %p1656_p12 }
  0x3a   : > { %1666 = shalt.err (!%p1663_p13)
}
  0x3b   : > { %1454 = dma.hbm_to_vmem [thread:$0]  (!%p1856_p7), %s233_s10, 4096, %s235_s12, %s222_s16, %s1727_s14, %s1727_s14, %s1728_s15  }
  0x3c   : > { %246 = sbr.rel (%p1803_p5) target bundleno = 672 (0x2a0), region = 40  ;;  %s248_s28 = sand.u32 (!%p1803_p5), 1, %s1705_s19  }
  0x3d   : > { %s1328_s30 = sshll.u32 (!%p1803_p5), %s248_s28, 8  ;;  %s249_s9 = scalar_lea.sflag (!%p1803_p5), [#allocation3], %s248_s28 }
  0x3e   : > { %s1870_s7 = scalar_lea.vmem (!%p1803_p5), [#allocation2], %s1328_s30 }
  0x41   : > { %1692 = dma.done.wait (%p1799_p4), %s249_s9, 4096  }
  0x42   : > { %1694 = vsyncadd (%p1799_p4), %s249_s9, 4294963200  ;;  %p2440_p0 = scmp.ne.s32.totalorder %s2435_s25, 0 }
  0x44   : > { %1696 = dma.done.wait (%p2440_p0), [#allocation5], 2304  }
  0x45   : > { %1698 = vsyncadd (%p2440_p0), [#allocation5], 4294964992  ;;  %vm337_vm0 = vcmask 261120   ;;  %v1881_v0 = vld [vmem:[%s1870_s7 + $0x70] sm:$0xff]  ;;  %v1887_v2 = vld [vmem:[%s1870_s7 + $0x78] sm:$0xff]  ;;  %p293_p4 = scmp.lt.s32.totalorder %s1713_s21, 1 }
  0x46   : > { %v1884_v1 = vld [vmem:[%s1870_s7 + $0xf0] sm:$0xff]  ;;  %v380_v3 = vsel %vm337_vm0, %v1881_v0, 0.0  ;;  %v1894_v5 = vld [vmem:[%s1870_s7 + $0xf8] sm:$0xff]  ;;  %v383_v6 = vsel %vm337_vm0, %v1887_v2, 0.0  ;;  %v1901_v8 = vld [vmem:[%s1870_s7 + $0x60] sm:$0xff] }
  0x47   : > { %v428_v4 = vsel %vm337_vm0, %v1884_v1, 0.0  ;;  %381 = vadd.xlane.f32.xlu0 %v380_v3  ;;  %v431_v7 = vsel %vm337_vm0, %v1894_v5, 0.0  ;;  %v1904_v9 = vld [vmem:[%s1870_s7 + $0x68] sm:$0xff]  ;;  %v374_v10 = vsel %vm337_vm0, %v1901_v8, 0.0  ;;  %v1911_v12 = vld [vmem:[%s1870_s7 + $0xe0] sm:$0xff]  ;;  %v1919_v15 = vld [vmem:[%s1870_s7 + $0x50] sm:$0xff] }
  0x48   : > { %429 = vadd.xlane.f32.xlu1 %v428_v4  ;;  %v377_v11 = vsel %vm337_vm0, %v1904_v9, 0.0  ;;  %v1914_v13 = vld [vmem:[%s1870_s7 + $0xe8] sm:$0xff]  ;;  %v422_v14 = vsel %vm337_vm0, %v1911_v12, 0.0  ;;  %v1924_v17 = vld [vmem:[%s1870_s7 + $0x58] sm:$0xff]  ;;  %v368_v18 = vsel %vm337_vm0, %v1919_v15, 0.0  ;;  %v1931_v20 = vld [vmem:[%s1870_s7 + $0xd0] sm:$0xff] }
  0x49   : > { %v425_v16 = vsel %vm337_vm0, %v1914_v13, 0.0  ;;  %v371_v19 = vsel %vm337_vm0, %v1924_v17, 0.0  ;;  %v1934_v21 = vld [vmem:[%s1870_s7 + $0xd8] sm:$0xff]  ;;  %v416_v22 = vsel %vm337_vm0, %v1931_v20, 0.0  ;;  %v1941_v24 = vld [vmem:[%s1870_s7 + $0x40] sm:$0xff]  ;;  %v1944_v25 = vld [vmem:[%s1870_s7 + $0x48] sm:$0xff] }
  0x4a   : > { %v419_v23 = vsel %vm337_vm0, %v1934_v21, 0.0  ;;  %v362_v26 = vsel %vm337_vm0, %v1941_v24, 0.0  ;;  %v365_v27 = vsel %vm337_vm0, %v1944_v25, 0.0  ;;  %v1951_v28 = vld [vmem:[%s1870_s7 + $0xc0] sm:$0xff]  ;;  %v1954_v29 = vld [vmem:[%s1870_s7 + $0xc8] sm:$0xff]  ;;  %v1961_v32 = vld [vmem:[%s1870_s7 + $0x30] sm:$0xff] }
  0x4b   : > { %384 = vadd.xlane.f32.xlu0 %v383_v6  ;;  %v410_v30 = vsel %vm337_vm0, %v1951_v28, 0.0  ;;  %v413_v31 = vsel %vm337_vm0, %v1954_v29, 0.0  ;;  %v1964_v33 = vld [vmem:[%s1870_s7 + $0x38] sm:$0xff]  ;;  %v356_v34 = vsel %vm337_vm0, %v1961_v32, 0.0  ;;  %v1971_v36 = vld [vmem:[%s1870_s7 + $0xb0] sm:$0xff]  ;;  %v1981_v40 = vld [vmem:[%s1870_s7 + $0x20] sm:$0xff] }
  0x4c   : > { %432 = vadd.xlane.f32.xlu1 %v431_v7  ;;  %v359_v35 = vsel %vm337_vm0, %v1964_v33, 0.0  ;;  %v1974_v37 = vld [vmem:[%s1870_s7 + $0xb8] sm:$0xff]  ;;  %v404_v38 = vsel %vm337_vm0, %v1971_v36, 0.0  ;;  %v1984_v41 = vld [vmem:[%s1870_s7 + $0x28] sm:$0xff]  ;;  %v350_v42 = vsel %vm337_vm0, %v1981_v40, 0.0  ;;  %v1991_v44 = vld [vmem:[%s1870_s7 + $0xa0] sm:$0xff] }
  0x4d   : > { %v407_v39 = vsel %vm337_vm0, %v1974_v37, 0.0  ;;  %v353_v43 = vsel %vm337_vm0, %v1984_v41, 0.0  ;;  %v1994_v45 = vld [vmem:[%s1870_s7 + $0xa8] sm:$0xff]  ;;  %v398_v46 = vsel %vm337_vm0, %v1991_v44, 0.0  ;;  %v2001_v48 = vld [vmem:[%s1870_s7 + $0x10] sm:$0xff]  ;;  %v2004_v49 = vld [vmem:[%s1870_s7 + $0x18] sm:$0xff] }
  0x4e   : > { %v401_v47 = vsel %vm337_vm0, %v1994_v45, 0.0  ;;  %v344_v50 = vsel %vm337_vm0, %v2001_v48, 0.0  ;;  %v347_v51 = vsel %vm337_vm0, %v2004_v49, 0.0  ;;  %v2011_v52 = vld [vmem:[%s1870_s7 + $0x90] sm:$0xff]  ;;  %v2014_v53 = vld [vmem:[%s1870_s7 + $0x98] sm:$0xff]  ;;  %v2021_v56 = vld [vmem:[%s1870_s7] sm:$0xff] }
  0x4f   : > { %375 = vadd.xlane.f32.xlu0 %v374_v10  ;;  %v392_v54 = vsel %vm337_vm0, %v2011_v52, 0.0  ;;  %v395_v55 = vsel %vm337_vm0, %v2014_v53, 0.0  ;;  %v2024_v57 = vld [vmem:[%s1870_s7 + $0x8] sm:$0xff]  ;;  %v338_v58 = vsel %vm337_vm0, %v2021_v56, 0.0  ;;  %v2031_v60 = vld [vmem:[%s1870_s7 + $0x80] sm:$0xff]  ;;  %s2450_s21 = smov (!%p293_p4, %s1713_s21), 1 }
  0x50   : > { %378 = vadd.xlane.f32.xlu1 %v377_v11  ;;  %v341_v59 = vsel %vm337_vm0, %v2024_v57, 0.0  ;;  %v2034_v61 = vld [vmem:[%s1870_s7 + $0x88] sm:$0xff]  ;;  %v386_v62 = vsel %vm337_vm0, %v2031_v60, 0.0  ;;  %s1433_s15 = smul.u32 96, %s2450_s21 }
  0x51   : > { %v389_v63 = vsel %vm337_vm0, %v2034_v61, 0.0 }
  0x52   : > { %s2391_s12 = scalar_lea.vmem %s2432_s5, %s1433_s15 }
  0x53   : > { %423 = vadd.xlane.f32.xlu0 %v422_v14 }
  0x54   : > { %426 = vadd.xlane.f32.xlu1 %v425_v16 }
  0x57   : > { %369 = vadd.xlane.f32.xlu0 %v368_v18 }
  0x58   : > { %372 = vadd.xlane.f32.xlu1 %v371_v19 }
  0x5b   : > { %417 = vadd.xlane.f32.xlu0 %v416_v22 }
  0x5c   : > { %420 = vadd.xlane.f32.xlu1 %v419_v23 }
  0x5f   : > { %363 = vadd.xlane.f32.xlu0 %v362_v26 }
  0x60   : > { %366 = vadd.xlane.f32.xlu1 %v365_v27 }
  0x63   : > { %411 = vadd.xlane.f32.xlu0 %v410_v30 }
  0x64   : > { %414 = vadd.xlane.f32.xlu1 %v413_v31 }
  0x67   : > { %357 = vadd.xlane.f32.xlu0 %v356_v34 }
  0x68   : > { %360 = vadd.xlane.f32.xlu1 %v359_v35 }
  0x6b   : > { %405 = vadd.xlane.f32.xlu0 %v404_v38 }
  0x6c   : > { %408 = vadd.xlane.f32.xlu1 %v407_v39 }
  0x6f   : > { %351 = vadd.xlane.f32.xlu0 %v350_v42 }
  0x70   : > { %354 = vadd.xlane.f32.xlu1 %v353_v43 }
  0x73   : > { %399 = vadd.xlane.f32.xlu0 %v398_v46 }
  0x74   : > { %402 = vadd.xlane.f32.xlu1 %v401_v47 }
  0x77   : > { %345 = vadd.xlane.f32.xlu0 %v344_v50 }
  0x78   : > { %348 = vadd.xlane.f32.xlu1 %v347_v51 }
  0x7b   : > { %393 = vadd.xlane.f32.xlu0 %v392_v54 }
  0x7c   : > { %396 = vadd.xlane.f32.xlu1 %v395_v55 }
  0x7f   : > { %339 = vadd.xlane.f32.xlu0 %v338_v58 }
  0x80   : > { %342 = vadd.xlane.f32.xlu1 %v341_v59 }
  0x83   : > { %387 = vadd.xlane.f32.xlu0 %v386_v62 }
  0x84   : > { %390 = vadd.xlane.f32.xlu1 %v389_v63 }
  0xd0   : > { %v382_v3 = vpop.xlane.xlu0 %381 }
  0xd1   : > { %v430_v4 = vpop.xlane.xlu1 %429  ;;  %v449_v6 = vmul.f32 0.03125, %v382_v3 }
  0xd2   : > { %v465_v7 = vmul.f32 0.03125, %v430_v4 }
  0xd3   : > { %v2041_v10 = vsub.f32 %v1881_v0, %v449_v6 }
  0xd4   : > { %v2044_v11 = vsub.f32 %v1884_v1, %v465_v7  ;;  %v385_v14 = vpop.xlane.xlu0 %384 }
  0xd5   : > { %v433_v16 = vpop.xlane.xlu1 %432  ;;  %v450_v18 = vmul.f32 0.03125, %v385_v14  ;;  %v513_v22 = vmul.f32 %v2041_v10, %v2041_v10 }
  0xd6   : > { %v466_v19 = vmul.f32 0.03125, %v433_v16  ;;  %v529_v23 = vmul.f32 %v2044_v11, %v2044_v11 }
  0xd7   : > { %v2051_v26 = vsub.f32 %v1887_v2, %v450_v18  ;;  %v573_v0 = vsel %vm337_vm0, %v513_v22, 0.0 }
  0xd8   : > { %v2054_v27 = vsub.f32 %v1894_v5, %v466_v19  ;;  %v376_v1 = vpop.xlane.xlu0 %375  ;;  %574 = vadd.xlane.f32.xlu0 %v573_v0  ;;  %v621_v31 = vsel %vm337_vm0, %v529_v23, 0.0 }
  0xd9   : > { %v379_v30 = vpop.xlane.xlu1 %378  ;;  %v447_v34 = vmul.f32 0.03125, %v376_v1  ;;  %v514_v38 = vmul.f32 %v2051_v26, %v2051_v26 }
  0xda   : > { %v448_v35 = vmul.f32 0.03125, %v379_v30  ;;  %v530_v39 = vmul.f32 %v2054_v27, %v2054_v27 }
  0xdb   : > { %v2063_v2 = vsub.f32 %v1901_v8, %v447_v34  ;;  %v576_v42 = vsel %vm337_vm0, %v514_v38, 0.0 }
  0xdc   : > { %v2066_v5 = vsub.f32 %v1904_v9, %v448_v35  ;;  %v424_v43 = vpop.xlane.xlu0 %423  ;;  %577 = vadd.xlane.f32.xlu1 %v576_v42  ;;  %622 = vadd.xlane.f32.xlu0 %v621_v31  ;;  %v624_v47 = vsel %vm337_vm0, %v530_v39, 0.0 }
  0xdd   : > { %v427_v46 = vpop.xlane.xlu1 %426  ;;  %v463_v50 = vmul.f32 0.03125, %v424_v43  ;;  %v511_v54 = vmul.f32 %v2063_v2, %v2063_v2 }
  0xde   : > { %v464_v51 = vmul.f32 0.03125, %v427_v46  ;;  %v512_v8 = vmul.f32 %v2066_v5, %v2066_v5 }
  0xdf   : > { %v2075_v55 = vsub.f32 %v1911_v12, %v463_v50  ;;  %v567_v58 = vsel %vm337_vm0, %v511_v54, 0.0 }
  0xe0   : > { %v2078_v9 = vsub.f32 %v1914_v13, %v464_v51  ;;  %v370_v59 = vpop.xlane.xlu0 %369  ;;  %625 = vadd.xlane.f32.xlu1 %v624_v47  ;;  %568 = vadd.xlane.f32.xlu0 %v567_v58  ;;  %v570_v63 = vsel %vm337_vm0, %v512_v8, 0.0 }
  0xe1   : > { %v373_v62 = vpop.xlane.xlu1 %372  ;;  %v445_v3 = vmul.f32 0.03125, %v370_v59  ;;  %v527_v6 = vmul.f32 %v2075_v55, %v2075_v55 }
  0xe2   : > { %v446_v4 = vmul.f32 0.03125, %v373_v62  ;;  %v528_v12 = vmul.f32 %v2078_v9, %v2078_v9 }
  0xe3   : > { %v2087_v7 = vsub.f32 %v1919_v15, %v445_v3  ;;  %v615_v14 = vsel %vm337_vm0, %v527_v6, 0.0 }
  0xe4   : > { %v2090_v13 = vsub.f32 %v1924_v17, %v446_v4  ;;  %v418_v16 = vpop.xlane.xlu0 %417  ;;  %571 = vadd.xlane.f32.xlu1 %v570_v63  ;;  %616 = vadd.xlane.f32.xlu0 %v615_v14  ;;  %v618_v19 = vsel %vm337_vm0, %v528_v12, 0.0 }
  0xe5   : > { %v421_v18 = vpop.xlane.xlu1 %420  ;;  %v461_v22 = vmul.f32 0.03125, %v418_v16  ;;  %v509_v0 = vmul.f32 %v2087_v7, %v2087_v7 }
  0xe6   : > { %v462_v23 = vmul.f32 0.03125, %v421_v18  ;;  %v510_v15 = vmul.f32 %v2090_v13, %v2090_v13 }
  0xe7   : > { %v2099_v1 = vsub.f32 %v1931_v20, %v461_v22  ;;  %v561_v30 = vsel %vm337_vm0, %v509_v0, 0.0 }
  0xe8   : > { %v2102_v17 = vsub.f32 %v1934_v21, %v462_v23  ;;  %v364_v31 = vpop.xlane.xlu0 %363  ;;  %619 = vadd.xlane.f32.xlu1 %v618_v19  ;;  %562 = vadd.xlane.f32.xlu0 %v561_v30  ;;  %v564_v35 = vsel %vm337_vm0, %v510_v15, 0.0 }
  0xe9   : > { %v367_v34 = vpop.xlane.xlu1 %366  ;;  %v443_v38 = vmul.f32 0.03125, %v364_v31  ;;  %v525_v42 = vmul.f32 %v2099_v1, %v2099_v1 }
  0xea   : > { %v444_v39 = vmul.f32 0.03125, %v367_v34  ;;  %v526_v20 = vmul.f32 %v2102_v17, %v2102_v17 }
  0xeb   : > { %v2111_v43 = vsub.f32 %v1941_v24, %v443_v38  ;;  %v609_v46 = vsel %vm337_vm0, %v525_v42, 0.0 }
  0xec   : > { %v2114_v21 = vsub.f32 %v1944_v25, %v444_v39  ;;  %v412_v47 = vpop.xlane.xlu0 %411  ;;  %565 = vadd.xlane.f32.xlu1 %v564_v35  ;;  %610 = vadd.xlane.f32.xlu0 %v609_v46  ;;  %v612_v51 = vsel %vm337_vm0, %v526_v20, 0.0 }
  0xed   : > { %v415_v50 = vpop.xlane.xlu1 %414  ;;  %v459_v54 = vmul.f32 0.03125, %v412_v47  ;;  %v507_v58 = vmul.f32 %v2111_v43, %v2111_v43 }
  0xee   : > { %v460_v8 = vmul.f32 0.03125, %v415_v50  ;;  %v508_v24 = vmul.f32 %v2114_v21, %v2114_v21 }
  0xef   : > { %v2123_v59 = vsub.f32 %v1951_v28, %v459_v54  ;;  %v555_v62 = vsel %vm337_vm0, %v507_v58, 0.0 }
  0xf0   : > { %v2126_v25 = vsub.f32 %v1954_v29, %v460_v8  ;;  %v358_v63 = vpop.xlane.xlu0 %357  ;;  %613 = vadd.xlane.f32.xlu1 %v612_v51  ;;  %556 = vadd.xlane.f32.xlu0 %v555_v62  ;;  %v558_v4 = vsel %vm337_vm0, %v508_v24, 0.0 }
  0xf1   : > { %v361_v3 = vpop.xlane.xlu1 %360  ;;  %v441_v6 = vmul.f32 0.03125, %v358_v63  ;;  %v523_v14 = vmul.f32 %v2123_v59, %v2123_v59 }
  0xf2   : > { %v442_v12 = vmul.f32 0.03125, %v361_v3  ;;  %v524_v28 = vmul.f32 %v2126_v25, %v2126_v25 }
  0xf3   : > { %v2135_v16 = vsub.f32 %v1961_v32, %v441_v6  ;;  %v603_v18 = vsel %vm337_vm0, %v523_v14, 0.0 }
  0xf4   : > { %v2138_v29 = vsub.f32 %v1964_v33, %v442_v12  ;;  %v406_v19 = vpop.xlane.xlu0 %405  ;;  %559 = vadd.xlane.f32.xlu1 %v558_v4  ;;  %604 = vadd.xlane.f32.xlu0 %v603_v18  ;;  %v606_v23 = vsel %vm337_vm0, %v524_v28, 0.0 }
  0xf5   : > { %v409_v22 = vpop.xlane.xlu1 %408  ;;  %v457_v0 = vmul.f32 0.03125, %v406_v19  ;;  %v505_v30 = vmul.f32 %v2135_v16, %v2135_v16 }
  0xf6   : > { %v458_v15 = vmul.f32 0.03125, %v409_v22  ;;  %v506_v32 = vmul.f32 %v2138_v29, %v2138_v29 }
  0xf7   : > { %v2147_v31 = vsub.f32 %v1971_v36, %v457_v0  ;;  %v549_v34 = vsel %vm337_vm0, %v505_v30, 0.0 }
  0xf8   : > { %v2150_v33 = vsub.f32 %v1974_v37, %v458_v15  ;;  %v352_v35 = vpop.xlane.xlu0 %351  ;;  %607 = vadd.xlane.f32.xlu1 %v606_v23  ;;  %550 = vadd.xlane.f32.xlu0 %v549_v34  ;;  %v552_v39 = vsel %vm337_vm0, %v506_v32, 0.0 }
  0xf9   : > { %v355_v38 = vpop.xlane.xlu1 %354  ;;  %v439_v42 = vmul.f32 0.03125, %v352_v35  ;;  %v521_v46 = vmul.f32 %v2147_v31, %v2147_v31 }
  0xfa   : > { %v440_v20 = vmul.f32 0.03125, %v355_v38  ;;  %v522_v36 = vmul.f32 %v2150_v33, %v2150_v33 }
  0xfb   : > { %v2159_v47 = vsub.f32 %v1981_v40, %v439_v42  ;;  %v597_v50 = vsel %vm337_vm0, %v521_v46, 0.0 }
  0xfc   : > { %v2162_v37 = vsub.f32 %v1984_v41, %v440_v20  ;;  %v400_v51 = vpop.xlane.xlu0 %399  ;;  %553 = vadd.xlane.f32.xlu1 %v552_v39  ;;  %598 = vadd.xlane.f32.xlu0 %v597_v50  ;;  %v600_v8 = vsel %vm337_vm0, %v522_v36, 0.0 }
  0xfd   : > { %v403_v54 = vpop.xlane.xlu1 %402  ;;  %v455_v58 = vmul.f32 0.03125, %v400_v51  ;;  %v503_v62 = vmul.f32 %v2159_v47, %v2159_v47 }
  0xfe   : > { %v456_v24 = vmul.f32 0.03125, %v403_v54  ;;  %v504_v40 = vmul.f32 %v2162_v37, %v2162_v37 }
  0xff   : > { %v2171_v63 = vsub.f32 %v1991_v44, %v455_v58  ;;  %v543_v3 = vsel %vm337_vm0, %v503_v62, 0.0 }
 0x100   : > { %v2174_v41 = vsub.f32 %v1994_v45, %v456_v24  ;;  %v346_v4 = vpop.xlane.xlu0 %345  ;;  %601 = vadd.xlane.f32.xlu1 %v600_v8  ;;  %544 = vadd.xlane.f32.xlu0 %v543_v3  ;;  %v546_v12 = vsel %vm337_vm0, %v504_v40, 0.0 }
 0x101   : > { %v349_v6 = vpop.xlane.xlu1 %348  ;;  %v437_v14 = vmul.f32 0.03125, %v346_v4  ;;  %v519_v18 = vmul.f32 %v2171_v63, %v2171_v63 }
 0x102   : > { %v438_v28 = vmul.f32 0.03125, %v349_v6  ;;  %v520_v44 = vmul.f32 %v2174_v41, %v2174_v41 }
 0x103   : > { %v2183_v19 = vsub.f32 %v2001_v48, %v437_v14  ;;  %v591_v22 = vsel %vm337_vm0, %v519_v18, 0.0 }
 0x104   : > { %v2186_v45 = vsub.f32 %v2004_v49, %v438_v28  ;;  %v394_v23 = vpop.xlane.xlu0 %393  ;;  %547 = vadd.xlane.f32.xlu1 %v546_v12  ;;  %592 = vadd.xlane.f32.xlu0 %v591_v22  ;;  %v594_v15 = vsel %vm337_vm0, %v520_v44, 0.0  ;;  %v2234_v44 = vld [vmem:[#allocation4 + $0x18] sm:$0xff]  }
 0x105   : > { %v397_v0 = vpop.xlane.xlu1 %396  ;;  %v453_v30 = vmul.f32 0.03125, %v394_v23  ;;  %v501_v34 = vmul.f32 %v2183_v19, %v2183_v19  ;;  %1395 = vmatprep.mubr.msk.bf16.mxu1 %vm337_vm0, %v2234_v44  ;;  %v860_v22 = vld [vmem:[#allocation6 + $0x8] sm:$0xff]  ;;  %v1730_v23 = vmov 0  }
 0x106   : > { %v454_v32 = vmul.f32 0.03125, %v397_v0  ;;  %v502_v48 = vmul.f32 %v2186_v45, %v2186_v45  ;;  %1516 = vset.pattern.permute.xlu1 %v1730_v23  ;;  %1515 = vset.pattern.permute.xlu0 %v1730_v23  ;;  %v861_v0 = vld [vmem:[#allocation6 + $0x10] sm:$0xff] }
 0x107   : > { %v2195_v35 = vsub.f32 %v2011_v52, %v453_v30  ;;  %v537_v38 = vsel %vm337_vm0, %v501_v34, 0.0  ;;  %v868_v30 = vld [vmem:[#allocation6 + $0x48] sm:$0xff]  ;;  %v870_v34 = vld [vmem:[#allocation6 + $0x58] sm:$0xff] }
 0x108   : > { %v2198_v49 = vsub.f32 %v2014_v53, %v454_v32  ;;  %595 = vadd.xlane.f32.xlu1 %v594_v15  ;;  %538 = vadd.xlane.f32.xlu0 %v537_v38  ;;  %v340_v39 = vpop.xlane.xlu0 %339  ;;  %v540_v42 = vsel %vm337_vm0, %v502_v48, 0.0  ;;  %v859_v15 = vld [vmem:[#allocation6] sm:$0xff]  ;;  %v862_v32 = vld [vmem:[#allocation6 + $0x18] sm:$0xff] }
 0x109   : > { %v343_v20 = vpop.xlane.xlu1 %342  ;;  %v435_v46 = vmul.f32 0.03125, %v340_v39  ;;  %v517_v50 = vmul.f32 %v2195_v35, %v2195_v35  ;;  %v863_v48 = vld [vmem:[#allocation6 + $0x20] sm:$0xff] }
 0x10a   : > { %v436_v36 = vmul.f32 0.03125, %v343_v20  ;;  %v518_v52 = vmul.f32 %v2198_v49, %v2198_v49 }
 0x10b   : > { %v2207_v51 = vsub.f32 %v2021_v56, %v435_v46  ;;  %v585_v54 = vsel %vm337_vm0, %v517_v50, 0.0 }
 0x10c   : > { %v2210_v53 = vsub.f32 %v2024_v57, %v436_v36  ;;  %541 = vadd.xlane.f32.xlu1 %v540_v42  ;;  %586 = vadd.xlane.f32.xlu0 %v585_v54  ;;  %v388_v8 = vpop.xlane.xlu0 %387  ;;  %v588_v58 = vsel %vm337_vm0, %v518_v52, 0.0  ;;  %v864_v42 = vld [vmem:[#allocation6 + $0x28] sm:$0xff]  ;;  %v865_v54 = vld [vmem:[#allocation6 + $0x30] sm:$0xff] }
 0x10d   : > { %v391_v24 = vpop.xlane.xlu1 %390  ;;  %v451_v62 = vmul.f32 0.03125, %v388_v8  ;;  %v499_v3 = vmul.f32 %v2207_v51, %v2207_v51 }
 0x10e   : > { %v452_v40 = vmul.f32 0.03125, %v391_v24  ;;  %v500_v56 = vmul.f32 %v2210_v53, %v2210_v53 }
 0x10f   : > { %v2219_v4 = vsub.f32 %v2031_v60, %v451_v62  ;;  %v531_v6 = vsel %vm337_vm0, %v499_v3, 0.0 }
 0x110   : > { %v2222_v57 = vsub.f32 %v2034_v61, %v452_v40  ;;  %589 = vadd.xlane.f32.xlu1 %v588_v58  ;;  %532 = vadd.xlane.f32.xlu0 %v531_v6  ;;  %v534_v12 = vsel %vm337_vm0, %v500_v56, 0.0  ;;  %v2232_v61 = vld [vmem:[#allocation4] sm:$0xff]   ;;  %v866_v56 = vld [vmem:[#allocation6 + $0x38] sm:$0xff] }
 0x111   : > { %v515_v14 = vmul.f32 %v2219_v4, %v2219_v4  ;;  %1389 = vmatprep.mubr.msk.bf16.mxu0 %vm337_vm0, %v2232_v61 }
 0x112   : > { %v516_v28 = vmul.f32 %v2222_v57, %v2222_v57 }
 0x113   : > { %v579_v18 = vsel %vm337_vm0, %v515_v14, 0.0 }
 0x114   : > { %535 = vadd.xlane.f32.xlu1 %v534_v12  ;;  %580 = vadd.xlane.f32.xlu0 %v579_v18  ;;  %v582_v60 = vsel %vm337_vm0, %v516_v28, 0.0 }
 0x118   : > { %583 = vadd.xlane.f32.xlu1 %v582_v60 }
 0x129   : > { %878 = vperm.xlu1 %1516, %v860_v22   ;;  %v867_v22 = vld [vmem:[#allocation6 + $0x40] sm:$0xff] }
 0x12a   : > { %873 = vperm.xlu0 %1515, %v859_v15  }
 0x12d   : > { %883 = vperm.xlu1 %1516, %v861_v0  }
 0x12e   : > { %918 = vperm.xlu0 %1515, %v868_v30  }
 0x131   : > { %888 = vperm.xlu1 %1516, %v862_v32  }
 0x132   : > { %928 = vperm.xlu0 %1515, %v870_v34  }
 0x135   : > { %893 = vperm.xlu1 %1516, %v863_v48  }
 0x139   : > { %898 = vperm.xlu1 %1516, %v864_v42  }
 0x13d   : > { %903 = vperm.xlu1 %1516, %v865_v54   ;;  %v2244_v54 = vld [vmem:[%s2428_s1] ss:$0 sm:$0xff] }
 0x141   : > { %908 = vperm.xlu1 %1516, %v866_v56  }
 0x145   : > { %913 = vperm.xlu1 %1516, %v867_v22  }
 0x161   : > { %v575_v38 = vpop.xlane.xlu0 %574 }
 0x162   : > { %v641_v39 = vmul.f32 0.03125, %v575_v38  ;;  %v869_v38 = vld [vmem:[#allocation6 + $0x50] sm:$0xff] }
 0x163   : > { %923 = vperm.xlu1 %1516, %v869_v38  }
 0x164   : > { %v673_v20 = vadd.f32 1e-05, %v641_v39 }
 0x165   : > { %v578_v46 = vpop.xlane.xlu1 %577  ;;  %v623_v36 = vpop.xlane.xlu0 %622 }
 0x166   : > { %1523 = vrsqrt.f32 %v673_v20  ;;  %v642_v50 = vmul.f32 0.03125, %v578_v46  ;;  %v657_v52 = vmul.f32 0.03125, %v623_v36 }
 0x168   : > { %v674_v8 = vadd.f32 1e-05, %v642_v50  ;;  %v689_v58 = vadd.f32 1e-05, %v657_v52 }
 0x169   : > { %v626_v24 = vpop.xlane.xlu1 %625  ;;  %v569_v62 = vpop.xlane.xlu0 %568 }
 0x16a   : > { %1525 = vrsqrt.f32 %v674_v8  ;;  %v658_v40 = vmul.f32 0.03125, %v626_v24  ;;  %v639_v3 = vmul.f32 0.03125, %v569_v62 }
 0x16b   : > { %1527 = vrsqrt.f32 %v689_v58 }
 0x16c   : > { %v690_v6 = vadd.f32 1e-05, %v658_v40  ;;  %v671_v12 = vadd.f32 1e-05, %v639_v3 }
 0x16d   : > { %v572_v14 = vpop.xlane.xlu1 %571  ;;  %v617_v28 = vpop.xlane.xlu0 %616 }
 0x16e   : > { %1529 = vrsqrt.f32 %v690_v6  ;;  %v640_v18 = vmul.f32 0.03125, %v572_v14  ;;  %v655_v60 = vmul.f32 0.03125, %v617_v28  ;;  %v2252_v28 = vld [vmem:[%s2429_s2] ss:$0 sm:$0xff] }
 0x16f   : > { %1531 = vrsqrt.f32 %v671_v12 }
 0x170   : > { %v672_v23 = vadd.f32 1e-05, %v640_v18  ;;  %v687_v0 = vadd.f32 1e-05, %v655_v60 }
 0x171   : > { %v620_v15 = vpop.xlane.xlu1 %619  ;;  %v563_v30 = vpop.xlane.xlu0 %562 }
 0x172   : > { %1533 = vrsqrt.f32 %v672_v23  ;;  %v656_v32 = vmul.f32 0.03125, %v620_v15  ;;  %v637_v34 = vmul.f32 0.03125, %v563_v30 }
 0x173   : > { %v1524_v48 = vpop.eup %1523  ;;  %1535 = vrsqrt.f32 %v687_v0 }
 0x174   : > { %v688_v39 = vadd.f32 1e-05, %v656_v32  ;;  %v669_v42 = vadd.f32 1e-05, %v637_v34  ;;  %v737_v36 = vmul.f32 %v1524_v48, %v2041_v10 }
 0x175   : > { %v566_v20 = vpop.xlane.xlu1 %565  ;;  %v611_v46 = vpop.xlane.xlu0 %610 }
 0x176   : > { %1537 = vrsqrt.f32 %v688_v39  ;;  %v638_v50 = vmul.f32 0.03125, %v566_v20  ;;  %v653_v52 = vmul.f32 0.03125, %v611_v46  ;;  %v775_v6 = vmul.f32 %v2244_v54, %v737_v36 }
 0x177   : > { %v1526_v8 = vpop.eup %1525  ;;  %1539 = vrsqrt.f32 %v669_v42 }
 0x178   : > { %v1528_v58 = vpop.eup %1527  ;;  %v670_v24 = vadd.f32 1e-05, %v638_v50  ;;  %v685_v62 = vadd.f32 1e-05, %v653_v52  ;;  %v738_v40 = vmul.f32 %v1526_v8, %v2051_v26  ;;  %v813_v34 = vadd.f32 %v2252_v28, %v775_v6 }
 0x179   : > { %v614_v3 = vpop.xlane.xlu1 %613  ;;  %v557_v56 = vpop.xlane.xlu0 %556  ;;  %v753_v10 = vmul.f32 %v1528_v58, %v2044_v11 }
 0x17a   : > { %1541 = vrsqrt.f32 %v670_v24  ;;  %v654_v12 = vmul.f32 0.03125, %v614_v3  ;;  %v635_v14 = vmul.f32 0.03125, %v557_v56  ;;  %v776_v18 = vmul.f32 %v2244_v54, %v738_v40 }
 0x17b   : > { %v1530_v60 = vpop.eup %1529  ;;  %1543 = vrsqrt.f32 %v685_v62  ;;  %v791_v26 = vmul.f32 %v2244_v54, %v753_v10 }
 0x17c   : > { %v1532_v22 = vpop.eup %1531  ;;  %v686_v23 = vadd.f32 1e-05, %v654_v12  ;;  %v667_v0 = vadd.f32 1e-05, %v635_v14  ;;  %v754_v11 = vmul.f32 %v1530_v60, %v2054_v27  ;;  %v814_v15 = vadd.f32 %v2252_v28, %v776_v18 }
 0x17d   : > { %v560_v30 = vpop.xlane.xlu1 %559  ;;  %v605_v32 = vpop.xlane.xlu0 %604  ;;  %v735_v48 = vmul.f32 %v1532_v22, %v2063_v2  ;;  %v829_v46 = vadd.f32 %v2252_v28, %v791_v26 }
 0x17e   : > { %1545 = vrsqrt.f32 %v686_v23  ;;  %v636_v38 = vmul.f32 0.03125, %v560_v30  ;;  %v651_v39 = vmul.f32 0.03125, %v605_v32  ;;  %v792_v42 = vmul.f32 %v2244_v54, %v754_v11 }
 0x17f   : > { %v1534_v20 = vpop.eup %1533  ;;  %1547 = vrsqrt.f32 %v667_v0  ;;  %v838_v36 = vpack.c.bf16 %v814_v15, %v813_v34  ;;  %v773_v40 = vmul.f32 %v2244_v54, %v735_v48 }
 0x180   : > { %v1536_v50 = vpop.eup %1535  ;;  %v668_v27 = vadd.f32 1e-05, %v636_v38  ;;  %v683_v52 = vadd.f32 1e-05, %v651_v39  ;;  %v830_v8 = vadd.f32 %v2252_v28, %v792_v42  ;;  %v736_v58 = vmul.f32 %v1534_v20, %v2066_v5 }
 0x181   : > { %v608_v24 = vpop.xlane.xlu1 %607  ;;  %v551_v62 = vpop.xlane.xlu0 %550  ;;  %v751_v2 = vmul.f32 %v1536_v50, %v2075_v55  ;;  %v1001_v5 = vsel %vm337_vm0, %v838_v36, 0  ;;  %v811_v0 = vadd.f32 %v2252_v28, %v773_v40 }
 0x182   : > { %1549 = vrsqrt.f32 %v668_v27  ;;  %v652_v3 = vmul.f32 0.03125, %v608_v24  ;;  %v633_v56 = vmul.f32 0.03125, %v551_v62  ;;  %v846_v10 = vpack.c.bf16 %v830_v8, %v829_v46 }
 0x183   : > { %v1538_v6 = vpop.eup %1537  ;;  %1551 = vrsqrt.f32 %v683_v52  ;;  %v789_v12 = vmul.f32 %v2244_v54, %v751_v2  ;;  %v774_v14 = vmul.f32 %v2244_v54, %v736_v58 }
 0x184   : > { %v1540_v18 = vpop.eup %1539  ;;  %v684_v60 = vadd.f32 1e-05, %v652_v3  ;;  %v665_v26 = vadd.f32 1e-05, %v633_v56  ;;  %1417 = vmatprep.subr.msk.bf16.mxu0 %vm337_vm0, %v846_v10  ;;  %1418 = vmatprep.subr.msk.bf16.mxu1 %vm337_vm0, %v846_v10  ;;  %v752_v55 = vmul.f32 %v1538_v6, %v2078_v9 }
 0x185   : > { %v554_v22 = vpop.xlane.xlu1 %553  ;;  %1374 = vmatpush3.bf16.xpose.msra.mxu0 %v1001_v5  ;;  %1409 = vmatpush3.bf16.xpose.msra.mxu1 %v1001_v5  ;;  %v599_v23 = vpop.xlane.xlu0 %598  ;;  %v812_v11 = vadd.f32 %v2252_v28, %v774_v14  ;;  %v733_v15 = vmul.f32 %v1540_v18, %v2087_v7  ;;  %v827_v38 = vadd.f32 %v2252_v28, %v789_v12 }
 0x186   : > { %1553 = vrsqrt.f32 %v684_v60  ;;  %v634_v30 = vmul.f32 0.03125, %v554_v22  ;;  %v649_v32 = vmul.f32 0.03125, %v599_v23  ;;  %v790_v34 = vmul.f32 %v2244_v54, %v752_v55 }
 0x187   : > { %v1542_v48 = vpop.eup %1541  ;;  %1555 = vrsqrt.f32 %v665_v26  ;;  %v837_v9 = vpack.c.bf16 %v812_v11, %v811_v0  ;;  %v771_v52 = vmul.f32 %v2244_v54, %v733_v15 }
 0x188   : > { %v1544_v39 = vpop.eup %1543  ;;  %v666_v42 = vadd.f32 1e-05, %v634_v30  ;;  %v681_v20 = vadd.f32 1e-05, %v649_v32  ;;  %v828_v46 = vadd.f32 %v2252_v28, %v790_v34  ;;  %v734_v36 = vmul.f32 %v1542_v48, %v2090_v13 }
 0x189   : > { %v602_v50 = vpop.xlane.xlu1 %601  ;;  %v545_v27 = vpop.xlane.xlu0 %544  ;;  %v749_v7 = vmul.f32 %v1544_v39, %v2099_v1  ;;  %v998_v13 = vsel %vm337_vm0, %v837_v9, 0  ;;  %v809_v14 = vadd.f32 %v2252_v28, %v771_v52 }
 0x18a   : > { %1557 = vrsqrt.f32 %v666_v42  ;;  %v650_v8 = vmul.f32 0.03125, %v602_v50  ;;  %v631_v58 = vmul.f32 0.03125, %v545_v27  ;;  %v845_v24 = vpack.c.bf16 %v828_v46, %v827_v38 }
 0x18b   : > { %v1546_v62 = vpop.eup %1545  ;;  %1559 = vrsqrt.f32 %v681_v20  ;;  %v787_v2 = vmul.f32 %v2244_v54, %v749_v7  ;;  %v772_v40 = vmul.f32 %v2244_v54, %v734_v36 }
 0x18c   : > { %v1548_v3 = vpop.eup %1547  ;;  %v682_v56 = vadd.f32 1e-05, %v650_v8  ;;  %v663_v10 = vadd.f32 1e-05, %v631_v58  ;;  %1419 = vmatprep.subr.msk.bf16.mxu0 %vm337_vm0, %v845_v24  ;;  %1420 = vmatprep.subr.msk.bf16.mxu1 %vm337_vm0, %v845_v24  ;;  %v750_v1 = vmul.f32 %v1546_v62, %v2102_v17 }
 0x18d   : > { %v548_v6 = vpop.xlane.xlu1 %547  ;;  %1376 = vmatpush3.bf16.xpose.msra.mxu0 %v998_v13  ;;  %1410 = vmatpush3.bf16.xpose.msra.mxu1 %v998_v13  ;;  %v593_v12 = vpop.xlane.xlu0 %592  ;;  %v810_v18 = vadd.f32 %v2252_v28, %v772_v40  ;;  %v731_v60 = vmul.f32 %v1548_v3, %v2111_v43  ;;  %v825_v23 = vadd.f32 %v2252_v28, %v787_v2 }
 0x18e   : > { %1561 = vrsqrt.f32 %v682_v56  ;;  %v632_v26 = vmul.f32 0.03125, %v548_v6  ;;  %v647_v5 = vmul.f32 0.03125, %v593_v12  ;;  %v788_v55 = vmul.f32 %v2244_v54, %v750_v1 }
 0x18f   : > { %v1550_v22 = vpop.eup %1549  ;;  %1563 = vrsqrt.f32 %v663_v10  ;;  %v836_v17 = vpack.c.bf16 %v810_v18, %v809_v14  ;;  %v769_v38 = vmul.f32 %v2244_v54, %v731_v60 }
 0x190   : > { %v1552_v0 = vpop.eup %1551  ;;  %v664_v11 = vadd.f32 1e-05, %v632_v26  ;;  %v679_v15 = vadd.f32 1e-05, %v647_v5  ;;  %v826_v30 = vadd.f32 %v2252_v28, %v788_v55  ;;  %v732_v32 = vmul.f32 %v1550_v22, %v2114_v21 }
 0x191   : > { %v596_v34 = vpop.xlane.xlu1 %595  ;;  %v539_v48 = vpop.xlane.xlu0 %538  ;;  %v747_v43 = vmul.f32 %v1552_v0, %v2123_v59  ;;  %v995_v21 = vsel %vm337_vm0, %v836_v17, 0  ;;  %v807_v58 = vadd.f32 %v2252_v28, %v769_v38 }
 0x192   : > { %1565 = vrsqrt.f32 %v664_v11  ;;  %v648_v9 = vmul.f32 0.03125, %v596_v34  ;;  %v629_v39 = vmul.f32 0.03125, %v539_v48  ;;  %v844_v42 = vpack.c.bf16 %v826_v30, %v825_v23 }
 0x193   : > { %v1554_v20 = vpop.eup %1553  ;;  %1567 = vrsqrt.f32 %v679_v15  ;;  %v785_v46 = vmul.f32 %v2244_v54, %v747_v43  ;;  %v770_v36 = vmul.f32 %v2244_v54, %v732_v32 }
 0x194   : > { %v1556_v50 = vpop.eup %1555  ;;  %v680_v27 = vadd.f32 1e-05, %v648_v9  ;;  %v661_v7 = vadd.f32 1e-05, %v629_v39  ;;  %1421 = vmatprep.subr.msk.bf16.mxu0 %vm337_vm0, %v844_v42  ;;  %1422 = vmatprep.subr.msk.bf16.mxu1 %vm337_vm0, %v844_v42  ;;  %v748_v59 = vmul.f32 %v1554_v20, %v2126_v25 }
 0x195   : > { %v542_v52 = vpop.xlane.xlu1 %541  ;;  %1378 = vmatpush3.bf16.xpose.msra.mxu0 %v995_v21  ;;  %1411 = vmatpush3.bf16.xpose.msra.mxu1 %v995_v21  ;;  %v587_v8 = vpop.xlane.xlu0 %586  ;;  %v808_v24 = vadd.f32 %v2252_v28, %v770_v36  ;;  %v729_v62 = vmul.f32 %v1556_v50, %v2135_v16  ;;  %v823_v10 = vadd.f32 %v2252_v28, %v785_v46 }
 0x196   : > { %1569 = vrsqrt.f32 %v680_v27  ;;  %v630_v2 = vmul.f32 0.03125, %v542_v52  ;;  %v645_v40 = vmul.f32 0.03125, %v587_v8  ;;  %v786_v3 = vmul.f32 %v2244_v54, %v748_v59 }
 0x197   : > { %v1558_v56 = vpop.eup %1557  ;;  %1571 = vrsqrt.f32 %v661_v7  ;;  %v835_v25 = vpack.c.bf16 %v808_v24, %v807_v58  ;;  %v767_v26 = vmul.f32 %v2244_v54, %v729_v62 }
 0x198   : > { %v1560_v13 = vpop.eup %1559  ;;  %v662_v1 = vadd.f32 1e-05, %v630_v2  ;;  %v677_v6 = vadd.f32 1e-05, %v645_v40  ;;  %v824_v12 = vadd.f32 %v2252_v28, %v786_v3  ;;  %v730_v14 = vmul.f32 %v1558_v56, %v2138_v29 }
 0x199   : > { %v590_v18 = vpop.xlane.xlu1 %589  ;;  %v533_v60 = vpop.xlane.xlu0 %532  ;;  %v745_v16 = vmul.f32 %v1560_v13, %v2147_v31  ;;  %v992_v29 = vsel %vm337_vm0, %v835_v25, 0  ;;  %v805_v48 = vadd.f32 %v2252_v28, %v767_v26 }
 0x19a   : > { %1573 = vrsqrt.f32 %v662_v1  ;;  %v646_v5 = vmul.f32 0.03125, %v590_v18  ;;  %v627_v55 = vmul.f32 0.03125, %v533_v60  ;;  %v843_v22 = vpack.c.bf16 %v824_v12, %v823_v10 }
 0x19b   : > { %v1562_v23 = vpop.eup %1561  ;;  %1575 = vrsqrt.f32 %v677_v6  ;;  %v783_v17 = vmul.f32 %v2244_v54, %v745_v16  ;;  %v768_v0 = vmul.f32 %v2244_v54, %v730_v14 }
 0x19c   : > { %v1564_v11 = vpop.eup %1563  ;;  %v678_v15 = vadd.f32 1e-05, %v646_v5  ;;  %v659_v30 = vadd.f32 1e-05, %v627_v55  ;;  %1423 = vmatprep.subr.msk.bf16.mxu0 %vm337_vm0, %v843_v22  ;;  %1424 = vmatprep.subr.msk.bf16.mxu1 %vm337_vm0, %v843_v22  ;;  %v746_v31 = vmul.f32 %v1562_v23, %v2150_v33 }
 0x19d   : > { %v536_v32 = vpop.xlane.xlu1 %535  ;;  %1380 = vmatpush3.bf16.xpose.msra.mxu0 %v992_v29  ;;  %1412 = vmatpush3.bf16.xpose.msra.mxu1 %v992_v29  ;;  %v581_v34 = vpop.xlane.xlu0 %580  ;;  %v806_v43 = vadd.f32 %v2252_v28, %v768_v0  ;;  %v727_v38 = vmul.f32 %v1564_v11, %v2159_v47  ;;  %v821_v46 = vadd.f32 %v2252_v28, %v783_v17 }
 0x19e   : > { %1577 = vrsqrt.f32 %v678_v15  ;;  %v628_v9 = vmul.f32 0.03125, %v536_v32  ;;  %v643_v39 = vmul.f32 0.03125, %v581_v34  ;;  %v784_v42 = vmul.f32 %v2244_v54, %v746_v31 }
 0x19f   : > { %v1566_v20 = vpop.eup %1565  ;;  %1579 = vrsqrt.f32 %v659_v30  ;;  %v834_v33 = vpack.c.bf16 %v806_v43, %v805_v48  ;;  %v765_v52 = vmul.f32 %v2244_v54, %v727_v38 }
 0x1a0   : > { %v1568_v36 = vpop.eup %1567  ;;  %v660_v50 = vadd.f32 1e-05, %v628_v9  ;;  %v675_v27 = vadd.f32 1e-05, %v643_v39  ;;  %v822_v7 = vadd.f32 %v2252_v28, %v784_v42  ;;  %v728_v21 = vmul.f32 %v1566_v20, %v2162_v37 }
 0x1a1   : > { %v584_v59 = vpop.xlane.xlu1 %583  ;;  %v743_v47 = vmul.f32 %v1568_v36, %v2171_v63  ;;  %v989_v2 = vsel %vm337_vm0, %v834_v33, 0  ;;  %v803_v25 = vadd.f32 %v2252_v28, %v765_v52 }
 0x1a2   : > { %1581 = vrsqrt.f32 %v660_v50  ;;  %v644_v8 = vmul.f32 0.03125, %v584_v59  ;;  %v842_v58 = vpack.c.bf16 %v822_v7, %v821_v46  ;;  %v766_v24 = vmul.f32 %v2244_v54, %v728_v21  ;;  %v1520_v7 = vld [vmem:[#allocation4 + $0x20] sm:$0xff]  }
 0x1a3   : > { %v1570_v62 = vpop.eup %1569  ;;  %1583 = vrsqrt.f32 %v675_v27  ;;  %v781_v63 = vmul.f32 %v2244_v54, %v743_v47  ;;  %v1519_v27 = vld [vmem:[#allocation4 + $0x8] sm:$0xff]  }
 0x1a4   : > { %v1572_v40 = vpop.eup %1571  ;;  %v676_v3 = vadd.f32 1e-05, %v644_v8  ;;  %1425 = vmatprep.subr.msk.bf16.mxu0 %vm337_vm0, %v842_v58  ;;  %1426 = vmatprep.subr.msk.bf16.mxu1 %vm337_vm0, %v842_v58  ;;  %v744_v37 = vmul.f32 %v1570_v62, %v2174_v41  ;;  %v804_v56 = vadd.f32 %v2252_v28, %v766_v24 }
 0x1a5   : > { %1382 = vmatpush3.bf16.xpose.msra.mxu0 %v989_v2  ;;  %1413 = vmatpush3.bf16.xpose.msra.mxu1 %v989_v2  ;;  %v725_v13 = vmul.f32 %v1572_v40, %v2183_v19  ;;  %v819_v12 = vadd.f32 %v2252_v28, %v781_v63  ;;  %v874_v8 = vpop.permute.xlu0 %873 }
 0x1a6   : > { %1585 = vrsqrt.f32 %v676_v3  ;;  %v782_v10 = vmul.f32 %v2244_v54, %v744_v37  ;;  %v833_v41 = vpack.c.bf16 %v804_v56, %v803_v25 }
 0x1a7   : > { %v1574_v1 = vpop.eup %1573  ;;  %v763_v26 = vmul.f32 %v2244_v54, %v725_v13 }
 0x1a8   : > { %v1576_v6 = vpop.eup %1575  ;;  %v820_v14 = vadd.f32 %v2252_v28, %v782_v10  ;;  %v726_v18 = vmul.f32 %v1574_v1, %v2186_v45  ;;  %v986_v19 = vsel %vm337_vm0, %v833_v41, 0 }
 0x1a9   : > { %v741_v60 = vmul.f32 %v1576_v6, %v2195_v35  ;;  %v801_v0 = vadd.f32 %v2252_v28, %v763_v26 }
 0x1aa   : > { %v841_v16 = vpack.c.bf16 %v820_v14, %v819_v12  ;;  %v764_v5 = vmul.f32 %v2244_v54, %v726_v18 }
 0x1ab   : > { %v1578_v55 = vpop.eup %1577  ;;  %v779_v17 = vmul.f32 %v2244_v54, %v741_v60 }
 0x1ac   : > { %v1580_v22 = vpop.eup %1579  ;;  %1427 = vmatprep.subr.msk.bf16.mxu0 %vm337_vm0, %v841_v16  ;;  %1428 = vmatprep.subr.msk.bf16.mxu1 %vm337_vm0, %v841_v16  ;;  %v742_v23 = vmul.f32 %v1578_v55, %v2198_v49  ;;  %v802_v45 = vadd.f32 %v2252_v28, %v764_v5 }
 0x1ad   : > { %1384 = vmatpush3.bf16.xpose.msra.mxu0 %v986_v19  ;;  %1414 = vmatpush3.bf16.xpose.msra.mxu1 %v986_v19  ;;  %v723_v11 = vmul.f32 %v1580_v22, %v2207_v51  ;;  %v817_v29 = vadd.f32 %v2252_v28, %v779_v17 }
 0x1ae   : > { %v780_v35 = vmul.f32 %v2244_v54, %v742_v23  ;;  %v832_v32 = vpack.c.bf16 %v802_v45, %v801_v0 }
 0x1af   : > { %v1582_v15 = vpop.eup %1581  ;;  %v761_v43 = vmul.f32 %v2244_v54, %v723_v11 }
 0x1b0   : > { %v1584_v30 = vpop.eup %1583  ;;  %v818_v31 = vadd.f32 %v2252_v28, %v780_v35  ;;  %v724_v49 = vmul.f32 %v1582_v15, %v2210_v53  ;;  %v983_v51 = vsel %vm337_vm0, %v832_v32, 0 }
 0x1b1   : > { %v739_v34 = vmul.f32 %v1584_v30, %v2219_v4  ;;  %v799_v20 = vadd.f32 %v2252_v28, %v761_v43 }
 0x1b2   : > { %v840_v48 = vpack.c.bf16 %v818_v31, %v817_v29  ;;  %v762_v38 = vmul.f32 %v2244_v54, %v724_v49  ;;  %v919_v31 = vpop.permute.xlu0 %918 }
 0x1b3   : > { %v1586_v9 = vpop.eup %1585  ;;  %v777_v42 = vmul.f32 %v2244_v54, %v739_v34 }
 0x1b4   : > { %1429 = vmatprep.subr.msk.bf16.mxu0 %vm337_vm0, %v840_v48  ;;  %1430 = vmatprep.subr.msk.bf16.mxu1 %vm337_vm0, %v840_v48  ;;  %v740_v39 = vmul.f32 %v1586_v9, %v2222_v57  ;;  %v800_v53 = vadd.f32 %v2252_v28, %v762_v38 }
 0x1b5   : > { %1386 = vmatpush3.bf16.xpose.msra.mxu0 %v983_v51  ;;  %1415 = vmatpush3.bf16.xpose.msra.mxu1 %v983_v51  ;;  %v815_v46 = vadd.f32 %v2252_v28, %v777_v42 }
 0x1b6   : > { %v778_v4 = vmul.f32 %v2244_v54, %v740_v39  ;;  %v831_v36 = vpack.c.bf16 %v800_v53, %v799_v20  ;;  %v1521_v54 = vld [vmem:[#allocation4 + $0x10] sm:$0xff]  }
 0x1b8   : > { %v816_v33 = vadd.f32 %v2252_v28, %v778_v4  ;;  %v980_v57 = vsel %vm337_vm0, %v831_v36, 0  ;;  %v1522_v28 = vld [vmem:[#allocation4 + $0x28] sm:$0xff]  }
 0x1ba   : > { %v839_v50 = vpack.c.bf16 %v816_v33, %v815_v46 }
 0x1bc   : > { %1431 = vmatprep.subr.msk.bf16.mxu0 %vm337_vm0, %v839_v50  ;;  %1432 = vmatprep.subr.msk.bf16.mxu1 %vm337_vm0, %v839_v50 }
 0x1bd   : > { %1388 = vmatpush3.bf16.xpose.msra.mxu0 %v980_v57  ;;  %1416 = vmatpush3.bf16.xpose.msra.mxu1 %v980_v57 }
 0x1c4   : > { %1390 = vmatmul.mubr.msk.bf16.vlgmr.msra.gmra.mxu0 %vm337_vm0, %v2232_v61  ;;  %1396 = vmatmul.mubr.msk.bf16.vlgmr.msra.gmra.mxu1 %vm337_vm0, %v2234_v44  ;;  %v879_v61 = vpop.permute.xlu1 %878 }
 0x1c5   : > { %1391 = vmatprep.mubr.msk.bf16.mxu0 %vm337_vm0, %v1519_v27  ;;  %1397 = vmatprep.mubr.msk.bf16.mxu1 %vm337_vm0, %v1520_v7 }
 0x1c8   : > { %v884_v44 = vpop.permute.xlu1 %883 }
 0x1cc   : > { %1392 = vmatmul.mubr.msk.bf16.gmra.mxu0 %vm337_vm0, %v1519_v27  ;;  %1398 = vmatmul.mubr.msk.bf16.gmra.mxu1 %vm337_vm0, %v1520_v7  ;;  %v889_v21 = vpop.permute.xlu1 %888  ;;  %v929_v7 = vpop.permute.xlu0 %928 }
 0x1cd   : > { %1393 = vmatprep.mubr.msk.bf16.mxu0 %vm337_vm0, %v1521_v54  ;;  %1399 = vmatprep.mubr.msk.bf16.mxu1 %vm337_vm0, %v1522_v28 }
 0x1d0   : > { %v2382_v59 = vpop.permute.xlu1 %893 }
 0x1d4   : > { %1394 = vmatmul.mubr.msk.bf16.gmra.mxu0 %vm337_vm0, %v1521_v54  ;;  %1400 = vmatmul.mubr.msk.bf16.gmra.mxu1 %vm337_vm0, %v1522_v28  ;;  %v2384_v47 = vpop.permute.xlu1 %898 }
 0x1d8   : > { %v904_v52 = vpop.permute.xlu1 %903 }
 0x1dc   : > { %v909_v40 = vpop.permute.xlu1 %908 }
 0x1e0   : > { %v914_v5 = vpop.permute.xlu1 %913 }
 0x1e4   : > { %v924_v39 = vpop.permute.xlu1 %923 }
 0x284   : > { %v1061_v58 = vpop.f32.mrf.mxu0  ;;  %v1091_v24 = vpop.f32.mrf.mxu1 }
 0x285   : > { %v1092_v3 = vadd.f32 %v1091_v24, %v904_v52  ;;  %v1062_v37 = vadd.f32 %v1061_v58, %v874_v8 }
 0x286   : > { %v1063_v62 = vpop.f32.mrf.mxu0  ;;  %v1093_v2 = vpop.f32.mrf.mxu1 }
 0x287   : > { %v1064_v63 = vadd.f32 %v1063_v62, %v874_v8  ;;  %v1094_v56 = vadd.f32 %v1093_v2, %v904_v52 }
 0x288   : > { %v1065_v10 = vpop.f32.mrf.mxu0  ;;  %v1095_v25 = vpop.f32.mrf.mxu1 }
 0x289   : > { %v1361_v13 = vpack.c.bf16 %v1064_v63, %v1062_v37  ;;  %v1367_v1 = vpack.c.bf16 %v1094_v56, %v1092_v3  ;;  %v1066_v14 = vadd.f32 %v1065_v10, %v879_v61  ;;  %v1096_v41 = vadd.f32 %v1095_v25, %v909_v40 }
 0x28a   : > { %v1067_v6 = vpop.f32.mrf.mxu0  ;;  %v1097_v12 = vpop.f32.mrf.mxu1 }
 0x28b   : > { %1192 = vst [vmem:[%s2391_s12] sm:$0xff] %v1361_v13  ;;  %1198 = vst [vmem:[%s2391_s12 + $0x30] sm:$0xff] %v1367_v1  ;;  %v1068_v18 = vadd.f32 %v1067_v6, %v879_v61  ;;  %v1098_v60 = vadd.f32 %v1097_v12, %v909_v40 }
 0x28c   : > { %v1071_v16 = vpop.f32.mrf.mxu0  ;;  %v1101_v26 = vpop.f32.mrf.mxu1 }
 0x28d   : > { %v1362_v55 = vpack.c.bf16 %v1068_v18, %v1066_v14  ;;  %v1368_v22 = vpack.c.bf16 %v1098_v60, %v1096_v41  ;;  %v1072_v17 = vadd.f32 %v1071_v16, %v884_v44  ;;  %v1102_v45 = vadd.f32 %v1101_v26, %v914_v5 }
 0x28e   : > { %v1073_v19 = vpop.f32.mrf.mxu0  ;;  %v1103_v23 = vpop.f32.mrf.mxu1 }
 0x28f   : > { %1193 = vst [vmem:[%s2391_s12 + $0x8] sm:$0xff] %v1362_v55  ;;  %1199 = vst [vmem:[%s2391_s12 + $0x38] sm:$0xff] %v1368_v22  ;;  %v1074_v35 = vadd.f32 %v1073_v19, %v884_v44  ;;  %v1104_v0 = vadd.f32 %v1103_v23, %v914_v5 }
 0x290   : > { %v1075_v11 = vpop.f32.mrf.mxu0  ;;  %v1105_v15 = vpop.f32.mrf.mxu1 }
 0x291   : > { %v1363_v30 = vpack.c.bf16 %v1074_v35, %v1072_v17  ;;  %v1369_v29 = vpack.c.bf16 %v1104_v0, %v1102_v45  ;;  %v1076_v34 = vadd.f32 %v1075_v11, %v889_v21  ;;  %v1106_v48 = vadd.f32 %v1105_v15, %v919_v31 }
 0x292   : > { %v1077_v32 = vpop.f32.mrf.mxu0  ;;  %v1107_v49 = vpop.f32.mrf.mxu1 }
 0x293   : > { %1194 = vst [vmem:[%s2391_s12 + $0x10] sm:$0xff] %v1363_v30  ;;  %1200 = vst [vmem:[%s2391_s12 + $0x40] sm:$0xff] %v1369_v29  ;;  %v1078_v43 = vadd.f32 %v1077_v32, %v889_v21  ;;  %v1108_v38 = vadd.f32 %v1107_v49, %v919_v31 }
 0x294   : > { %v1081_v9 = vpop.f32.mrf.mxu0  ;;  %v1111_v51 = vpop.f32.mrf.mxu1 }
 0x295   : > { %v1364_v42 = vpack.c.bf16 %v1078_v43, %v1076_v34  ;;  %v1370_v53 = vpack.c.bf16 %v1108_v38, %v1106_v48  ;;  %v1082_v46 = vadd.f32 %v1081_v9, %v2382_v59  ;;  %v1112_v33 = vadd.f32 %v1111_v51, %v924_v39 }
 0x296   : > { %v1083_v4 = vpop.f32.mrf.mxu0  ;;  %v1113_v20 = vpop.f32.mrf.mxu1 }
 0x297   : > { %1195 = vst [vmem:[%s2391_s12 + $0x18] sm:$0xff] %v1364_v42  ;;  %1201 = vst [vmem:[%s2391_s12 + $0x48] sm:$0xff] %v1370_v53  ;;  %v1084_v36 = vadd.f32 %v1083_v4, %v2382_v59  ;;  %v1114_v50 = vadd.f32 %v1113_v20, %v924_v39 }
 0x298   : > { %v1085_v57 = vpop.f32.mrf.mxu0  ;;  %v1115_v27 = vpop.f32.mrf.mxu1 }
 0x299   : > { %v1365_v54 = vpack.c.bf16 %v1084_v36, %v1082_v46  ;;  %v1371_v28 = vpack.c.bf16 %v1114_v50, %v1112_v33  ;;  %v1086_v21 = vadd.f32 %v1085_v57, %v2384_v47  ;;  %v1116_v52 = vadd.f32 %v1115_v27, %v929_v7 }
 0x29a   : > { %v1087_v61 = vpop.f32.mrf.mxu0  ;;  %v1117_v44 = vpop.f32.mrf.mxu1 }
 0x29b   : > { %1196 = vst [vmem:[%s2391_s12 + $0x20] sm:$0xff] %v1365_v54  ;;  %1202 = vst [vmem:[%s2391_s12 + $0x50] sm:$0xff] %v1371_v28  ;;  %v1088_v8 = vadd.f32 %v1087_v61, %v2384_v47  ;;  %v1118_v58 = vadd.f32 %v1117_v44, %v929_v7 }
 0x29d   : > { %v1366_v24 = vpack.c.bf16 %v1088_v8, %v1086_v21  ;;  %v1372_v59 = vpack.c.bf16 %v1118_v58, %v1116_v52 }
 0x29f   : > { %1197 = vst [vmem:[%s2391_s12 + $0x28] sm:$0xff] %v1366_v24  ;;  %1203 = vst [vmem:[%s2391_s12 + $0x58] sm:$0xff] %v1372_v59 }
 0x2a0 PF: > { %s19_s23 = sadd.s32 1, %s1721_s23   ;;  %s2441_s13 = smov %s2448_s18 }
 0x2a1   : > { %p16_p5 = scmp.ge.s32.totalorder %s19_s23, 4   ;;  %s2442_s18 = smov %s1705_s19 }
 0x2a2   : > { %s2443_s19 = smov %s1709_s20  ;;  %s2444_s20 = smov %s1849_s8 }
 0x2a3   : > { %s2445_s21 = smov %s1717_s22  ;;  %s2446_s22 = smov %s2441_s13 }
 0x2a4   :  { %18 = sbr.rel (!%p16_p5) target bundleno = 5 (0x5), region = 88 }
 0x2a9   :  { %1234 = vsyncpa [#allocation3], 1 }
 0x2aa   :  { %1236 = vsyncpa [#allocation3 + $0x1], 1 }
 0x2ab   :  { %1237 = vsyncpa [#allocation5], 1 }

// kernel: _lambda_.5
= control target key start
LH: loop header
LB: loop body
LE: loop exit
PB: predicated region body
PF: predicated region fallthrough
CT: control target
= control target key end

     0   :  { %s5319_s0 = inlined_call_operand.vmem [shape: bf16[2,32,256], index: 0, kind: input, shape index: {}]   ;;  %s5320_s1 = inlined_call_operand.vmem [shape: f32[2,256,32], index: 1, kind: input, shape index: {}]   ;;  %s5321_s2 = inlined_call_operand.vmem [shape: bf16[32,32], index: 2, kind: input, shape index: {}]   ;;  %s5322_s3 = inlined_call_operand.vmem [shape: f32[1,32], index: 3, kind: input, shape index: {}]   ;;  %s5323_s4 = inlined_call_operand.vmem [shape: f32[1,32], index: 4, kind: input, shape index: {}]   ;;  %s5324_s5 = inlined_call_operand.vmem [shape: f32[1,32], index: 5, kind: input, shape index: {}]   ;;  %s5325_s6 = inlined_call_operand.vmem [shape: bf16[32,128], index: 6, kind: input, shape index: {}]   ;;  %s5326_s7 = inlined_call_operand.vmem [shape: f32[1,128], index: 7, kind: input, shape index: {}]   ;;  %s5327_s8 = inlined_call_operand.vmem [shape: bf16[128,32], index: 8, kind: input, shape index: {}]   ;;  %s5328_s9 = inlined_call_operand.vmem [shape: f32[1,32], index: 9, kind: input, shape index: {}]   ;;  %s5329_s10 = inlined_call_operand.hbm [shape: f32[2,256,32], index: 10, kind: output, shape index: {}]  }
   0x1   :  { %5382 = sst [smem:[#allocation61_spill]] %s5319_s0 }
   0x2   :  { %15 = vsyncpa [#allocation3], 0 }
   0x3   :  { %17 = vsyncpa [#allocation3 + $0x1], 0  ;;  %s3473_s13 = smov 0   ;;  %s3475_s14 = smov 0  }
   0x4   :  { %s3477_s15 = smov 0   ;;  %s3479_s16 = smov 0  }
   0x5   :  { %s3481_s17 = smov 0   ;;  %s3483_s18 = smov 0  }
   0x6 LB: > { %s2811_s19 = sadd.s32 4294967295, %s3412_s18   ;;  %s2812_s20 = sadd.s32 4294967294, %s3412_s18   ;;  %s3412_s18 = sphi %s3483_s18, %s23_s18   ;;  %s3408_s17 = sphi %s3481_s17, %s5514_s17   ;;  %s3404_s16 = sphi %s3479_s16, %s5513_s16   ;;  %s3400_s15 = sphi %s3477_s15, %s5512_s15   ;;  %s3396_s14 = sphi %s3475_s14, %s5511_s14   ;;  %s3392_s13 = sphi %s3473_s13, %s5510_s13  }
   0x7   : > { %s35_s21 = sadd.s32 1, %s3408_s17  ;;  %s268_s22 = sadd.s32 1, %s3400_s15 }
   0x8   : > { %p37_p0 = scmp.ge.s32.totalorder %s35_s21, 2  ;;  %p278_p1 = scmp.ne.s32.totalorder %s3400_s15, %s3396_s14 }
   0x9   : > { %p279_p2 = scmp.eq.s32.totalorder %s2811_s19, 1  ;;  %p284_p3 = scmp.ne.s32.totalorder %s3396_s14, %s3392_s13 }
   0xa   : > { %s5516_s21 = smov (%p37_p0, %s35_s21), 0  ;;  %p285_p5 = scmp.eq.s32.totalorder %s2812_s20, 1 }
   0xb   : > { %p3513_p4 = por %p279_p2, %p278_p1  ;;  %s263_s24 = ssub.s32 %s3408_s17, %s5516_s21 }
   0xc   : > { %p2815_p6 = scmp.ge.s32.totalorder %s3412_s18, 1  ;;  %p266_p7 = scmp.eq.s32.totalorder %s263_s24, 0 }
   0xd   : > { %p3520_p8 = por %p285_p5, %p284_p3  ;;  %p353_p9 = scmp.lt.s32.totalorder %s3412_s18, 3 }
   0xe   : > { %s3526_s26 = scalar_select %p266_p7, %s3400_s15, %s268_s22  }
   0xf   : > { %p354_p10 = pnand %p2815_p6, %p353_p9 }
  0x11   : > { %357 = sbr.rel (%p354_p10) target bundleno = 1297 (0x511), region = 60 }
  0x16   : > { %p405_p11 = scmp.lt.s32.totalorder %s3404_s16, 1  ;;  %v3131_v0 = vld [vmem:[%s5321_s2 + $0x8] sm:$0xff]   ;;  %v3132_v1 = vld [vmem:[%s5321_s2] sm:$0xff]   ;;  %s5385_s0 = sld [smem:[#allocation61_spill]]  ;;  %vm505_vm0 = vcmask 261120  }
  0x17   : > { %2942 = vmatprep.subr.bf16.mxu0 %v3131_v0  ;;  %3062 = vmatprep.subr.bf16.mxu1 %v3131_v0  ;;  %v3562_v23 = vld [vmem:[%s5322_s3] ss:$0 sm:$0xff]  ;;  %s401_s11 = sand.u32 1, %s3396_s14  }
  0x18   : > { %s3533_s29 = scalar_select %p405_p11, %s3404_s16, 1  ;;  %2943 = vmatpush3.bf16.msra.mxu0 %v3131_v0  ;;  %3064 = vmatpush3.bf16.msra.mxu1 %v3131_v0 }
  0x19   : > { %2944 = vmatprep.subr.bf16.mxu0 %v3132_v1  ;;  %3063 = vmatprep.subr.bf16.mxu1 %v3132_v1  ;;  %s2816_s19 = sshll.u32 %s401_s11, 8 }
  0x1a   : > { %s2879_s12 = sshll.u32 %s3533_s29, 5  ;;  %s2880_s24 = sshll.u32 %s3533_s29, 8 }
  0x1b   : > { %s5136_s20 = scalar_lea.vmem [#allocation2], %s2816_s19  ;;  %s3415_s29 = smov [#allocation2]  }
  0x1c   : > { %s412_s22 = scalar_lea.vmem %s5385_s0, %s2879_s12  ;;  %2945 = vmatpush3.bf16.msra.mxu0 %v3132_v1  ;;  %3065 = vmatpush3.bf16.msra.mxu1 %v3132_v1  ;;  %s3567_s12 = scalar_lea.vmem %s5320_s1, %s2880_s24 }
  0x1d   : > { %v3125_v2 = vld [vmem:[%s412_s22] ss:$8 sps:$4 sm:$0xff]   ;;  %v3127_v3 = vld [vmem:[%s412_s22 + $0x10] ss:$8 sps:$4 sm:$0xff]   ;;  %v3129_v4 = vld [vmem:[%s412_s22 + $0x4] ss:$8 sps:$4 sm:$0xff]  }
  0x1e   : > { %461 = vxpose.xlu0.c.b16.start [1/2] (short) %v3125_v2, 128  ;;  %v3130_v5 = vld [vmem:[%s412_s22 + $0x14] ss:$8 sps:$4 sm:$0xff]   ;;  %477 = vxpose.xlu1.c.b16.start [1/2] (short) %v3129_v4, 128  ;;  %v715_v25 = vld [vmem:[%s3567_s12] sm:$0xff]  ;;  %v716_v34 = vld [vmem:[%s3567_s12 + $0x8] sm:$0xff]  ;;  %s2881_s22 = sshll.u32 %s3404_s16, 12  ;;  %s2714_s24 = sshll.u32 %s5136_s20, 4  ;;  %s5265_s24 = int_to_ptr.vmem [resolvable:$true] %s2714_s24 }
  0x1f   : > { %v717_v29 = vld [vmem:[%s3567_s12 + $0x10] sm:$0xff]  ;;  %v718_v40 = vld [vmem:[%s3567_s12 + $0x18] sm:$0xff]  ;;  %v719_v46 = vld [vmem:[%s3567_s12 + $0x20] sm:$0xff]  ;;  %s5263_s30 = scalar_lea.hbm %s5329_s10, %s2881_s22  ;;  %s5274_s16 = scalar_lea.sflag [#allocation3], %s401_s11 }
  0x20   : > { %v721_v49 = vld [vmem:[%s3567_s12 + $0x30] sm:$0xff]  ;;  %v720_v58 = vld [vmem:[%s3567_s12 + $0x28] sm:$0xff]  ;;  %v722_v0 = vld [vmem:[%s3567_s12 + $0x38] sm:$0xff]  ;;  %s3340_s19 = sshll.u32 %s3415_s29, 4  ;;  %s3341_s19 = int_to_ptr.vmem [resolvable:$false] %s3340_s19 }
  0x21   : > { %s3342_s22 = scalar_lea.vmem %s3341_s19, 8192  ;;  %p3343_p1 = scmp.lt.s32.totalorder %s5265_s24, %s3341_s19 }
  0x22   : > { %462 = vxpose.xlu0.c.b16.end [2/2] (short) %v3127_v3, 128  ;;  %478 = vxpose.xlu1.c.b16.end [2/2] (short) %v3130_v5, 128  ;;  %v723_v5 = vld [vmem:[%s3567_s12 + $0x40] sm:$0xff] }
  0x80   : > { %v469_v6 = vpop.trf.xlu0  ;;  %v485_v7 = vpop.trf.xlu1 }
  0x81   : > { %2946 = vmatprep.mubr.msk.bf16.mxu0 %vm505_vm0, %v469_v6  ;;  %2962 = vmatprep.mubr.msk.bf16.mxu1 %vm505_vm0, %v485_v7 }
  0x84   : > { %v470_v8 = vpop.trf.xlu0  ;;  %v486_v9 = vpop.trf.xlu1 }
  0x85   : > { %2947 = vmatmul.mubr.msk.bf16.vlgmr.msra.gmra.mxu0 %vm505_vm0, %v470_v8  ;;  %2963 = vmatmul.mubr.msk.bf16.vlgmr.msra.gmra.mxu1 %vm505_vm0, %v486_v9 }
  0x88   : > { %v471_v10 = vpop.trf.xlu0  ;;  %v487_v11 = vpop.trf.xlu1 }
  0x89   : > { %2950 = vmatprep.mubr.msk.bf16.mxu0 %vm505_vm0, %v471_v10  ;;  %2966 = vmatprep.mubr.msk.bf16.mxu1 %vm505_vm0, %v487_v11 }
  0x8c   : > { %v472_v12 = vpop.trf.xlu0  ;;  %v488_v13 = vpop.trf.xlu1 }
  0x8d   : > { %2951 = vmatmul.mubr.msk.bf16.gmra.mxu0 %vm505_vm0, %v472_v12  ;;  %2967 = vmatmul.mubr.msk.bf16.gmra.mxu1 %vm505_vm0, %v488_v13  ;;  %v725_v12 = vld [vmem:[%s3567_s12 + $0x50] sm:$0xff] }
  0x90   : > { %v473_v14 = vpop.trf.xlu0  ;;  %v489_v15 = vpop.trf.xlu1 }
  0x91   : > { %2954 = vmatprep.mubr.msk.bf16.mxu0 %vm505_vm0, %v473_v14  ;;  %2970 = vmatprep.mubr.msk.bf16.mxu1 %vm505_vm0, %v489_v15 }
  0x94   : > { %v474_v16 = vpop.trf.xlu0  ;;  %v490_v17 = vpop.trf.xlu1 }
  0x95   : > { %2955 = vmatmul.mubr.msk.bf16.gmra.mxu0 %vm505_vm0, %v474_v16  ;;  %2971 = vmatmul.mubr.msk.bf16.gmra.mxu1 %vm505_vm0, %v490_v17 }
  0x98   : > { %v475_v18 = vpop.trf.xlu0  ;;  %v491_v19 = vpop.trf.xlu1 }
  0x99   : > { %2958 = vmatprep.mubr.msk.bf16.mxu0 %vm505_vm0, %v475_v18  ;;  %2974 = vmatprep.mubr.msk.bf16.mxu1 %vm505_vm0, %v491_v19  ;;  %v724_v18 = vld [vmem:[%s3567_s12 + $0x48] sm:$0xff] }
  0x9c   : > { %v476_v20 = vpop.trf.xlu0  ;;  %v492_v21 = vpop.trf.xlu1 }
  0x9d   : > { %2959 = vmatmul.mubr.msk.bf16.gmra.mxu0 %vm505_vm0, %v476_v20  ;;  %2975 = vmatmul.mubr.msk.bf16.gmra.mxu1 %vm505_vm0, %v492_v21  ;;  %v726_v21 = vld [vmem:[%s3567_s12 + $0x58] sm:$0xff] }
 0x145   : > { %v2948_v22 = vpop.f32.mrf.mxu0  ;;  %v3570_v26 = vpop.f32.mrf.mxu1 }
 0x146   : > { %v597_v27 = vadd.f32 %v2948_v22, %v3562_v23 }
 0x147   : > { %v588_v24 = vpop.f32.mrf.mxu0  ;;  %v3575_v31 = vpop.f32.mrf.mxu1 }
 0x148   : > { %v589_v28 = vadd.f32 %v3562_v23, %v588_v24  ;;  %v3582_v36 = vadd.f32 %v717_v29, %v597_v27 }
 0x149   : > { %v2949_v30 = vpop.f32.mrf.mxu0  ;;  %v3580_v35 = vpop.f32.mrf.mxu1 }
 0x14a   : > { %v3577_v32 = vadd.f32 %v715_v25, %v589_v28  ;;  %5387 = vst [vmem:[#allocation6_spill] sm:$0xff] %v3582_v36  ;;  %v600_v37 = vadd.f32 %v2949_v30, %v3562_v23  ;;  %v787_v52 = vsel %vm505_vm0, %v3582_v36, 0.0 }
 0x14b   : > { %v591_v33 = vpop.f32.mrf.mxu0  ;;  %v3589_v42 = vpop.f32.mrf.mxu1 }
 0x14c   : > { %5386 = vst [vmem:[#allocation5_spill] sm:$0xff] %v3577_v32  ;;  %v592_v38 = vadd.f32 %v3562_v23, %v591_v33  ;;  %v781_v39 = vsel %vm505_vm0, %v3577_v32, 0.0  ;;  %v3597_v48 = vadd.f32 %v718_v40, %v600_v37  ;;  %v727_v37 = vld [vmem:[%s3567_s12 + $0x60] sm:$0xff] }
 0x14d   : > { %782 = vadd.xlane.f32.xlu0 %v781_v39  ;;  %v2952_v41 = vpop.f32.mrf.mxu0  ;;  %v3595_v47 = vpop.f32.mrf.mxu1  ;;  %v729_v39 = vld [vmem:[%s3567_s12 + $0x70] sm:$0xff] }
 0x14e   : > { %v3591_v43 = vadd.f32 %v716_v34, %v592_v38  ;;  %v613_v44 = vadd.f32 %v2952_v41, %v3562_v23  ;;  %5389 = vst [vmem:[#allocation8_spill] sm:$0xff] %v3597_v48  ;;  %v790_v62 = vsel %vm505_vm0, %v3597_v48, 0.0 }
 0x14f   : > { %v604_v45 = vpop.f32.mrf.mxu0  ;;  %v3605_v54 = vpop.f32.mrf.mxu1 }
 0x150   : > { %5388 = vst [vmem:[#allocation7_spill] sm:$0xff] %v3591_v43  ;;  %v605_v50 = vadd.f32 %v3562_v23, %v604_v45  ;;  %v784_v51 = vsel %vm505_vm0, %v3591_v43, 0.0  ;;  %v3609_v56 = vadd.f32 %v721_v49, %v613_v44 }
 0x151   : > { %785 = vadd.xlane.f32.xlu1 %v784_v51  ;;  %788 = vadd.xlane.f32.xlu0 %v787_v52  ;;  %v2953_v53 = vpop.f32.mrf.mxu0  ;;  %v3612_v59 = vpop.f32.mrf.mxu1  ;;  %v653_v51 = vadd.f32 %v3562_v23, %v3575_v31  ;;  %v730_v31 = vld [vmem:[%s3567_s12 + $0x78] sm:$0xff] }
 0x152   : > { %v3607_v55 = vadd.f32 %v719_v46, %v605_v50  ;;  %5391 = vst [vmem:[#allocation10_spill] sm:$0xff] %v3609_v56  ;;  %v616_v60 = vadd.f32 %v2953_v53, %v3562_v23  ;;  %v799_v6 = vsel %vm505_vm0, %v3609_v56, 0.0  ;;  %v728_v53 = vld [vmem:[%s3567_s12 + $0x68] sm:$0xff] }
 0x153   : > { %v607_v57 = vpop.f32.mrf.mxu0  ;;  %v3621_v2 = vpop.f32.mrf.mxu1 }
 0x154   : > { %5390 = vst [vmem:[#allocation9_spill] sm:$0xff] %v3607_v55  ;;  %v608_v61 = vadd.f32 %v3562_v23, %v607_v57  ;;  %v793_v63 = vsel %vm505_vm0, %v3607_v55, 0.0  ;;  %v3630_v8 = vadd.f32 %v722_v0, %v616_v60  ;;  %v746_v60 = vld [vmem:[%s3567_s12 + $0xf8] sm:$0xff] }
 0x155   : > { %791 = vadd.xlane.f32.xlu1 %v790_v62  ;;  %794 = vadd.xlane.f32.xlu0 %v793_v63  ;;  %v2956_v1 = vpop.f32.mrf.mxu0  ;;  %v3628_v7 = vpop.f32.mrf.mxu1 }
 0x156   : > { %v3623_v3 = vadd.f32 %v720_v58, %v608_v61  ;;  %5393 = vst [vmem:[#allocation12_spill] sm:$0xff] %v3630_v8  ;;  %v629_v9 = vadd.f32 %v2956_v1, %v3562_v23  ;;  %v802_v24 = vsel %vm505_vm0, %v3630_v8, 0.0  ;;  %v731_v61 = vld [vmem:[%s3567_s12 + $0x80] sm:$0xff] }
 0x157   : > { %v620_v4 = vpop.f32.mrf.mxu0  ;;  %v3637_v14 = vpop.f32.mrf.mxu1 }
 0x158   : > { %5392 = vst [vmem:[#allocation11_spill] sm:$0xff] %v3623_v3  ;;  %v621_v10 = vadd.f32 %v3562_v23, %v620_v4  ;;  %v796_v11 = vsel %vm505_vm0, %v3623_v3, 0.0  ;;  %v3645_v20 = vadd.f32 %v725_v12, %v629_v9  ;;  %v3694_v9 = vadd.f32 %v731_v61, %v653_v51  ;;  %v741_v61 = vld [vmem:[%s3567_s12 + $0xd0] sm:$0xff] }
 0x159   : > { %797 = vadd.xlane.f32.xlu1 %v796_v11  ;;  %800 = vadd.xlane.f32.xlu0 %v799_v6  ;;  %v2957_v13 = vpop.f32.mrf.mxu0  ;;  %v3643_v19 = vpop.f32.mrf.mxu1  ;;  %v661_v6 = vadd.f32 %v3570_v26, %v3562_v23  ;;  %v656_v12 = vadd.f32 %v3562_v23, %v3589_v42  ;;  %v669_v42 = vadd.f32 %v3562_v23, %v3605_v54 }
 0x15a   : > { %v3639_v15 = vadd.f32 %v723_v5, %v621_v10  ;;  %v632_v16 = vadd.f32 %v2957_v13, %v3562_v23  ;;  %5395 = vst [vmem:[#allocation14_spill] sm:$0xff] %v3645_v20  ;;  %v811_v44 = vsel %vm505_vm0, %v3645_v20, 0.0  ;;  %5402 = vst [vmem:[#allocation21_spill] sm:$0xff] %v3694_v9  ;;  %v733_v10 = vld [vmem:[%s3567_s12 + $0x90] sm:$0xff]  ;;  %v672_v54 = vadd.f32 %v3562_v23, %v3621_v2 }
 0x15b   : > { %v623_v17 = vpop.f32.mrf.mxu0  ;;  %v3653_v28 = vpop.f32.mrf.mxu1  ;;  %v3706_v26 = vadd.f32 %v733_v10, %v661_v6  ;;  %v685_v51 = vadd.f32 %v3562_v23, %v3637_v14 }
 0x15c   : > { %5394 = vst [vmem:[#allocation13_spill] sm:$0xff] %v3639_v15  ;;  %v624_v22 = vadd.f32 %v3562_v23, %v623_v17  ;;  %v805_v25 = vsel %vm505_vm0, %v3639_v15, 0.0  ;;  %v3657_v30 = vadd.f32 %v726_v21, %v632_v16  ;;  %v732_v17 = vld [vmem:[%s3567_s12 + $0x88] sm:$0xff]  ;;  %v734_v21 = vld [vmem:[%s3567_s12 + $0x98] sm:$0xff]  ;;  %v688_v14 = vadd.f32 %v3562_v23, %v3653_v28 }
 0x15d   : > { %803 = vadd.xlane.f32.xlu1 %v802_v24  ;;  %806 = vadd.xlane.f32.xlu0 %v805_v25  ;;  %v2960_v27 = vpop.f32.mrf.mxu0  ;;  %v3661_v38 = vpop.f32.mrf.mxu1  ;;  %5404 = vst [vmem:[#allocation23_spill] sm:$0xff] %v3706_v26  ;;  %v829_v25 = vsel %vm505_vm0, %v3694_v9, 0.0 }
 0x15e   : > { %v3655_v29 = vadd.f32 %v724_v18, %v624_v22  ;;  %5397 = vst [vmem:[#allocation16_spill] sm:$0xff] %v3657_v30  ;;  %v645_v33 = vadd.f32 %v2960_v27, %v3562_v23  ;;  %v814_v57 = vsel %vm505_vm0, %v3657_v30, 0.0  ;;  %v664_v18 = vadd.f32 %v3580_v35, %v3562_v23  ;;  %v735_v27 = vld [vmem:[%s3567_s12 + $0xa0] sm:$0xff] }
 0x15f   : > { %v636_v34 = vpop.f32.mrf.mxu0  ;;  %v3669_v46 = vpop.f32.mrf.mxu1  ;;  %v3711_v22 = vadd.f32 %v732_v17, %v656_v12  ;;  %v677_v35 = vadd.f32 %v3595_v47, %v3562_v23 }
 0x160   : > { %5396 = vst [vmem:[#allocation15_spill] sm:$0xff] %v3655_v29  ;;  %v637_v40 = vadd.f32 %v3562_v23, %v636_v34  ;;  %v808_v41 = vsel %vm505_vm0, %v3655_v29, 0.0  ;;  %v3673_v50 = vadd.f32 %v729_v39, %v645_v33  ;;  %v3720_v33 = vadd.f32 %v734_v21, %v664_v18  ;;  %v737_v34 = vld [vmem:[%s3567_s12 + $0xb0] sm:$0xff] }
 0x161   : > { %809 = vadd.xlane.f32.xlu1 %v808_v41  ;;  %812 = vadd.xlane.f32.xlu0 %v811_v44  ;;  %v2961_v45 = vpop.f32.mrf.mxu0  ;;  %v2977_v58 = vpop.f32.mrf.mxu1  ;;  %5405 = vst [vmem:[#allocation24_spill] sm:$0xff] %v3711_v22  ;;  %v832_v39 = vsel %vm505_vm0, %v3711_v22, 0.0  ;;  %v736_v41 = vld [vmem:[%s3567_s12 + $0xa8] sm:$0xff]  ;;  %v3734_v44 = vadd.f32 %v737_v34, %v677_v35  ;;  %v701_v10 = vadd.f32 %v3562_v23, %v3669_v46 }
 0x162   : > { %v3671_v49 = vadd.f32 %v727_v37, %v637_v40  ;;  %5399 = vst [vmem:[#allocation18_spill] sm:$0xff] %v3673_v50  ;;  %v648_v62 = vadd.f32 %v2961_v45, %v3562_v23  ;;  %v712_v1 = vadd.f32 %v2977_v58, %v3562_v23  ;;  %v823_v16 = vsel %vm505_vm0, %v3673_v50, 0.0  ;;  %5406 = vst [vmem:[#allocation25_spill] sm:$0xff] %v3720_v33 }
 0x163   : > { %v639_v52 = vpop.f32.mrf.mxu0  ;;  %v3725_v37 = vadd.f32 %v735_v27, %v669_v42  ;;  %v835_v40 = vsel %vm505_vm0, %v3706_v26, 0.0  ;;  %5408 = vst [vmem:[#allocation27_spill] sm:$0xff] %v3734_v44  ;;  %v838_v47 = vsel %vm505_vm0, %v3720_v33, 0.0  ;;  %v680_v45 = vadd.f32 %v3612_v59, %v3562_v23 }
 0x164   : > { %5398 = vst [vmem:[#allocation17_spill] sm:$0xff] %v3671_v49  ;;  %v640_v63 = vadd.f32 %v3562_v23, %v639_v52  ;;  %v817_v0 = vsel %vm505_vm0, %v3671_v49, 0.0  ;;  %v3690_v5 = vadd.f32 %v746_v60, %v712_v1  ;;  %v3697_v11 = vadd.f32 %v730_v31, %v648_v62  ;;  %v742_v31 = vld [vmem:[%s3567_s12 + $0xd8] sm:$0xff] }
 0x165   : > { %815 = vadd.xlane.f32.xlu1 %v814_v57  ;;  %818 = vadd.xlane.f32.xlu0 %v817_v0  ;;  %5407 = vst [vmem:[#allocation26_spill] sm:$0xff] %v3725_v37  ;;  %v3740_v2 = vadd.f32 %v736_v41, %v672_v54  ;;  %v841_v52 = vsel %vm505_vm0, %v3725_v37, 0.0  ;;  %v739_v57 = vld [vmem:[%s3567_s12 + $0xc0] sm:$0xff]  ;;  %v693_v58 = vadd.f32 %v3628_v7, %v3562_v23  ;;  %v847_v60 = vsel %vm505_vm0, %v3734_v44, 0.0  ;;  %v740_v0 = vld [vmem:[%s3567_s12 + $0xc8] sm:$0xff] }
 0x166   : > { %v3688_v4 = vadd.f32 %v728_v53, %v640_v63  ;;  %5401 = vst [vmem:[#allocation20_spill] sm:$0xff] %v3690_v5  ;;  %5403 = vst [vmem:[#allocation22_spill] sm:$0xff] %v3697_v11  ;;  %v826_v24 = vsel %vm505_vm0, %v3697_v11, 0.0  ;;  %v738_v53 = vld [vmem:[%s3567_s12 + $0xb8] sm:$0xff]  ;;  %v3755_v62 = vadd.f32 %v739_v57, %v685_v51  ;;  %v696_v7 = vadd.f32 %v3643_v19, %v3562_v23 }
 0x167   : > { %5409 = vst [vmem:[#allocation28_spill] sm:$0xff] %v3740_v2  ;;  %v3752_v59 = vadd.f32 %v738_v53, %v680_v45  ;;  %v844_v63 = vsel %vm505_vm0, %v3740_v2, 0.0  ;;  %v3762_v1 = vadd.f32 %v741_v61, %v693_v58  ;;  %v3767_v6 = vadd.f32 %v740_v0, %v688_v14 }
 0x168   : > { %5400 = vst [vmem:[#allocation19_spill] sm:$0xff] %v3688_v4  ;;  %v820_v13 = vsel %vm505_vm0, %v3688_v4, 0.0  ;;  %5411 = vst [vmem:[#allocation30_spill] sm:$0xff] %v3755_v62  ;;  %v853_v12 = vsel %vm505_vm0, %v3755_v62, 0.0  ;;  %v3776_v17 = vadd.f32 %v742_v31, %v696_v7  ;;  %v709_v18 = vadd.f32 %v3661_v38, %v3562_v23 }
 0x169   : > { %821 = vadd.xlane.f32.xlu1 %v820_v13  ;;  %824 = vadd.xlane.f32.xlu0 %v823_v16  ;;  %5410 = vst [vmem:[#allocation29_spill] sm:$0xff] %v3752_v59  ;;  %5412 = vst [vmem:[#allocation31_spill] sm:$0xff] %v3762_v1  ;;  %v850_v28 = vsel %vm505_vm0, %v3752_v59, 0.0  ;;  %v743_v13 = vld [vmem:[%s3567_s12 + $0xe0] sm:$0xff]  ;;  %v703_v16 = vpop.f32.mrf.mxu1  ;;  %v859_v19 = vsel %vm505_vm0, %v3762_v1, 0.0  ;;  %v856_v42 = vsel %vm505_vm0, %v3767_v6, 0.0 }
 0x16a   : > { %5413 = vst [vmem:[#allocation32_spill] sm:$0xff] %v3767_v6  ;;  %5414 = vst [vmem:[#allocation33_spill] sm:$0xff] %v3776_v17  ;;  %v3782_v21 = vadd.f32 %v743_v13, %v701_v10  ;;  %v704_v46 = vadd.f32 %v3562_v23, %v703_v16  ;;  %v862_v34 = vsel %vm505_vm0, %v3776_v17, 0.0 }
 0x16c   : > { %5415 = vst [vmem:[#allocation34_spill] sm:$0xff] %v3782_v21  ;;  %v865_v38 = vsel %vm505_vm0, %v3782_v21, 0.0 }
 0x16d   : > { %827 = vadd.xlane.f32.xlu1 %v826_v24  ;;  %830 = vadd.xlane.f32.xlu0 %v829_v25  ;;  %v745_v24 = vld [vmem:[%s3567_s12 + $0xf0] sm:$0xff]  ;;  %v744_v25 = vld [vmem:[%s3567_s12 + $0xe8] sm:$0xff]  ;;  %s3336_s12 = scalar_lea.vmem %s5265_s24, 4096 }
 0x16e   : > { %v3789_v27 = vadd.f32 %v745_v24, %v709_v18  ;;  %v3791_v35 = vadd.f32 %v744_v25, %v704_v46  ;;  %p3337_p12 = scmp.ne.s32.totalorder %s5265_s24, %s3336_s12  ;;  %p3344_p2 = scmp.lt.s32.totalorder %s3342_s22, %s3336_s12 }
 0x170   : > { %5416 = vst [vmem:[#allocation35_spill] sm:$0xff] %v3789_v27  ;;  %5417 = vst [vmem:[#allocation36_spill] sm:$0xff] %v3791_v35  ;;  %v868_v23 = vsel %vm505_vm0, %v3791_v35, 0.0  ;;  %v871_v54 = vsel %vm505_vm0, %v3789_v27, 0.0  ;;  %p3338_p13 = pnand %p3337_p12, %p3513_p4  ;;  %p3345_p3 = por %p3344_p2, %p3343_p1 }
 0x171   : > { %833 = vadd.xlane.f32.xlu1 %v832_v39  ;;  %836 = vadd.xlane.f32.xlu0 %v835_v40  ;;  %v874_v39 = vsel %vm505_vm0, %v3690_v5, 0.0 }
 0x172   : > { %p3339_p0 = pneg %p3338_p13 }
 0x174   : > { %p3346_p5 = pnand %p3345_p3, %p3339_p0 }
 0x175   : > { %839 = vadd.xlane.f32.xlu1 %v838_v47  ;;  %842 = vadd.xlane.f32.xlu0 %v841_v52 }
 0x179   : > { %845 = vadd.xlane.f32.xlu1 %v844_v63  ;;  %848 = vadd.xlane.f32.xlu0 %v847_v60 }
 0x17d   : > { %851 = vadd.xlane.f32.xlu1 %v850_v28  ;;  %854 = vadd.xlane.f32.xlu0 %v853_v12 }
 0x181   : > { %857 = vadd.xlane.f32.xlu1 %v856_v42  ;;  %860 = vadd.xlane.f32.xlu0 %v859_v19 }
 0x185   : > { %863 = vadd.xlane.f32.xlu1 %v862_v34  ;;  %866 = vadd.xlane.f32.xlu0 %v865_v38 }
 0x189   : > { %869 = vadd.xlane.f32.xlu1 %v868_v23  ;;  %872 = vadd.xlane.f32.xlu0 %v871_v54 }
 0x18d   : > { %875 = vadd.xlane.f32.xlu1 %v874_v39 }
 0x1d6   : > { %v783_v40 = vpop.xlane.xlu0 %782 }
 0x1d7   : > { %v878_v41 = vmul.f32 0.03125, %v783_v40 }
 0x1d9   : > { %v3804_v47 = vsub.f32 %v3577_v32, %v878_v41 }
 0x1da   : > { %v786_v45 = vpop.xlane.xlu1 %785  ;;  %v789_v51 = vpop.xlane.xlu0 %788 }
 0x1db   : > { %v879_v52 = vmul.f32 0.03125, %v786_v45  ;;  %v880_v53 = vmul.f32 0.03125, %v789_v51  ;;  %v942_v57 = vmul.f32 %v3804_v47, %v3804_v47 }
 0x1dd   : > { %v3809_v58 = vsub.f32 %v3591_v43, %v879_v52  ;;  %v3812_v60 = vsub.f32 %v3582_v36, %v880_v53  ;;  %v974_v61 = vsel %vm505_vm0, %v942_v57, 0.0 }
 0x1de   : > { %v792_v14 = vpop.xlane.xlu1 %791  ;;  %975 = vadd.xlane.f32.xlu0 %v974_v61  ;;  %v795_v63 = vpop.xlane.xlu0 %794 }
 0x1df   : > { %v881_v0 = vmul.f32 0.03125, %v792_v14  ;;  %v882_v7 = vmul.f32 0.03125, %v795_v63  ;;  %v943_v31 = vmul.f32 %v3809_v58, %v3809_v58  ;;  %v944_v10 = vmul.f32 %v3812_v60, %v3812_v60 }
 0x1e1   : > { %v3820_v28 = vsub.f32 %v3597_v48, %v881_v0  ;;  %v3823_v12 = vsub.f32 %v3607_v55, %v882_v7  ;;  %v977_v13 = vsel %vm505_vm0, %v943_v31, 0.0  ;;  %v980_v16 = vsel %vm505_vm0, %v944_v10, 0.0 }
 0x1e2   : > { %v798_v19 = vpop.xlane.xlu1 %797  ;;  %978 = vadd.xlane.f32.xlu1 %v977_v13  ;;  %981 = vadd.xlane.f32.xlu0 %v980_v16  ;;  %v801_v18 = vpop.xlane.xlu0 %800  ;;  %v3133_v16 = vld [vmem:[%s5325_s6 + $0x8] sm:$0xff]  }
 0x1e3   : > { %v883_v46 = vmul.f32 0.03125, %v798_v19  ;;  %v884_v42 = vmul.f32 0.03125, %v801_v18  ;;  %v945_v24 = vmul.f32 %v3820_v28, %v3820_v28  ;;  %v946_v25 = vmul.f32 %v3823_v12, %v3823_v12  ;;  %2978 = vmatprep.subr.bf16.mxu1 %v3133_v16 }
 0x1e4   : > { %2979 = vmatpush3.bf16.msra.mxu1 %v3133_v16 }
 0x1e5   : > { %v3832_v34 = vsub.f32 %v3623_v3, %v883_v46  ;;  %v3835_v38 = vsub.f32 %v3609_v56, %v884_v42  ;;  %v983_v23 = vsel %vm505_vm0, %v945_v24, 0.0  ;;  %v986_v54 = vsel %vm505_vm0, %v946_v25, 0.0 }
 0x1e6   : > { %v804_v39 = vpop.xlane.xlu1 %803  ;;  %984 = vadd.xlane.f32.xlu1 %v983_v23  ;;  %987 = vadd.xlane.f32.xlu0 %v986_v54  ;;  %v807_v40 = vpop.xlane.xlu0 %806 }
 0x1e7   : > { %v885_v41 = vmul.f32 0.03125, %v804_v39  ;;  %v886_v45 = vmul.f32 0.03125, %v807_v40  ;;  %v947_v51 = vmul.f32 %v3832_v34, %v3832_v34  ;;  %v948_v52 = vmul.f32 %v3835_v38, %v3835_v38 }
 0x1e9   : > { %v3844_v53 = vsub.f32 %v3630_v8, %v885_v41  ;;  %v3847_v57 = vsub.f32 %v3639_v15, %v886_v45  ;;  %v989_v61 = vsel %vm505_vm0, %v947_v51, 0.0  ;;  %v992_v14 = vsel %vm505_vm0, %v948_v52, 0.0 }
 0x1ea   : > { %v810_v63 = vpop.xlane.xlu1 %809  ;;  %990 = vadd.xlane.f32.xlu1 %v989_v61  ;;  %993 = vadd.xlane.f32.xlu0 %v992_v14  ;;  %v813_v0 = vpop.xlane.xlu0 %812  ;;  %v5419_v15 = vmov -1.0  }
 0x1eb   : > { %v887_v7 = vmul.f32 0.03125, %v810_v63  ;;  %v888_v31 = vmul.f32 0.03125, %v813_v0  ;;  %v949_v10 = vmul.f32 %v3844_v53, %v3844_v53  ;;  %v950_v13 = vmul.f32 %v3847_v57, %v3847_v57 }
 0x1ed   : > { %v3859_v19 = vsub.f32 %v3655_v29, %v887_v7  ;;  %v3862_v18 = vsub.f32 %v3645_v20, %v888_v31  ;;  %v995_v46 = vsel %vm505_vm0, %v949_v10, 0.0  ;;  %v998_v42 = vsel %vm505_vm0, %v950_v13, 0.0 }
 0x1ee   : > { %v816_v24 = vpop.xlane.xlu1 %815  ;;  %996 = vadd.xlane.f32.xlu1 %v995_v46  ;;  %999 = vadd.xlane.f32.xlu0 %v998_v42  ;;  %v819_v25 = vpop.xlane.xlu0 %818 }
 0x1ef   : > { %v889_v23 = vmul.f32 0.03125, %v816_v24  ;;  %v890_v54 = vmul.f32 0.03125, %v819_v25  ;;  %v951_v39 = vmul.f32 %v3859_v19, %v3859_v19  ;;  %v952_v40 = vmul.f32 %v3862_v18, %v3862_v18 }
 0x1f1   : > { %v3871_v41 = vsub.f32 %v3657_v30, %v889_v23  ;;  %v3874_v45 = vsub.f32 %v3671_v49, %v890_v54  ;;  %v1001_v51 = vsel %vm505_vm0, %v951_v39, 0.0  ;;  %v1004_v52 = vsel %vm505_vm0, %v952_v40, 0.0 }
 0x1f2   : > { %1002 = vadd.xlane.f32.xlu1 %v1001_v51  ;;  %v822_v61 = vpop.xlane.xlu1 %821  ;;  %1005 = vadd.xlane.f32.xlu0 %v1004_v52  ;;  %v825_v14 = vpop.xlane.xlu0 %824 }
 0x1f3   : > { %v891_v63 = vmul.f32 0.03125, %v822_v61  ;;  %v892_v0 = vmul.f32 0.03125, %v825_v14  ;;  %v953_v7 = vmul.f32 %v3871_v41, %v3871_v41  ;;  %v954_v31 = vmul.f32 %v3874_v45, %v3874_v45 }
 0x1f5   : > { %v3883_v10 = vsub.f32 %v3688_v4, %v891_v63  ;;  %v3886_v13 = vsub.f32 %v3673_v50, %v892_v0  ;;  %v1007_v16 = vsel %vm505_vm0, %v953_v7, 0.0  ;;  %v1010_v46 = vsel %vm505_vm0, %v954_v31, 0.0 }
 0x1f6   : > { %1008 = vadd.xlane.f32.xlu1 %v1007_v16  ;;  %v828_v42 = vpop.xlane.xlu1 %827  ;;  %1011 = vadd.xlane.f32.xlu0 %v1010_v46  ;;  %v831_v24 = vpop.xlane.xlu0 %830 }
 0x1f7   : > { %v893_v25 = vmul.f32 0.03125, %v828_v42  ;;  %v894_v23 = vmul.f32 0.03125, %v831_v24  ;;  %v955_v54 = vmul.f32 %v3883_v10, %v3883_v10  ;;  %v956_v39 = vmul.f32 %v3886_v13, %v3886_v13 }
 0x1f9   : > { %v3895_v40 = vsub.f32 %v3697_v11, %v893_v25  ;;  %v3898_v51 = vsub.f32 %v3694_v9, %v894_v23  ;;  %v1013_v52 = vsel %vm505_vm0, %v955_v54, 0.0  ;;  %v1016_v61 = vsel %vm505_vm0, %v956_v39, 0.0 }
 0x1fa   : > { %1014 = vadd.xlane.f32.xlu1 %v1013_v52  ;;  %v834_v14 = vpop.xlane.xlu1 %833  ;;  %1017 = vadd.xlane.f32.xlu0 %v1016_v61  ;;  %v837_v63 = vpop.xlane.xlu0 %836 }
 0x1fb   : > { %v895_v0 = vmul.f32 0.03125, %v834_v14  ;;  %v896_v7 = vmul.f32 0.03125, %v837_v63  ;;  %v957_v31 = vmul.f32 %v3895_v40, %v3895_v40  ;;  %v958_v16 = vmul.f32 %v3898_v51, %v3898_v51 }
 0x1fd   : > { %v3907_v46 = vsub.f32 %v3711_v22, %v895_v0  ;;  %v3910_v42 = vsub.f32 %v3706_v26, %v896_v7  ;;  %v1019_v24 = vsel %vm505_vm0, %v957_v31, 0.0  ;;  %v1022_v25 = vsel %vm505_vm0, %v958_v16, 0.0 }
 0x1fe   : > { %1020 = vadd.xlane.f32.xlu1 %v1019_v24  ;;  %v840_v23 = vpop.xlane.xlu1 %839  ;;  %1023 = vadd.xlane.f32.xlu0 %v1022_v25  ;;  %v843_v54 = vpop.xlane.xlu0 %842 }
 0x1ff   : > { %v897_v39 = vmul.f32 0.03125, %v840_v23  ;;  %v898_v52 = vmul.f32 0.03125, %v843_v54  ;;  %v959_v61 = vmul.f32 %v3907_v46, %v3907_v46  ;;  %v960_v14 = vmul.f32 %v3910_v42, %v3910_v42 }
 0x201   : > { %v3919_v63 = vsub.f32 %v3720_v33, %v897_v39  ;;  %v3922_v0 = vsub.f32 %v3725_v37, %v898_v52  ;;  %v1025_v7 = vsel %vm505_vm0, %v959_v61, 0.0  ;;  %v1028_v31 = vsel %vm505_vm0, %v960_v14, 0.0  ;;  %v3134_v52 = vld [vmem:[%s5325_s6] sm:$0xff]  }
 0x202   : > { %1026 = vadd.xlane.f32.xlu1 %v1025_v7  ;;  %v846_v16 = vpop.xlane.xlu1 %845  ;;  %1029 = vadd.xlane.f32.xlu0 %v1028_v31  ;;  %v849_v24 = vpop.xlane.xlu0 %848 }
 0x203   : > { %v899_v25 = vmul.f32 0.03125, %v846_v16  ;;  %v900_v23 = vmul.f32 0.03125, %v849_v24  ;;  %v961_v54 = vmul.f32 %v3919_v63, %v3919_v63  ;;  %v962_v39 = vmul.f32 %v3922_v0, %v3922_v0  ;;  %2980 = vmatprep.subr.bf16.mxu1 %v3134_v52 }
 0x204   : > { %2981 = vmatpush3.bf16.msra.mxu1 %v3134_v52 }
 0x205   : > { %v3934_v61 = vsub.f32 %v3740_v2, %v899_v25  ;;  %v3937_v14 = vsub.f32 %v3734_v44, %v900_v23  ;;  %v1031_v7 = vsel %vm505_vm0, %v961_v54, 0.0  ;;  %v1034_v31 = vsel %vm505_vm0, %v962_v39, 0.0 }
 0x206   : > { %1032 = vadd.xlane.f32.xlu1 %v1031_v7  ;;  %v852_v16 = vpop.xlane.xlu1 %851  ;;  %1035 = vadd.xlane.f32.xlu0 %v1034_v31  ;;  %v855_v24 = vpop.xlane.xlu0 %854 }
 0x207   : > { %v901_v37 = vmul.f32 0.03125, %v852_v16  ;;  %v902_v22 = vmul.f32 0.03125, %v855_v24  ;;  %v963_v33 = vmul.f32 %v3934_v61, %v3934_v61  ;;  %v964_v25 = vmul.f32 %v3937_v14, %v3937_v14 }
 0x209   : > { %v3946_v23 = vsub.f32 %v3752_v59, %v901_v37  ;;  %v3949_v54 = vsub.f32 %v3755_v62, %v902_v22  ;;  %v1037_v39 = vsel %vm505_vm0, %v963_v33, 0.0  ;;  %v1040_v7 = vsel %vm505_vm0, %v964_v25, 0.0 }
 0x20a   : > { %1038 = vadd.xlane.f32.xlu1 %v1037_v39  ;;  %v858_v31 = vpop.xlane.xlu1 %857  ;;  %1041 = vadd.xlane.f32.xlu0 %v1040_v7  ;;  %v861_v16 = vpop.xlane.xlu0 %860 }
 0x20b   : > { %v903_v24 = vmul.f32 0.03125, %v858_v31  ;;  %v904_v2 = vmul.f32 0.03125, %v861_v16  ;;  %v965_v44 = vmul.f32 %v3946_v23, %v3946_v23  ;;  %v966_v37 = vmul.f32 %v3949_v54, %v3949_v54 }
 0x20d   : > { %v3958_v52 = vsub.f32 %v3767_v6, %v903_v24  ;;  %v3961_v22 = vsub.f32 %v3762_v1, %v904_v2  ;;  %v1043_v33 = vsel %vm505_vm0, %v965_v44, 0.0  ;;  %v1046_v25 = vsel %vm505_vm0, %v966_v37, 0.0 }
 0x20e   : > { %1044 = vadd.xlane.f32.xlu1 %v1043_v33  ;;  %v864_v39 = vpop.xlane.xlu1 %863  ;;  %1047 = vadd.xlane.f32.xlu0 %v1046_v25  ;;  %v867_v7 = vpop.xlane.xlu0 %866 }
 0x20f   : > { %v905_v31 = vmul.f32 0.03125, %v864_v39  ;;  %v906_v16 = vmul.f32 0.03125, %v867_v7  ;;  %v967_v62 = vmul.f32 %v3958_v52, %v3958_v52  ;;  %v968_v24 = vmul.f32 %v3961_v22, %v3961_v22 }
 0x211   : > { %v3970_v6 = vsub.f32 %v3776_v17, %v905_v31  ;;  %v3973_v2 = vsub.f32 %v3782_v21, %v906_v16  ;;  %v1049_v44 = vsel %vm505_vm0, %v967_v62, 0.0  ;;  %v1052_v37 = vsel %vm505_vm0, %v968_v24, 0.0 }
 0x212   : > { %1050 = vadd.xlane.f32.xlu1 %v1049_v44  ;;  %v870_v33 = vpop.xlane.xlu1 %869  ;;  %1053 = vadd.xlane.f32.xlu0 %v1052_v37  ;;  %v873_v25 = vpop.xlane.xlu0 %872 }
 0x213   : > { %v907_v39 = vmul.f32 0.03125, %v870_v33  ;;  %v908_v7 = vmul.f32 0.03125, %v873_v25  ;;  %v969_v1 = vmul.f32 %v3970_v6, %v3970_v6  ;;  %v970_v31 = vmul.f32 %v3973_v2, %v3973_v2 }
 0x215   : > { %v3982_v17 = vsub.f32 %v3791_v35, %v907_v39  ;;  %v3985_v16 = vsub.f32 %v3789_v27, %v908_v7  ;;  %v1055_v62 = vsel %vm505_vm0, %v969_v1, 0.0  ;;  %v1058_v24 = vsel %vm505_vm0, %v970_v31, 0.0 }
 0x216   : > { %1056 = vadd.xlane.f32.xlu1 %v1055_v62  ;;  %v876_v44 = vpop.xlane.xlu1 %875  ;;  %1059 = vadd.xlane.f32.xlu0 %v1058_v24 }
 0x217   : > { %v909_v37 = vmul.f32 0.03125, %v876_v44  ;;  %v971_v33 = vmul.f32 %v3982_v17, %v3982_v17  ;;  %v972_v25 = vmul.f32 %v3985_v16, %v3985_v16 }
 0x219   : > { %v3994_v39 = vsub.f32 %v3690_v5, %v909_v37  ;;  %v1061_v7 = vsel %vm505_vm0, %v971_v33, 0.0  ;;  %v1064_v35 = vsel %vm505_vm0, %v972_v25, 0.0 }
 0x21a   : > { %1062 = vadd.xlane.f32.xlu1 %v1061_v7  ;;  %1065 = vadd.xlane.f32.xlu0 %v1064_v35 }
 0x21b   : > { %v973_v1 = vmul.f32 %v3994_v39, %v3994_v39 }
 0x21d   : > { %v1067_v31 = vsel %vm505_vm0, %v973_v1, 0.0 }
 0x21e   : > { %1068 = vadd.xlane.f32.xlu1 %v1067_v31 }
 0x267   : > { %v976_v62 = vpop.xlane.xlu0 %975 }
 0x268   : > { %v1070_v24 = vmul.f32 0.03125, %v976_v62 }
 0x26a   : > { %v1102_v44 = vadd.f32 1e-05, %v1070_v24 }
 0x26b   : > { %v979_v21 = vpop.xlane.xlu1 %978  ;;  %v982_v27 = vpop.xlane.xlu0 %981 }
 0x26c   : > { %3143 = vrsqrt.f32 %v1102_v44  ;;  %v1071_v37 = vmul.f32 0.03125, %v979_v21  ;;  %v1072_v5 = vmul.f32 0.03125, %v982_v27 }
 0x26e   : > { %v1103_v59 = vadd.f32 1e-05, %v1071_v37  ;;  %v1104_v33 = vadd.f32 1e-05, %v1072_v5 }
 0x26f   : > { %v985_v9 = vpop.xlane.xlu1 %984  ;;  %v988_v25 = vpop.xlane.xlu0 %987 }
 0x270   : > { %3145 = vrsqrt.f32 %v1103_v59  ;;  %v1073_v35 = vmul.f32 0.03125, %v985_v9  ;;  %v1074_v7 = vmul.f32 0.03125, %v988_v25 }
 0x271   : > { %3147 = vrsqrt.f32 %v1104_v33 }
 0x272   : > { %v1105_v26 = vadd.f32 1e-05, %v1073_v35  ;;  %v1106_v4 = vadd.f32 1e-05, %v1074_v7 }
 0x273   : > { %v991_v1 = vpop.xlane.xlu1 %990  ;;  %v994_v31 = vpop.xlane.xlu0 %993 }
 0x274   : > { %3149 = vrsqrt.f32 %v1105_v26  ;;  %v1075_v62 = vmul.f32 0.03125, %v991_v1  ;;  %v1076_v24 = vmul.f32 0.03125, %v994_v31  ;;  %v4005_v26 = vld [vmem:[%s5323_s4] ss:$0 sm:$0xff] }
 0x275   : > { %3151 = vrsqrt.f32 %v1106_v4 }
 0x276   : > { %v1107_v11 = vadd.f32 1e-05, %v1075_v62  ;;  %v1108_v44 = vadd.f32 1e-05, %v1076_v24 }
 0x277   : > { %v997_v21 = vpop.xlane.xlu1 %996  ;;  %v1000_v27 = vpop.xlane.xlu0 %999 }
 0x278   : > { %3153 = vrsqrt.f32 %v1107_v11  ;;  %v1077_v5 = vmul.f32 0.03125, %v997_v21  ;;  %v1078_v37 = vmul.f32 0.03125, %v1000_v27 }
 0x279   : > { %v3144_v49 = vpop.eup %3143  ;;  %3155 = vrsqrt.f32 %v1108_v44 }
 0x27a   : > { %v1109_v9 = vadd.f32 1e-05, %v1077_v5  ;;  %v1110_v59 = vadd.f32 1e-05, %v1078_v37  ;;  %v1166_v35 = vmul.f32 %v3144_v49, %v3804_v47  ;;  %v4013_v37 = vld [vmem:[%s5324_s5] ss:$0 sm:$0xff] }
 0x27b   : > { %v1003_v33 = vpop.xlane.xlu1 %1002  ;;  %v1006_v25 = vpop.xlane.xlu0 %1005 }
 0x27c   : > { %3157 = vrsqrt.f32 %v1109_v9  ;;  %v1079_v4 = vmul.f32 0.03125, %v1003_v33  ;;  %v1080_v7 = vmul.f32 0.03125, %v1006_v25  ;;  %v1204_v49 = vmul.f32 %v4005_v26, %v1166_v35 }
 0x27d   : > { %v3146_v1 = vpop.eup %3145  ;;  %3159 = vrsqrt.f32 %v1110_v59 }
 0x27e   : > { %v3148_v11 = vpop.eup %3147  ;;  %v1111_v31 = vadd.f32 1e-05, %v1079_v4  ;;  %v1112_v62 = vadd.f32 1e-05, %v1080_v7  ;;  %v1167_v24 = vmul.f32 %v3146_v1, %v3809_v58 }
 0x27f   : > { %v1168_v44 = vmul.f32 %v3148_v11, %v3812_v60  ;;  %v1009_v21 = vpop.xlane.xlu1 %1008  ;;  %v1012_v27 = vpop.xlane.xlu0 %1011  ;;  %v1242_v11 = vadd.f32 %v4013_v37, %v1204_v49 }
 0x280   : > { %3161 = vrsqrt.f32 %v1111_v31  ;;  %v1081_v47 = vmul.f32 0.03125, %v1009_v21  ;;  %v1082_v5 = vmul.f32 0.03125, %v1012_v27  ;;  %v1205_v9 = vmul.f32 %v4005_v26, %v1167_v24 }
 0x281   : > { %v3150_v59 = vpop.eup %3149  ;;  %v1206_v33 = vmul.f32 %v4005_v26, %v1168_v44  ;;  %3163 = vrsqrt.f32 %v1112_v62 }
 0x282   : > { %v3152_v58 = vpop.eup %3151  ;;  %v1169_v60 = vmul.f32 %v3150_v59, %v3820_v28  ;;  %v1113_v25 = vadd.f32 1e-05, %v1081_v47  ;;  %v1114_v4 = vadd.f32 1e-05, %v1082_v5  ;;  %v1243_v35 = vadd.f32 %v4013_v37, %v1205_v9 }
 0x283   : > { %v1015_v7 = vpop.xlane.xlu1 %1014  ;;  %v1018_v1 = vpop.xlane.xlu0 %1017  ;;  %v1170_v31 = vmul.f32 %v3152_v58, %v3823_v12  ;;  %v1244_v28 = vadd.f32 %v4013_v37, %v1206_v33 }
 0x284   : > { %v1207_v21 = vmul.f32 %v4005_v26, %v1169_v60  ;;  %3165 = vrsqrt.f32 %v1113_v25  ;;  %v1083_v24 = vmul.f32 0.03125, %v1015_v7  ;;  %v1084_v27 = vmul.f32 0.03125, %v1018_v1 }
 0x285   : > { %v3154_v44 = vpop.eup %3153  ;;  %3167 = vrsqrt.f32 %v1114_v4  ;;  %v1274_v62 = vpack.c.bf16 %v1243_v35, %v1242_v11  ;;  %v1208_v58 = vmul.f32 %v4005_v26, %v1170_v31 }
 0x286   : > { %v3156_v47 = vpop.eup %3155  ;;  %v1115_v5 = vadd.f32 1e-05, %v1083_v24  ;;  %v1116_v59 = vadd.f32 1e-05, %v1084_v27  ;;  %v1245_v9 = vadd.f32 %v4013_v37, %v1207_v21  ;;  %v1171_v50 = vmul.f32 %v3154_v44, %v3832_v34 }
 0x287   : > { %2982 = vmatprep.mubr.msk.bf16.mxu1 %vm505_vm0, %v1274_v62  ;;  %v1021_v12 = vpop.xlane.xlu1 %1020  ;;  %v1024_v49 = vpop.xlane.xlu0 %1023  ;;  %v1172_v60 = vmul.f32 %v3156_v47, %v3835_v38  ;;  %v1246_v38 = vadd.f32 %v4013_v37, %v1208_v58 }
 0x288   : > { %3169 = vrsqrt.f32 %v1115_v5  ;;  %v1085_v25 = vmul.f32 0.03125, %v1021_v12  ;;  %v1086_v4 = vmul.f32 0.03125, %v1024_v49  ;;  %v1275_v35 = vpack.c.bf16 %v1245_v9, %v1244_v28 }
 0x289   : > { %v3158_v33 = vpop.eup %3157  ;;  %3171 = vrsqrt.f32 %v1116_v59  ;;  %v1209_v7 = vmul.f32 %v4005_v26, %v1171_v50  ;;  %v1210_v1 = vmul.f32 %v4005_v26, %v1172_v60 }
 0x28a   : > { %v3160_v11 = vpop.eup %3159  ;;  %v1117_v34 = vadd.f32 1e-05, %v1085_v25  ;;  %v1118_v21 = vadd.f32 1e-05, %v1086_v4  ;;  %2983 = vmatmul.mubr.msk.bf16.vlgmr.msra.gmra.mxu1 %vm505_vm0, %v1275_v35  ;;  %v1173_v24 = vmul.f32 %v3158_v33, %v3844_v53 }
 0x28b   : > { %v1027_v31 = vpop.xlane.xlu1 %1026  ;;  %v1030_v27 = vpop.xlane.xlu0 %1029  ;;  %v1247_v44 = vadd.f32 %v4013_v37, %v1209_v7  ;;  %v1174_v62 = vmul.f32 %v3160_v11, %v3847_v57  ;;  %v1248_v9 = vadd.f32 %v4013_v37, %v1210_v1 }
 0x28c   : > { %3173 = vrsqrt.f32 %v1117_v34  ;;  %v1087_v28 = vmul.f32 0.03125, %v1027_v31  ;;  %v1088_v50 = vmul.f32 0.03125, %v1030_v27  ;;  %v1211_v47 = vmul.f32 %v4005_v26, %v1173_v24 }
 0x28d   : > { %v3162_v5 = vpop.eup %3161  ;;  %3175 = vrsqrt.f32 %v1118_v21  ;;  %v1276_v59 = vpack.c.bf16 %v1247_v44, %v1246_v38  ;;  %v1212_v4 = vmul.f32 %v4005_v26, %v1174_v62 }
 0x28e   : > { %v3164_v12 = vpop.eup %3163  ;;  %v1119_v53 = vadd.f32 1e-05, %v1087_v28  ;;  %v1120_v49 = vadd.f32 1e-05, %v1088_v50  ;;  %v1249_v60 = vadd.f32 %v4013_v37, %v1211_v47  ;;  %v1175_v58 = vmul.f32 %v3162_v5, %v3859_v19 }
 0x28f   : > { %2986 = vmatprep.mubr.msk.bf16.mxu1 %vm505_vm0, %v1276_v59  ;;  %v1033_v57 = vpop.xlane.xlu1 %1032  ;;  %v1036_v25 = vpop.xlane.xlu0 %1035  ;;  %v1176_v35 = vmul.f32 %v3164_v12, %v3862_v18  ;;  %v1250_v18 = vadd.f32 %v4013_v37, %v1212_v4 }
 0x290   : > { %3177 = vrsqrt.f32 %v1119_v53  ;;  %v1089_v33 = vmul.f32 0.03125, %v1033_v57  ;;  %v1090_v7 = vmul.f32 0.03125, %v1036_v25  ;;  %v1277_v11 = vpack.c.bf16 %v1249_v60, %v1248_v9 }
 0x291   : > { %v3166_v1 = vpop.eup %3165  ;;  %3179 = vrsqrt.f32 %v1120_v49  ;;  %v1213_v34 = vmul.f32 %v4005_v26, %v1175_v58  ;;  %v1214_v21 = vmul.f32 %v4005_v26, %v1176_v35 }
 0x292   : > { %v3168_v24 = vpop.eup %3167  ;;  %v1121_v19 = vadd.f32 1e-05, %v1089_v33  ;;  %v1122_v31 = vadd.f32 1e-05, %v1090_v7  ;;  %2987 = vmatmul.mubr.msk.bf16.gmra.mxu1 %vm505_vm0, %v1277_v11  ;;  %v1177_v27 = vmul.f32 %v3166_v1, %v3871_v41 }
 0x293   : > { %v1039_v38 = vpop.xlane.xlu1 %1038  ;;  %v1042_v44 = vpop.xlane.xlu0 %1041  ;;  %v1251_v62 = vadd.f32 %v4013_v37, %v1213_v34  ;;  %v1178_v28 = vmul.f32 %v3168_v24, %v3874_v45  ;;  %v1252_v12 = vadd.f32 %v4013_v37, %v1214_v21 }
 0x294   : > { %3181 = vrsqrt.f32 %v1121_v19  ;;  %v1091_v50 = vmul.f32 0.03125, %v1039_v38  ;;  %v1092_v47 = vmul.f32 0.03125, %v1042_v44  ;;  %v1215_v5 = vmul.f32 %v4005_v26, %v1177_v27 }
 0x295   : > { %v3170_v59 = vpop.eup %3169  ;;  %3183 = vrsqrt.f32 %v1122_v31  ;;  %v1278_v9 = vpack.c.bf16 %v1251_v62, %v1250_v18  ;;  %v1216_v25 = vmul.f32 %v4005_v26, %v1178_v28 }
 0x296   : > { %v3172_v53 = vpop.eup %3171  ;;  %v1123_v41 = vadd.f32 1e-05, %v1091_v50  ;;  %v1124_v49 = vadd.f32 1e-05, %v1092_v47  ;;  %v1253_v60 = vadd.f32 %v4013_v37, %v1215_v5  ;;  %v1179_v58 = vmul.f32 %v3170_v59, %v3883_v10 }
 0x297   : > { %2990 = vmatprep.mubr.msk.bf16.mxu1 %vm505_vm0, %v1278_v9  ;;  %v1045_v45 = vpop.xlane.xlu1 %1044  ;;  %v1048_v57 = vpop.xlane.xlu0 %1047  ;;  %v1180_v4 = vmul.f32 %v3172_v53, %v3886_v13  ;;  %v1254_v13 = vadd.f32 %v4013_v37, %v1216_v25 }
 0x298   : > { %3185 = vrsqrt.f32 %v1123_v41  ;;  %v1093_v35 = vmul.f32 0.03125, %v1045_v45  ;;  %v1094_v33 = vmul.f32 0.03125, %v1048_v57  ;;  %v1279_v7 = vpack.c.bf16 %v1253_v60, %v1252_v12 }
 0x299   : > { %v3174_v11 = vpop.eup %3173  ;;  %3187 = vrsqrt.f32 %v1124_v49  ;;  %v1217_v1 = vmul.f32 %v4005_v26, %v1179_v58  ;;  %v1218_v34 = vmul.f32 %v4005_v26, %v1180_v4 }
 0x29a   : > { %v3176_v21 = vpop.eup %3175  ;;  %v1125_v10 = vadd.f32 1e-05, %v1093_v35  ;;  %v1126_v24 = vadd.f32 1e-05, %v1094_v33  ;;  %2991 = vmatmul.mubr.msk.bf16.gmra.mxu1 %vm505_vm0, %v1279_v7  ;;  %v1181_v19 = vmul.f32 %v3174_v11, %v3895_v40 }
 0x29b   : > { %v1051_v31 = vpop.xlane.xlu1 %1050  ;;  %v1054_v27 = vpop.xlane.xlu0 %1053  ;;  %v1255_v38 = vadd.f32 %v4013_v37, %v1217_v1  ;;  %v1182_v44 = vmul.f32 %v3176_v21, %v3898_v51  ;;  %v1256_v5 = vadd.f32 %v4013_v37, %v1218_v34 }
 0x29c   : > { %3189 = vrsqrt.f32 %v1125_v10  ;;  %v1095_v18 = vmul.f32 0.03125, %v1051_v31  ;;  %v1096_v62 = vmul.f32 0.03125, %v1054_v27  ;;  %v1219_v28 = vmul.f32 %v4005_v26, %v1181_v19 }
 0x29d   : > { %v3178_v50 = vpop.eup %3177  ;;  %3191 = vrsqrt.f32 %v1126_v24  ;;  %v1280_v47 = vpack.c.bf16 %v1255_v38, %v1254_v13  ;;  %v1220_v49 = vmul.f32 %v4005_v26, %v1182_v44 }
 0x29e   : > { %v3180_v59 = vpop.eup %3179  ;;  %v1127_v40 = vadd.f32 1e-05, %v1095_v18  ;;  %v1128_v9 = vadd.f32 1e-05, %v1096_v62  ;;  %v1257_v12 = vadd.f32 %v4013_v37, %v1219_v28  ;;  %v1183_v53 = vmul.f32 %v3178_v50, %v3907_v46 }
 0x29f   : > { %2994 = vmatprep.mubr.msk.bf16.mxu1 %vm505_vm0, %v1280_v47  ;;  %v1057_v51 = vpop.xlane.xlu1 %1056  ;;  %v1060_v41 = vpop.xlane.xlu0 %1059  ;;  %v1184_v60 = vmul.f32 %v3180_v59, %v3910_v42  ;;  %v1258_v42 = vadd.f32 %v4013_v37, %v1220_v49 }
 0x2a0   : > { %3193 = vrsqrt.f32 %v1127_v40  ;;  %v1097_v58 = vmul.f32 0.03125, %v1057_v51  ;;  %v1098_v45 = vmul.f32 0.03125, %v1060_v41  ;;  %v1281_v57 = vpack.c.bf16 %v1257_v12, %v1256_v5 }
 0x2a1   : > { %v3182_v25 = vpop.eup %3181  ;;  %3195 = vrsqrt.f32 %v1128_v9  ;;  %v1221_v4 = vmul.f32 %v4005_v26, %v1183_v53  ;;  %v1222_v35 = vmul.f32 %v4005_v26, %v1184_v60 }
 0x2a2   : > { %v3184_v33 = vpop.eup %3183  ;;  %v1129_v46 = vadd.f32 1e-05, %v1097_v58  ;;  %v1130_v7 = vadd.f32 1e-05, %v1098_v45  ;;  %2995 = vmatmul.mubr.msk.bf16.gmra.mxu1 %vm505_vm0, %v1281_v57  ;;  %v1185_v11 = vmul.f32 %v3182_v25, %v3919_v63 }
 0x2a3   : > { %v1063_v1 = vpop.xlane.xlu1 %1062  ;;  %v1066_v34 = vpop.xlane.xlu0 %1065  ;;  %v1259_v21 = vadd.f32 %v4013_v37, %v1221_v4  ;;  %v1186_v10 = vmul.f32 %v3184_v33, %v3922_v0  ;;  %v1260_v38 = vadd.f32 %v4013_v37, %v1222_v35 }
 0x2a4   : > { %3197 = vrsqrt.f32 %v1129_v46  ;;  %v1099_v24 = vmul.f32 0.03125, %v1063_v1  ;;  %v1100_v19 = vmul.f32 0.03125, %v1066_v34  ;;  %v1223_v31 = vmul.f32 %v4005_v26, %v1185_v11 }
 0x2a5   : > { %v3186_v27 = vpop.eup %3185  ;;  %3199 = vrsqrt.f32 %v1130_v7  ;;  %v1282_v13 = vpack.c.bf16 %v1259_v21, %v1258_v42  ;;  %v1224_v63 = vmul.f32 %v4005_v26, %v1186_v10 }
 0x2a6   : > { %v3188_v44 = vpop.eup %3187  ;;  %v1131_v18 = vadd.f32 1e-05, %v1099_v24  ;;  %v1132_v62 = vadd.f32 1e-05, %v1100_v19  ;;  %v1261_v28 = vadd.f32 %v4013_v37, %v1223_v31  ;;  %v1187_v50 = vmul.f32 %v3186_v27, %v3934_v61 }
 0x2a7   : > { %2998 = vmatprep.mubr.msk.bf16.mxu1 %vm505_vm0, %v1282_v13  ;;  %v1069_v0 = vpop.xlane.xlu1 %1068  ;;  %v1188_v47 = vmul.f32 %v3188_v44, %v3937_v14  ;;  %v1262_v12 = vadd.f32 %v4013_v37, %v1224_v63 }
 0x2a8   : > { %3201 = vrsqrt.f32 %v1131_v18  ;;  %v1101_v5 = vmul.f32 0.03125, %v1069_v0  ;;  %v1283_v59 = vpack.c.bf16 %v1261_v28, %v1260_v38  ;;  %v1225_v40 = vmul.f32 %v4005_v26, %v1187_v50 }
 0x2a9   : > { %v3190_v9 = vpop.eup %3189  ;;  %3203 = vrsqrt.f32 %v1132_v62  ;;  %v1226_v49 = vmul.f32 %v4005_v26, %v1188_v47 }
 0x2aa   : > { %v3192_v53 = vpop.eup %3191  ;;  %v1133_v51 = vadd.f32 1e-05, %v1101_v5  ;;  %2999 = vmatmul.mubr.msk.bf16.gmra.mxu1 %vm505_vm0, %v1283_v59  ;;  %v1263_v61 = vadd.f32 %v4013_v37, %v1225_v40  ;;  %v1189_v41 = vmul.f32 %v3190_v9, %v3946_v23  ;;  %v3135_v59 = vld [vmem:[%s5327_s8 + $0x38] sm:$0xff]   ;;  %v4138_v40 = vld [vmem:[%s5326_s7] ss:$0 sm:$0xff] }
 0x2ab   : > { %v1190_v14 = vmul.f32 %v3192_v53, %v3949_v54  ;;  %v1264_v25 = vadd.f32 %v4013_v37, %v1226_v49  ;;  %3014 = vmatprep.subr.bf16.mxu0 %v3135_v59 }
 0x2ac   : > { %3205 = vrsqrt.f32 %v1133_v51  ;;  %v1284_v60 = vpack.c.bf16 %v1263_v61, %v1262_v12  ;;  %v1227_v58 = vmul.f32 %v4005_v26, %v1189_v41  ;;  %3015 = vmatpush3.bf16.msra.mxu0 %v3135_v59 }
 0x2ad   : > { %v3194_v45 = vpop.eup %3193  ;;  %v1228_v23 = vmul.f32 %v4005_v26, %v1190_v14 }
 0x2ae   : > { %v3196_v57 = vpop.eup %3195  ;;  %3002 = vmatprep.mubr.msk.bf16.mxu1 %vm505_vm0, %v1284_v60  ;;  %v1265_v4 = vadd.f32 %v4013_v37, %v1227_v58  ;;  %v1191_v35 = vmul.f32 %v3194_v45, %v3958_v52  ;;  %v3139_v60 = vld [vmem:[%s5327_s8 + $0x18] sm:$0xff]  }
 0x2af   : > { %v1192_v33 = vmul.f32 %v3196_v57, %v3961_v22  ;;  %v1266_v1 = vadd.f32 %v4013_v37, %v1228_v23 }
 0x2b0   : > { %v1285_v46 = vpack.c.bf16 %v1265_v4, %v1264_v25  ;;  %v1229_v54 = vmul.f32 %v4005_v26, %v1191_v35 }
 0x2b1   : > { %v3198_v7 = vpop.eup %3197  ;;  %v1230_v21 = vmul.f32 %v4005_v26, %v1192_v33 }
 0x2b2   : > { %v3200_v11 = vpop.eup %3199  ;;  %3003 = vmatmul.mubr.msk.bf16.gmra.mxu1 %vm505_vm0, %v1285_v46  ;;  %v1267_v34 = vadd.f32 %v4013_v37, %v1229_v54  ;;  %v1193_v42 = vmul.f32 %v3198_v7, %v3970_v6 }
 0x2b3   : > { %v1194_v52 = vmul.f32 %v3200_v11, %v3973_v2  ;;  %v1268_v31 = vadd.f32 %v4013_v37, %v1230_v21 }
 0x2b4   : > { %v1286_v10 = vpack.c.bf16 %v1267_v34, %v1266_v1  ;;  %v1231_v22 = vmul.f32 %v4005_v26, %v1193_v42 }
 0x2b5   : > { %v3202_v24 = vpop.eup %3201  ;;  %v1232_v38 = vmul.f32 %v4005_v26, %v1194_v52 }
 0x2b6   : > { %v3204_v19 = vpop.eup %3203  ;;  %3006 = vmatprep.mubr.msk.bf16.mxu1 %vm505_vm0, %v1286_v10  ;;  %v1269_v27 = vadd.f32 %v4013_v37, %v1231_v22  ;;  %v1195_v13 = vmul.f32 %v3202_v24, %v3982_v17  ;;  %v3140_v10 = vld [vmem:[%s5327_s8 + $0x10] sm:$0xff]  }
 0x2b7   : > { %v1196_v6 = vmul.f32 %v3204_v19, %v3985_v16  ;;  %v1270_v18 = vadd.f32 %v4013_v37, %v1232_v38 }
 0x2b8   : > { %v1287_v63 = vpack.c.bf16 %v1269_v27, %v1268_v31  ;;  %v1233_v2 = vmul.f32 %v4005_v26, %v1195_v13 }
 0x2b9   : > { %v3206_v44 = vpop.eup %3205  ;;  %v1234_v50 = vmul.f32 %v4005_v26, %v1196_v6 }
 0x2ba   : > { %3007 = vmatmul.mubr.msk.bf16.gmra.mxu1 %vm505_vm0, %v1287_v63  ;;  %v1271_v62 = vadd.f32 %v4013_v37, %v1233_v2  ;;  %v1197_v28 = vmul.f32 %v3206_v44, %v3994_v39  ;;  %v3136_v39 = vld [vmem:[%s5327_s8 + $0x30] sm:$0xff]  }
 0x2bb   : > { %v1272_v16 = vadd.f32 %v4013_v37, %v1234_v50  ;;  %3016 = vmatprep.subr.bf16.mxu0 %v3136_v39 }
 0x2bc   : > { %v1288_v0 = vpack.c.bf16 %v1271_v62, %v1270_v18  ;;  %v1235_v17 = vmul.f32 %v4005_v26, %v1197_v28  ;;  %3017 = vmatpush3.bf16.msra.mxu0 %v3136_v39  ;;  %v3137_v26 = vld [vmem:[%s5327_s8 + $0x28] sm:$0xff]  }
 0x2bd   : > { %3018 = vmatprep.subr.bf16.mxu0 %v3137_v26  ;;  %v3141_v39 = vld [vmem:[%s5327_s8 + $0x8] sm:$0xff]  }
 0x2be   : > { %3010 = vmatprep.mubr.msk.bf16.mxu1 %vm505_vm0, %v1288_v0  ;;  %v1273_v47 = vadd.f32 %v4013_v37, %v1235_v17  ;;  %v3138_v37 = vld [vmem:[%s5327_s8 + $0x20] sm:$0xff]  }
 0x2c0   : > { %v1289_v5 = vpack.c.bf16 %v1273_v47, %v1272_v16  ;;  %3019 = vmatpush3.bf16.msra.mxu0 %v3137_v26 }
 0x2c1   : > { %3020 = vmatprep.subr.bf16.mxu0 %v3138_v37 }
 0x2c2   : > { %3011 = vmatmul.mubr.msk.bf16.gmra.mxu1 %vm505_vm0, %v1289_v5 }
 0x2c4   : > { %3021 = vmatpush3.bf16.msra.mxu0 %v3138_v37 }
 0x2c5   : > { %3022 = vmatprep.subr.bf16.mxu0 %v3139_v60 }
 0x2c8   : > { %3023 = vmatpush3.bf16.msra.mxu0 %v3139_v60 }
 0x2c9   : > { %3024 = vmatprep.subr.bf16.mxu0 %v3140_v10 }
 0x2cc   : > { %3025 = vmatpush3.bf16.msra.mxu0 %v3140_v10 }
 0x2cd   : > { %3026 = vmatprep.subr.bf16.mxu0 %v3141_v39 }
 0x2d0   : > { %3027 = vmatpush3.bf16.msra.mxu0 %v3141_v39 }
 0x34a   : > { %v2984_v9 = vpop.f32.mrf.mxu1 }
 0x34b   : > { %v4141_v12 = vadd.f32 %v2984_v9, %v4138_v40 }
 0x34c   : > { %v1395_v53 = vpop.f32.mrf.mxu1 }
 0x34d   : > { %v4144_v51 = vmul.f32 0.70710677, %v4141_v12  ;;  %v4147_v41 = vadd.f32 %v4138_v40, %v1395_v53 }
 0x34e   : > { %v2985_v61 = vpop.f32.mrf.mxu1 }
 0x34f   : > { %v4150_v49 = vadd.f32 %v2985_v61, %v4138_v40  ;;  %v4156_v58 = vand.u32 2147483647, %v4144_v51  ;;  %v4165_v4 = vmul.f32 0.70710677, %v4147_v41  ;;  %vm1556_vm1 = vcmp.ge.f32.partialorder %v4144_v51, 0.0 }
 0x350   : > { %v1398_v14 = vpop.f32.mrf.mxu1 }
 0x351   : > { %v4159_v45 = vmul.f32 0.70710677, %v4150_v49  ;;  %v4162_v57 = vadd.f32 %v4138_v40, %v1398_v14  ;;  %v1652_v33 = vmul.f32 0.3275911, %v4156_v58  ;;  %v4175_v54 = vand.u32 2147483647, %v4165_v4 }
 0x352   : > { %v2988_v25 = vpop.f32.mrf.mxu1  ;;  %vm1554_vm2 = vcmp.ge.f32.partialorder %v4165_v4, 0.0 }
 0x353   : > { %v4168_v35 = vand.u32 2147483647, %v4159_v45  ;;  %v4172_v46 = vmul.f32 0.70710677, %v4162_v57  ;;  %v4178_v7 = vadd.f32 %v2988_v25, %v4138_v40  ;;  %v1684_v34 = vadd.f32 1.0, %v1652_v33 }
 0x354   : > { %v1411_v23 = vpop.f32.mrf.mxu1  ;;  %v1650_v22 = vmul.f32 0.3275911, %v4175_v54  ;;  %v2068_v25 = vsub.f32 0.0, %v4156_v58  ;;  %v2066_v33 = vsub.f32 0.0, %v4175_v54  ;;  %vm1557_vm3 = vcmp.ge.f32.partialorder %v4159_v45, 0.0 }
 0x355   : > { %v1653_v11 = vmul.f32 0.3275911, %v4168_v35  ;;  %v4182_v42 = vand.u32 2147483647, %v4172_v46  ;;  %v4185_v21 = vmul.f32 0.70710677, %v4178_v7  ;;  %v4188_v52 = vadd.f32 %v4138_v40, %v1411_v23 }
 0x356   : > { %v2989_v1 = vpop.f32.mrf.mxu1  ;;  %3207 = vrcp.f32 %v1684_v34  ;;  %v1682_v6 = vadd.f32 1.0, %v1650_v22  ;;  %v2100_v22 = vmul.f32 %v2068_v25, %v4156_v58  ;;  %v4261_v58 = vmul.f32 0.5, %v4147_v41 }
 0x357   : > { %v4195_v24 = vadd.f32 %v2989_v1, %v4138_v40  ;;  %v1685_v19 = vadd.f32 1.0, %v1653_v11  ;;  %v1651_v27 = vmul.f32 0.3275911, %v4182_v42  ;;  %v4199_v13 = vand.u32 2147483647, %v4185_v21 }
 0x358   : > { %v1414_v31 = vpop.f32.mrf.mxu1  ;;  %v4202_v38 = vmul.f32 0.70710677, %v4188_v52  ;;  %v4279_v45 = vmul.f32 0.5, %v4150_v49  ;;  %vm1555_vm4 = vcmp.ge.f32.partialorder %v4172_v46, 0.0  ;;  %vm1560_vm5 = vcmp.ge.f32.partialorder %v4185_v21, 0.0 }
 0x359   : > { %v4205_v63 = vmul.f32 0.70710677, %v4195_v24  ;;  %v4208_v2 = vadd.f32 %v4138_v40, %v1414_v31  ;;  %3209 = vrcp.f32 %v1685_v19  ;;  %v1683_v44 = vadd.f32 1.0, %v1651_v27 }
 0x35a   : > { %v1656_v18 = vmul.f32 0.3275911, %v4199_v13  ;;  %v4212_v62 = vand.u32 2147483647, %v4202_v38  ;;  %3211 = vrcp.f32 %v1682_v6  ;;  %v2992_v0 = vpop.f32.mrf.mxu1  ;;  %v2069_v31 = vsub.f32 0.0, %v4168_v35 }
 0x35b   : > { %v4215_v28 = vand.u32 2147483647, %v4205_v63  ;;  %v4218_v50 = vmul.f32 0.70710677, %v4208_v2  ;;  %3213 = vrcp.f32 %v1683_v44  ;;  %v4226_v59 = vadd.f32 %v2992_v0, %v4138_v40 }
 0x35c   : > { %v1688_v17 = vadd.f32 1.0, %v1656_v18  ;;  %v1654_v16 = vmul.f32 0.3275911, %v4212_v62  ;;  %v2098_v44 = vmul.f32 %v2066_v33, %v4175_v54  ;;  %v4258_v18 = vmul.f32 0.5, %v4141_v12  ;;  %v1427_v25 = vpop.f32.mrf.mxu1 }
 0x35d   : > { %v1657_v47 = vmul.f32 0.3275911, %v4215_v28  ;;  %v4223_v5 = vand.u32 2147483647, %v4218_v50  ;;  %v4234_v9 = vmul.f32 0.70710677, %v4226_v59  ;;  %v4295_v46 = vadd.f32 %v4138_v40, %v1427_v25 }
 0x35e   : > { %3215 = vrcp.f32 %v1688_v17  ;;  %v1686_v37 = vadd.f32 1.0, %v1654_v16  ;;  %v2067_v17 = vsub.f32 0.0, %v4182_v42  ;;  %v5350_v54 = vmov -1.0  }
 0x35f   : > { %v1689_v53 = vadd.f32 1.0, %v1657_v47  ;;  %v1655_v61 = vmul.f32 0.3275911, %v4223_v5  ;;  %v4242_v23 = vand.u32 2147483647, %v4234_v9  ;;  %v4272_v12 = vsel %vm1556_vm1, 1.0, %v5350_v54 }
 0x360   : > { %3217 = vrcp.f32 %v1686_v37  ;;  %v2134_v47 = vmul.f32 1.442695, %v2100_v22  ;;  %v4275_v41 = vsel %vm1554_vm2, 1.0, %v5350_v54  ;;  %v2101_v37 = vmul.f32 %v2069_v31, %v4168_v35 }
 0x361   : > { %3219 = vrcp.f32 %v1689_v53  ;;  %v1687_v11 = vadd.f32 1.0, %v1655_v61  ;;  %v1660_v27 = vmul.f32 0.3275911, %v4242_v23  ;;  %v4283_v33 = vsel %vm1557_vm3, 1.0, %v5350_v54 }
 0x362   : > { %v2136_v49 = vmul.f32 1.442695, %v2101_v37  ;;  %v4292_v31 = vsel %vm1555_vm4, 1.0, %v5350_v54  ;;  %vm1558_vm6 = vcmp.ge.f32.partialorder %v4202_v38, 0.0  ;;  %v4324_v38 = vsel %vm1560_vm5, 1.0, %v5350_v54 }
 0x363   : > { %v4231_v26 = vpop.eup %3207  ;;  %3221 = vrcp.f32 %v1687_v11  ;;  %v1692_v53 = vadd.f32 1.0, %v1660_v27  ;;  %v2099_v11 = vmul.f32 %v2067_v17, %v4182_v42  ;;  %vm1561_vm7 = vcmp.ge.f32.partialorder %v4205_v63, 0.0 }
 0x364   : > { %v1780_v60 = vmul.f32 1.0614054, %v4231_v26  ;;  %3223 = vpow2.f32 %v2134_v47  ;;  %v4354_v20 = vsel %vm1561_vm7, 1.0, %v5419_v15  ;;  %vm1559_vm8 = vcmp.ge.f32.partialorder %v4218_v50, 0.0 }
 0x365   : > { %3225 = vrcp.f32 %v1692_v53  ;;  %v2132_v17 = vmul.f32 1.442695, %v2099_v11  ;;  %vm1564_vm9 = vcmp.ge.f32.partialorder %v4234_v9, 0.0 }
 0x366   : > { %v4237_v14 = vpop.eup %3209  ;;  %v1812_v10 = vadd.f32 -1.4531521, %v1780_v60  ;;  %v2130_v60 = vmul.f32 1.442695, %v2098_v44 }
 0x367   : > { %v4245_v1 = vpop.eup %3211  ;;  %v1781_v34 = vmul.f32 1.0614054, %v4237_v14 }
 0x368   : > { %v4249_v19 = vpop.eup %3213  ;;  %v1778_v6 = vmul.f32 1.0614054, %v4245_v1  ;;  %v1844_v16 = vmul.f32 %v4231_v26, %v1812_v10  ;;  %3227 = vpow2.f32 %v2130_v60  ;;  %v4319_v60 = vmul.f32 0.70710677, %v4295_v46 }
 0x369   : > { %v1813_v0 = vadd.f32 -1.4531521, %v1781_v34  ;;  %v1779_v4 = vmul.f32 1.0614054, %v4249_v19  ;;  %v4288_v34 = vmul.f32 0.5, %v4162_v57  ;;  %v4302_v57 = vmul.f32 0.5, %v4178_v7 }
 0x36a   : > { %v1810_v61 = vadd.f32 -1.4531521, %v1778_v6  ;;  %v1876_v35 = vadd.f32 1.4214138, %v1844_v16  ;;  %v3142_v6 = vld [vmem:[%s5327_s8] sm:$0xff]   ;;  %v2072_v16 = vsub.f32 0.0, %v4199_v13  ;;  %3229 = vpow2.f32 %v2136_v49 }
 0x36b   : > { %v4267_v39 = vpop.eup %3215  ;;  %v1845_v51 = vmul.f32 %v4237_v14, %v1813_v0  ;;  %v1811_v10 = vadd.f32 -1.4531521, %v1779_v4  ;;  %v4314_v7 = vmul.f32 0.5, %v4188_v52  ;;  %3028 = vmatprep.subr.bf16.mxu0 %v3142_v6  ;;  %3231 = vpow2.f32 %v2132_v17 }
 0x36c   : > { %v1784_v22 = vmul.f32 1.0614054, %v4267_v39  ;;  %v1842_v42 = vmul.f32 %v4245_v1, %v1810_v61  ;;  %v1908_v47 = vmul.f32 %v4231_v26, %v1876_v35  ;;  %v2070_v61 = vsub.f32 0.0, %v4212_v62  ;;  %3029 = vmatpush3.bf16.msra.mxu0 %v3142_v6 }
 0x36d   : > { %v4297_v27 = vpop.eup %3217  ;;  %v1877_v0 = vadd.f32 1.4214138, %v1845_v51  ;;  %v1843_v4 = vmul.f32 %v4249_v19, %v1811_v10  ;;  %v4327_v51 = vsel %vm1558_vm6, 1.0, %v5350_v54  ;;  %v2104_v10 = vmul.f32 %v2072_v16, %v4199_v13  ;;  %v2993_v54 = vpop.f32.mrf.mxu1 }
 0x36e   : > { %v4307_v44 = vpop.eup %3219  ;;  %v1816_v37 = vadd.f32 -1.4531521, %v1784_v22  ;;  %v1782_v53 = vmul.f32 1.0614054, %v4297_v27  ;;  %v1874_v25 = vadd.f32 1.4214138, %v1842_v42  ;;  %v2102_v30 = vmul.f32 %v2070_v61, %v4212_v62 }
 0x36f   : > { %v1785_v52 = vmul.f32 1.0614054, %v4307_v44  ;;  %v1909_v35 = vmul.f32 %v4237_v14, %v1877_v0  ;;  %v2073_v22 = vsub.f32 0.0, %v4215_v28  ;;  %v1940_v49 = vadd.f32 -0.28449672, %v1908_v47 }
 0x370   : > { %v4330_v11 = vpop.eup %3221  ;;  %v1875_v42 = vadd.f32 1.4214138, %v1843_v4  ;;  %v1848_v21 = vmul.f32 %v4267_v39, %v1816_v37  ;;  %v4337_v6 = vmul.f32 0.5, %v4195_v24  ;;  %v1814_v29 = vadd.f32 -1.4531521, %v1782_v53 }
 0x371   : > { %v4342_v0 = vand.u32 2147483647, %v4319_v60  ;;  %v1906_v13 = vmul.f32 %v4245_v1, %v1874_v25  ;;  %v1817_v17 = vadd.f32 -1.4531521, %v1785_v52  ;;  %v1783_v16 = vmul.f32 1.0614054, %v4330_v11  ;;  %v1430_v25 = vpop.f32.mrf.mxu1  ;;  %v3224_v52 = vpop.eup %3223 }
 0x372   : > { %v4347_v47 = vmul.f32 0.5, %v4208_v2  ;;  %v1941_v4 = vadd.f32 -0.28449672, %v1909_v35  ;;  %v2142_v24 = vmul.f32 1.442695, %v2104_v10  ;;  %v2105_v37 = vmul.f32 %v2073_v22, %v4215_v28  ;;  %v4361_v28 = vpop.eup %3225 }
 0x373   : > { %v2071_v53 = vsub.f32 0.0, %v4223_v5  ;;  %v1972_v62 = vmul.f32 %v4231_v26, %v1940_v49  ;;  %v1907_v63 = vmul.f32 %v4249_v19, %v1875_v42  ;;  %v1880_v61 = vadd.f32 1.4214138, %v1848_v21  ;;  %v2996_v32 = vpop.f32.mrf.mxu1 }
 0x374   : > { %5418 = vst [vmem:[#allocation37_spill] sm:$0xff] %v4347_v47  ;;  %v1846_v3 = vmul.f32 %v4297_v27, %v1814_v29  ;;  %v2138_v2 = vmul.f32 1.442695, %v2102_v30  ;;  %v1658_v35 = vmul.f32 0.3275911, %v4342_v0  ;;  %v4359_v10 = vadd.f32 %v2993_v54, %v4138_v40 }
 0x375   : > { %v1938_v22 = vadd.f32 -0.28449672, %v1906_v13  ;;  %v1849_v49 = vmul.f32 %v4307_v44, %v1817_v17  ;;  %v1815_v42 = vadd.f32 -1.4531521, %v1783_v16  ;;  %v4365_v21 = vpop.eup %3227  ;;  %v1973_v8 = vmul.f32 %v4237_v14, %v1941_v4  ;;  %v1443_v50 = vpop.f32.mrf.mxu1 }
 0x376   : > { %v2144_v55 = vmul.f32 1.442695, %v2105_v37  ;;  %v2103_v29 = vmul.f32 %v2071_v53, %v4223_v5  ;;  %v4370_v30 = vadd.f32 %v4138_v40, %v1430_v25  ;;  %v2004_v54 = vadd.f32 0.2548296, %v1972_v62 }
 0x377   : > { %v1939_v56 = vadd.f32 -0.28449672, %v1907_v63  ;;  %v1912_v43 = vmul.f32 %v4267_v39, %v1880_v61  ;;  %v4374_v13 = vmul.f32 0.70710677, %v4359_v10  ;;  %3233 = vpow2.f32 %v2142_v24  ;;  %v3230_v4 = vpop.eup %3229 }
 0x378   : > { %v1878_v17 = vadd.f32 1.4214138, %v1846_v3  ;;  %v1788_v16 = vmul.f32 1.0614054, %v4361_v28  ;;  %v1690_v48 = vadd.f32 1.0, %v1658_v35  ;;  %v1970_v37 = vmul.f32 %v4245_v1, %v1938_v22  ;;  %v3232_v24 = vpop.eup %3231 }
 0x379   : > { %3235 = vpow2.f32 %v2138_v2  ;;  %v1881_v5 = vadd.f32 1.4214138, %v1849_v49  ;;  %v1847_v53 = vmul.f32 %v4330_v11, %v1815_v42  ;;  %v2005_v62 = vadd.f32 0.2548296, %v1973_v8 }
 0x37a   : > { %3237 = vpow2.f32 %v2144_v55  ;;  %v4382_v63 = vsel %vm1559_vm8, 1.0, %v5419_v15  ;;  %v4385_v3 = vmul.f32 0.70710677, %v4370_v30  ;;  %v1971_v61 = vmul.f32 %v4249_v19, %v1939_v56 }
 0x37b   : > { %v1944_v25 = vadd.f32 -0.28449672, %v1912_v43  ;;  %v2140_v35 = vmul.f32 1.442695, %v2103_v29  ;;  %v4389_v2 = vand.u32 2147483647, %v4374_v13  ;;  %v2036_v22 = vmul.f32 %v4231_v26, %v2004_v54 }
 0x37c   : > { %v1910_v55 = vmul.f32 %v4297_v27, %v1878_v17  ;;  %v1820_v8 = vadd.f32 -1.4531521, %v1788_v16  ;;  %3239 = vrcp.f32 %v1690_v48  ;;  %v2002_v49 = vadd.f32 0.2548296, %v1970_v37 }
 0x37d   : > { %v1913_v42 = vmul.f32 %v4307_v44, %v1881_v5  ;;  %v1879_v36 = vadd.f32 1.4214138, %v1847_v53  ;;  %v4395_v47 = vand.u32 2147483647, %v4385_v3  ;;  %v2037_v43 = vmul.f32 %v4237_v14, %v2005_v62  ;;  %v2997_v5 = vpop.f32.mrf.mxu1 }
 0x37e   : > { %v4400_v56 = vmul.f32 0.5, %v4226_v59  ;;  %v4403_v26 = vadd.f32 %v2996_v32, %v4138_v40  ;;  %v2003_v29 = vadd.f32 0.2548296, %v1971_v61  ;;  %v1976_v48 = vmul.f32 %v4267_v39, %v1944_v25 }
 0x37f   : > { %3241 = vpow2.f32 %v2140_v35  ;;  %v1661_v54 = vmul.f32 0.3275911, %v4389_v2  ;;  %v2196_v17 = vmul.f32 %v3224_v52, %v2036_v22  ;;  %v1942_v16 = vadd.f32 -0.28449672, %v1910_v55 }
 0x380   : > { %5420 = vst [vmem:[#allocation38_spill] sm:$0xff] %v4400_v56  ;;  %5421 = vst [vmem:[#allocation39_spill] sm:$0xff] %v4403_v26  ;;  %v1852_v37 = vmul.f32 %v4361_v28, %v1820_v8  ;;  %v4409_v14 = vadd.f32 %v4138_v40, %v1443_v50  ;;  %v2034_v59 = vmul.f32 %v4245_v1, %v2002_v49  ;;  %v1945_v53 = vadd.f32 -0.28449672, %v1913_v42  ;;  %v1446_v49 = vpop.f32.mrf.mxu1 }
 0x381   : > { %v1911_v32 = vmul.f32 %v4330_v11, %v1879_v36  ;;  %v1659_v62 = vmul.f32 0.3275911, %v4395_v47  ;;  %v2197_v61 = vmul.f32 %v3230_v4, %v2037_v43  ;;  %v4417_v25 = vsel %vm1564_vm9, 1.0, %v5419_v15 }
 0x382   : > { %v2076_v52 = vsub.f32 0.0, %v4242_v23  ;;  %v4421_v35 = vmul.f32 0.70710677, %v4403_v26  ;;  %v2035_v22 = vmul.f32 %v4249_v19, %v2003_v29  ;;  %v2008_v55 = vadd.f32 0.2548296, %v1976_v48 }
 0x383   : > { %v4425_v1 = vmul.f32 0.5, %v4295_v46  ;;  %v1693_v36 = vadd.f32 1.0, %v1661_v54  ;;  %v2228_v8 = vsub.f32 1.0, %v2196_v17  ;;  %v1974_v4 = vmul.f32 %v4297_v27, %v1942_v16 }
 0x384   : > { %v1884_v50 = vadd.f32 1.4214138, %v1852_v37  ;;  %v4429_v9 = vmul.f32 0.70710677, %v4409_v14  ;;  %v3234_v42 = vpop.eup %3233  ;;  %v2194_v43 = vmul.f32 %v4365_v21, %v2034_v59  ;;  %v1977_v56 = vmul.f32 %v4307_v44, %v1945_v53 }
 0x385   : > { %5422 = vst [vmem:[#allocation40_spill] sm:$0xff] %v4425_v1  ;;  %v1943_v26 = vadd.f32 -0.28449672, %v1911_v32  ;;  %v1691_v19 = vadd.f32 1.0, %v1659_v62  ;;  %v2229_v48 = vsub.f32 1.0, %v2197_v61  ;;  %v2108_v46 = vmul.f32 %v2076_v52, %v4242_v23 }
 0x386   : > { %v3236_v29 = vpop.eup %3235  ;;  %v4435_v54 = vand.u32 2147483647, %v4421_v35  ;;  %v4438_v17 = vadd.f32 %v2997_v5, %v4138_v40  ;;  %v2195_v37 = vmul.f32 %v3232_v24, %v2035_v22  ;;  %v2040_v1 = vmul.f32 %v4267_v39, %v2008_v55 }
 0x387   : > { %v3238_v16 = vpop.eup %3237  ;;  %3243 = vrcp.f32 %v1693_v36  ;;  %v4442_v21 = vadd.f32 %v4138_v40, %v1446_v49  ;;  %v2260_v59 = vmul.f32 %v2228_v8, %v4272_v12  ;;  %v2006_v53 = vadd.f32 0.2548296, %v1974_v4  ;;  %v3000_v49 = vpop.f32.mrf.mxu1 }
 0x388   : > { %v1916_v32 = vmul.f32 %v4361_v28, %v1884_v50  ;;  %v4447_v23 = vand.u32 2147483647, %v4429_v9  ;;  %v2226_v5 = vsub.f32 1.0, %v2194_v43  ;;  %v2009_v61 = vadd.f32 0.2548296, %v1977_v56 }
 0x389   : > { %5423 = vst [vmem:[#allocation41_spill] sm:$0xff] %v4442_v21  ;;  %v4449_v62 = vpop.eup %3239  ;;  %v1975_v24 = vmul.f32 %v4330_v11, %v1943_v26  ;;  %3245 = vrcp.f32 %v1691_v19  ;;  %v2261_v39 = vmul.f32 %v2229_v48, %v4283_v33  ;;  %v2150_v52 = vmul.f32 1.442695, %v2108_v46 }
 0x38a   : > { %v1664_v22 = vmul.f32 0.3275911, %v4435_v54  ;;  %v4455_v12 = vmul.f32 0.70710677, %v4438_v17  ;;  %v2227_v55 = vsub.f32 1.0, %v2195_v37  ;;  %v2200_v36 = vmul.f32 %v3234_v42, %v2040_v1 }
 0x38b   : > { %vm1562_vm10 = vcmp.ge.f32.partialorder %v4319_v60, 0.0  ;;  %v4459_v8 = vmul.f32 0.70710677, %v4442_v21  ;;  %v2038_v56 = vmul.f32 %v4297_v27, %v2006_v53  ;;  %v1948_v26 = vadd.f32 -0.28449672, %v1916_v32 }
 0x38c   : > { %v3242_v4 = vpop.eup %3241  ;;  %v1786_v50 = vmul.f32 1.0614054, %v4449_v62  ;;  %v1662_v33 = vmul.f32 0.3275911, %v4447_v23  ;;  %v2324_v43 = vadd.f32 1.0, %v2260_v59  ;;  %v2258_v19 = vmul.f32 %v2226_v5, %v4275_v41 }
 0x38d   : > { %v2041_v48 = vmul.f32 %v4307_v44, %v2009_v61  ;;  %v2007_v1 = vadd.f32 0.2548296, %v1975_v24  ;;  %v2325_v42 = vadd.f32 1.0, %v2261_v39  ;;  %3247 = vpow2.f32 %v2150_v52 }
 0x38e   : > { %v1696_v46 = vadd.f32 1.0, %v1664_v22  ;;  %v4467_v37 = vand.u32 2147483647, %v4455_v12  ;;  %v2259_v27 = vmul.f32 %v2227_v55, %v4292_v31  ;;  %v2232_v53 = vsub.f32 1.0, %v2200_v36 }
 0x38f   : > { %v4471_v32 = vand.u32 2147483647, %v4459_v8  ;;  %v4474_v21 = vadd.f32 %v3000_v49, %v4138_v40  ;;  %v2198_v59 = vmul.f32 %v3236_v29, %v2038_v56  ;;  %v1980_v41 = vmul.f32 %v4361_v28, %v1948_v26  ;;  %v1459_v29 = vpop.f32.mrf.mxu1 }
 0x390   : > { %v1818_v44 = vadd.f32 -1.4531521, %v1786_v50  ;;  %v1694_v5 = vadd.f32 1.0, %v1662_v33  ;;  %v4478_v61 = vmul.f32 %v2324_v43, %v4258_v18  ;;  %v2322_v24 = vadd.f32 1.0, %v2258_v19 }
 0x391   : > { %v2201_v39 = vmul.f32 %v3238_v16, %v2041_v48  ;;  %v2039_v52 = vmul.f32 %v4330_v11, %v2007_v1  ;;  %v4482_v31 = vmul.f32 %v2325_v42, %v4279_v45  ;;  %v2074_v22 = vsub.f32 0.0, %v4342_v0 }
 0x392   : > { %5424 = vst [vmem:[#allocation42_spill] sm:$0xff] %v4478_v61  ;;  %3249 = vrcp.f32 %v1696_v46  ;;  %v1665_v55 = vmul.f32 0.3275911, %v4467_v37  ;;  %v2323_v36 = vadd.f32 1.0, %v2259_v27  ;;  %v2264_v56 = vmul.f32 %v2232_v53, %v4324_v38 }
 0x393   : > { %5425 = vst [vmem:[#allocation43_spill] sm:$0xff] %v4482_v31  ;;  %v1663_v26 = vmul.f32 0.3275911, %v4471_v32  ;;  %v4489_v18 = vmul.f32 0.70710677, %v4474_v21  ;;  %v2230_v11 = vsub.f32 1.0, %v2198_v59  ;;  %v1850_v45 = vmul.f32 %v4449_v62, %v1818_v44 }
 0x394   : > { %v4491_v16 = vpop.eup %3243  ;;  %v2012_v50 = vadd.f32 0.2548296, %v1980_v41  ;;  %3251 = vrcp.f32 %v1694_v5  ;;  %v2233_v33 = vsub.f32 1.0, %v2201_v39  ;;  %v2199_v49 = vmul.f32 %v3242_v4, %v2039_v52 }
 0x395   : > { %v4497_v43 = vsel %vm1562_vm10, 1.0, %v5419_v15  ;;  %v4500_v38 = vadd.f32 %v4138_v40, %v1459_v29  ;;  %v4505_v48 = vmul.f32 %v2322_v24, %v4261_v58  ;;  %v2106_v42 = vmul.f32 %v2074_v22, %v4342_v0 }
 0x396   : > { %v4502_v19 = vpop.eup %3245  ;;  %v1697_v46 = vadd.f32 1.0, %v1665_v55  ;;  %v4511_v4 = vmul.f32 %v2323_v36, %v4288_v34  ;;  %v1789_v60 = vmul.f32 1.0614054, %v4491_v16  ;;  %v1695_v27 = vadd.f32 1.0, %v1663_v26 }
 0x397   : > { %v4515_v53 = vand.u32 2147483647, %v4489_v18  ;;  %v2328_v59 = vadd.f32 1.0, %v2264_v56  ;;  %v2262_v41 = vmul.f32 %v2230_v11, %v4327_v51  ;;  %v2044_v58 = vmul.f32 %v4361_v28, %v2012_v50 }
 0x398   : > { %5426 = vst [vmem:[#allocation44_spill] sm:$0xff] %v4511_v4  ;;  %v1882_v44 = vadd.f32 1.4214138, %v1850_v45  ;;  %v2265_v5 = vmul.f32 %v2233_v33, %v4354_v20  ;;  %v2231_v24 = vsub.f32 1.0, %v2199_v49  ;;  %v1787_v0 = vmul.f32 1.0614054, %v4502_v19 }
 0x399   : > { %v4522_v34 = vmul.f32 0.70710677, %v4500_v38  ;;  %v2146_v39 = vmul.f32 1.442695, %v2106_v42  ;;  %vm1565_vm11 = vcmp.ge.f32.partialorder %v4374_v13, 0.0  ;;  %v2077_v52 = vsub.f32 0.0, %v4389_v2 }
 0x39a   : > { %3253 = vrcp.f32 %v1697_v46  ;;  %v3248_v22 = vpop.eup %3247  ;;  %v1821_v55 = vadd.f32 -1.4531521, %v1789_v60  ;;  %v2075_v51 = vsub.f32 0.0, %v4395_v47  ;;  %v1668_v28 = vmul.f32 0.3275911, %v4515_v53 }
 0x39b   : > { %3255 = vrcp.f32 %v1695_v27  ;;  %v4529_v20 = vmul.f32 %v2328_v59, %v4302_v57  ;;  %v2326_v29 = vadd.f32 1.0, %v2262_v41  ;;  %v2204_v36 = vmul.f32 %v3248_v22, %v2044_v58 }
 0x39c   : > { %v1914_v56 = vmul.f32 %v4449_v62, %v1882_v44  ;;  %v2329_v26 = vadd.f32 1.0, %v2265_v5  ;;  %v2263_v11 = vmul.f32 %v2231_v24, %v4382_v63  ;;  %v1819_v50 = vadd.f32 -1.4531521, %v1787_v0 }
 0x39d   : > { %5427 = vst [vmem:[#allocation45_spill] sm:$0xff] %v4529_v20  ;;  %v4534_v45 = vand.u32 2147483647, %v4522_v34  ;;  %3257 = vpow2.f32 %v2146_v39  ;;  %v4539_v33 = vsel %vm1565_vm11, 1.0, %v5419_v15  ;;  %v2109_v57 = vmul.f32 %v2077_v52, %v4389_v2 }
 0x39e   : > { %v4543_v49 = vmul.f32 0.5, %v4359_v10  ;;  %v1853_v46 = vmul.f32 %v4491_v16, %v1821_v55  ;;  %vm1563_vm12 = vcmp.ge.f32.partialorder %v4385_v3, 0.0  ;;  %v2107_v63 = vmul.f32 %v2075_v51, %v4395_v47  ;;  %v5430_v51 = vld [vmem:[#allocation37_spill] sm:$0xff] }
 0x39f   : > { %v4545_v42 = vpop.eup %3249  ;;  %v1700_v60 = vadd.f32 1.0, %v1668_v28  ;;  %v4551_v27 = vmul.f32 %v2326_v29, %v4314_v7  ;;  %v2236_v13 = vsub.f32 1.0, %v2204_v36  ;;  %v1946_v59 = vadd.f32 -0.28449672, %v1914_v56 }
 0x3a0   : > { %v4554_v41 = vmul.f32 0.5, %v4370_v30  ;;  %v4559_v10 = vmul.f32 %v2329_v26, %v4337_v6  ;;  %v2327_v58 = vadd.f32 1.0, %v2263_v11  ;;  %v1851_v44 = vmul.f32 %v4502_v19, %v1819_v50  ;;  %v3001_v30 = vpop.f32.mrf.mxu1  ;;  %v5432_v50 = vld [vmem:[#allocation39_spill] sm:$0xff] }
 0x3a1   : > { %5428 = vst [vmem:[#allocation46_spill] sm:$0xff] %v4551_v27  ;;  %v4556_v2 = vpop.eup %3251  ;;  %v1666_v3 = vmul.f32 0.3275911, %v4534_v45  ;;  %v2152_v47 = vmul.f32 1.442695, %v2109_v57  ;;  %v4564_v5 = vsel %vm1563_vm12, 1.0, %v5419_v15  ;;  %3259 = vrcp.f32 %v1700_v60 }
 0x3a2   : > { %5429 = vst [vmem:[#allocation47_spill] sm:$0xff] %v4559_v10  ;;  %v1792_v7 = vmul.f32 1.0614054, %v4545_v42  ;;  %v2080_v24 = vsub.f32 0.0, %v4435_v54  ;;  %v1885_v0 = vadd.f32 1.4214138, %v1853_v46  ;;  %v2268_v6 = vmul.f32 %v2236_v13, %v4417_v25  ;;  %v1462_v57 = vpop.f32.mrf.mxu1 }
 0x3a3   : > { %v2148_v39 = vmul.f32 1.442695, %v2107_v63  ;;  %vm1568_vm13 = vcmp.ge.f32.partialorder %v4421_v35, 0.0  ;;  %v1978_v52 = vmul.f32 %v4449_v62, %v1946_v59  ;;  %v1790_v22 = vmul.f32 1.0614054, %v4556_v2 }
 0x3a4   : > { %v2078_v55 = vsub.f32 0.0, %v4447_v23  ;;  %v4574_v28 = vmul.f32 %v2327_v58, %v5430_v51  ;;  %v1883_v29 = vadd.f32 1.4214138, %v1851_v44  ;;  %v1698_v36 = vadd.f32 1.0, %v1666_v3 }
 0x3a5   : > { %v4577_v56 = vadd.f32 %v3001_v30, %v4138_v40  ;;  %3261 = vpow2.f32 %v2152_v47  ;;  %v1824_v26 = vadd.f32 -1.4531521, %v1792_v7  ;;  %v2112_v11 = vmul.f32 %v2080_v24, %v4435_v54 }
 0x3a6   : > { %5431 = vst [vmem:[#allocation37_spill] sm:$0xff] %v4574_v28  ;;  %v4581_v25 = vmul.f32 0.5, %v5432_v50  ;;  %v1917_v63 = vmul.f32 %v4491_v16, %v1885_v0  ;;  %3263 = vpow2.f32 %v2148_v39  ;;  %v4589_v60 = vsel %vm1568_vm13, 1.0, %v5419_v15 }
 0x3a7   : > { %v4583_v46 = vpop.eup %3253  ;;  %vm1566_vm14 = vcmp.ge.f32.partialorder %v4429_v9, 0.0  ;;  %v2332_v59 = vadd.f32 1.0, %v2268_v6  ;;  %v2010_v54 = vadd.f32 0.2548296, %v1978_v52  ;;  %v1822_v58 = vadd.f32 -1.4531521, %v1790_v22 }
 0x3a8   : > { %v4592_v13 = vpop.eup %3255  ;;  %v2110_v44 = vmul.f32 %v2078_v55, %v4447_v23  ;;  %v1915_v3 = vmul.f32 %v4502_v19, %v1883_v29  ;;  %3265 = vrcp.f32 %v1698_v36  ;;  %v4597_v47 = vmul.f32 0.70710677, %v4577_v56  ;;  %v5433_v29 = vld [vmem:[#allocation38_spill] sm:$0xff] }
 0x3a9   : > { %v4600_v7 = vadd.f32 %v4138_v40, %v1462_v57  ;;  %v1856_v35 = vmul.f32 %v4545_v42, %v1824_v26  ;;  %v2158_v24 = vmul.f32 1.442695, %v2112_v11  ;;  %v4604_v9 = vsel %vm1566_vm14, 1.0, %v5419_v15 }
 0x3aa   : > { %v1793_v30 = vmul.f32 1.0614054, %v4583_v46  ;;  %v3258_v0 = vpop.eup %3257  ;;  %v1949_v39 = vadd.f32 -0.28449672, %v1917_v63  ;;  %v4608_v23 = vmul.f32 0.5, %v4409_v14  ;;  %v2081_v6 = vsub.f32 0.0, %v4467_v37 }
 0x3ab   : > { %v1791_v52 = vmul.f32 1.0614054, %v4592_v13  ;;  %v2042_v22 = vmul.f32 %v4449_v62, %v2010_v54  ;;  %v1854_v55 = vmul.f32 %v4556_v2, %v1822_v58  ;;  %v2154_v51 = vmul.f32 1.442695, %v2110_v44 }
 0x3ac   : > { %vm1569_vm15 = vcmp.ge.f32.partialorder %v4455_v12, 0.0  ;;  %v4616_v36 = vmul.f32 %v2332_v59, %v5433_v29  ;;  %v1947_v26 = vadd.f32 -0.28449672, %v1915_v3  ;;  %v4619_v11 = vand.u32 2147483647, %v4597_v47 }
 0x3ad   : > { %v4622_v14 = vmul.f32 0.70710677, %v4600_v7  ;;  %v1888_v50 = vadd.f32 1.4214138, %v1856_v35  ;;  %v1825_v57 = vadd.f32 -1.4531521, %v1793_v30  ;;  %v1981_v54 = vmul.f32 %v4491_v16, %v1949_v39 }
 0x3ae   : > { %5434 = vst [vmem:[#allocation39_spill] sm:$0xff] %v4616_v36  ;;  %v4625_v63 = vmul.f32 0.5, %v4438_v17  ;;  %v2079_v62 = vsub.f32 0.0, %v4471_v32  ;;  %v2113_v58 = vmul.f32 %v2081_v6, %v4467_v37  ;;  %vm1567_vm1 = vcmp.ge.f32.partialorder %v4459_v8, 0.0  ;;  %v4631_v44 = vpop.eup %3259  ;;  %v5435_v30 = vld [vmem:[#allocation41_spill] sm:$0xff]  ;;  %v3004_v6 = vpop.f32.mrf.mxu1 }
 0x3af   : > { %v1823_v59 = vadd.f32 -1.4531521, %v1791_v52  ;;  %v2202_v3 = vmul.f32 %v3258_v0, %v2042_v22  ;;  %3267 = vpow2.f32 %v2158_v24  ;;  %v1886_v29 = vadd.f32 1.4214138, %v1854_v55 }
 0x3b0   : > { %v4636_v35 = vsel %vm1569_vm15, 1.0, %v5419_v15  ;;  %v1979_v17 = vmul.f32 %v4502_v19, %v1947_v26  ;;  %v4640_v1 = vmul.f32 0.5, %v5435_v30  ;;  %v1669_v37 = vmul.f32 0.3275911, %v4619_v11  ;;  %v1475_v28 = vpop.f32.mrf.mxu1 }
 0x3b1   : > { %v4644_v8 = vand.u32 2147483647, %v4622_v14  ;;  %v1920_v39 = vmul.f32 %v4545_v42, %v1888_v50  ;;  %v1857_v24 = vmul.f32 %v4583_v46, %v1825_v57  ;;  %v4649_v0 = vsel %vm1567_vm1, 1.0, %v5419_v15 }
 0x3b2   : > { %v2111_v12 = vmul.f32 %v2079_v62, %v4471_v32  ;;  %v3262_v52 = vpop.eup %3261  ;;  %v2013_v22 = vadd.f32 0.2548296, %v1981_v54  ;;  %v2160_v55 = vmul.f32 1.442695, %v2113_v58  ;;  %v1855_v26 = vmul.f32 %v4592_v13, %v1823_v59 }
 0x3b3   : > { %v1796_v30 = vmul.f32 1.0614054, %v4631_v44  ;;  %v3264_v36 = vpop.eup %3263  ;;  %v2234_v10 = vsub.f32 1.0, %v2202_v3  ;;  %v1918_v20 = vmul.f32 %v4556_v2, %v1886_v29  ;;  %vm1572_vm2 = vcmp.ge.f32.partialorder %v4489_v18, 0.0 }
 0x3b4   : > { %v1667_v50 = vmul.f32 0.3275911, %v4644_v8  ;;  %v2011_v57 = vadd.f32 0.2548296, %v1979_v17  ;;  %v4658_v61 = vmul.f32 0.5, %v4474_v21  ;;  %v1701_v32 = vadd.f32 1.0, %v1669_v37 }
 0x3b5   : > { %v4661_v62 = vadd.f32 %v3004_v6, %v4138_v40  ;;  %v4663_v54 = vpop.eup %3265  ;;  %v1952_v58 = vadd.f32 -0.28449672, %v1920_v39  ;;  %3269 = vpow2.f32 %v2154_v51  ;;  %v1889_v59 = vadd.f32 1.4214138, %v1857_v24 }
 0x3b6   : > { %5436 = vst [vmem:[#allocation38_spill] sm:$0xff] %v4658_v61  ;;  %v2156_v3 = vmul.f32 1.442695, %v2111_v12  ;;  %v2045_v29 = vmul.f32 %v4491_v16, %v2013_v22  ;;  %v1887_v31 = vadd.f32 1.4214138, %v1855_v26  ;;  %v4667_v18 = vsel %vm1572_vm2, 1.0, %v5419_v15 }
 0x3b7   : > { %5437 = vst [vmem:[#allocation41_spill] sm:$0xff] %v4661_v62  ;;  %v1828_v17 = vadd.f32 -1.4531521, %v1796_v30  ;;  %v2266_v21 = vmul.f32 %v2234_v10, %v4497_v43  ;;  %v1950_v37 = vadd.f32 -0.28449672, %v1918_v20  ;;  %v2084_v6 = vsub.f32 0.0, %v4515_v53 }
 0x3b8   : > { %v1699_v61 = vadd.f32 1.0, %v1667_v50  ;;  %v2043_v27 = vmul.f32 %v4502_v19, %v2011_v57  ;;  %v1794_v51 = vmul.f32 1.0614054, %v4663_v54  ;;  %3271 = vrcp.f32 %v1701_v32  ;;  %v3005_v50 = vpop.f32.mrf.mxu1 }
 0x3b9   : > { %v4674_v39 = vmul.f32 0.70710677, %v4661_v62  ;;  %v1984_v16 = vmul.f32 %v4545_v42, %v1952_v58  ;;  %v1921_v24 = vmul.f32 %v4583_v46, %v1889_v59  ;;  %v4679_v12 = vmul.f32 0.5, %v4500_v38 }
 0x3ba   : > { %v4682_v43 = vadd.f32 %v4138_v40, %v1475_v28  ;;  %v2205_v20 = vmul.f32 %v3262_v52, %v2045_v29  ;;  %v1919_v10 = vmul.f32 %v4592_v13, %v1887_v31  ;;  %v1860_v19 = vmul.f32 %v4631_v44, %v1828_v17 }
 0x3bb   : > { %v2082_v22 = vsub.f32 0.0, %v4534_v45  ;;  %v1982_v26 = vmul.f32 %v4556_v2, %v1950_v37  ;;  %v2116_v30 = vmul.f32 %v2084_v6, %v4515_v53  ;;  %vm1570_vm3 = vcmp.ge.f32.partialorder %v4522_v34, 0.0 }
 0x3bc   : > { %3273 = vrcp.f32 %v1699_v61  ;;  %v3268_v38 = vpop.eup %3267  ;;  %v2330_v57 = vadd.f32 1.0, %v2266_v21  ;;  %v2203_v32 = vmul.f32 %v3264_v36, %v2043_v27  ;;  %v1826_v40 = vadd.f32 -1.4531521, %v1794_v51  ;;  %v4700_v27 = vld [vmem:[%s5326_s7] ss:$0 sm:$0xff]  ;;  %v5438_v51 = vld [vmem:[#allocation40_spill] sm:$0xff] }
 0x3bd   : > { %v4691_v28 = vand.u32 2147483647, %v4674_v39  ;;  %v2016_v31 = vadd.f32 0.2548296, %v1984_v16  ;;  %v1953_v52 = vadd.f32 -0.28449672, %v1921_v24  ;;  %3275 = vpow2.f32 %v2160_v55  ;;  %v1478_v55 = vpop.f32.mrf.mxu1 }
 0x3be   : > { %v4694_v58 = vmul.f32 0.70710677, %v4682_v43  ;;  %v2237_v59 = vsub.f32 1.0, %v2205_v20  ;;  %v1951_v29 = vadd.f32 -0.28449672, %v1919_v10  ;;  %v2114_v17 = vmul.f32 %v2082_v22, %v4534_v45 }
 0x3bf   : > { %v1892_v53 = vadd.f32 1.4214138, %v1860_v19  ;;  %v2014_v61 = vadd.f32 0.2548296, %v1982_v26  ;;  %3277 = vpow2.f32 %v2156_v3  ;;  %v2166_v37 = vmul.f32 1.442695, %v2116_v30 }
 0x3c0   : > { %v4703_v36 = vadd.f32 %v4700_v27, %v3005_v50  ;;  %v2235_v21 = vsub.f32 1.0, %v2203_v32  ;;  %v4708_v6 = vsel %vm1570_vm3, 1.0, %v5419_v15  ;;  %v1858_v45 = vmul.f32 %v4663_v54, %v1826_v40  ;;  %v4730_v32 = vpop.f32.mrf.mxu1 }
 0x3c1   : > { %v1672_v3 = vmul.f32 0.3275911, %v4691_v28  ;;  %v4713_v16 = vmul.f32 %v2330_v57, %v5438_v51  ;;  %v2048_v24 = vmul.f32 %v4545_v42, %v2016_v31  ;;  %v1985_v20 = vmul.f32 %v4583_v46, %v1953_v52 }
 0x3c2   : > { %v4718_v10 = vand.u32 2147483647, %v4694_v58  ;;  %v3270_v19 = vpop.eup %3269  ;;  %v2269_v22 = vmul.f32 %v2237_v59, %v4539_v33  ;;  %v1983_v34 = vmul.f32 %v4592_v13, %v1951_v29  ;;  %v1924_v26 = vmul.f32 %v4631_v44, %v1892_v53 }
 0x3c3   : > { %5439 = vst [vmem:[#allocation40_spill] sm:$0xff] %v4713_v16  ;;  %v2162_v30 = vmul.f32 1.442695, %v2114_v17  ;;  %v2046_v50 = vmul.f32 %v4556_v2, %v2014_v61  ;;  %3279 = vpow2.f32 %v2166_v37  ;;  %v4725_v57 = vmul.f32 0.70710677, %v4703_v36 }
 0x3c4   : > { %v4728_v42 = vadd.f32 %v4700_v27, %v1478_v55  ;;  %v2267_v40 = vmul.f32 %v2235_v21, %v4564_v5  ;;  %v1890_v31 = vadd.f32 1.4214138, %v1858_v45  ;;  %vm1573_vm4 = vcmp.ge.f32.partialorder %v4597_v47, 0.0 }
 0x3c5   : > { %v1704_v33 = vadd.f32 1.0, %v1672_v3  ;;  %v4734_v52 = vpop.eup %3271  ;;  %v2208_v59 = vmul.f32 %v3268_v38, %v2048_v24  ;;  %v2017_v29 = vadd.f32 0.2548296, %v1985_v20  ;;  %v1670_v2 = vmul.f32 0.3275911, %v4718_v10  ;;  %v1491_v38 = vpop.f32.mrf.mxu1 }
 0x3c6   : > { %v4738_v53 = vmul.f32 0.70710677, %v4728_v42  ;;  %v2333_v17 = vadd.f32 1.0, %v2269_v22  ;;  %v2015_v61 = vadd.f32 0.2548296, %v1983_v34  ;;  %3281 = vpow2.f32 %v2162_v30 }
 0x3c7   : > { %v1956_v37 = vadd.f32 -0.28449672, %v1924_v26  ;;  %v2206_v55 = vmul.f32 %v3270_v19, %v2046_v50  ;;  %v4741_v5 = vsel %vm1573_vm4, 1.0, %v5419_v15  ;;  %v4744_v47 = vand.u32 2147483647, %v4725_v57 }
 0x3c8   : > { %v4747_v21 = vand.u32 2147483647, %v4738_v53  ;;  %v1922_v3 = vmul.f32 %v4663_v54, %v1890_v31  ;;  %v1797_v51 = vmul.f32 1.0614054, %v4734_v52  ;;  %v2085_v24 = vsub.f32 0.0, %v4619_v11 }
 0x3c9   : > { %v4749_v45 = vpop.eup %3273  ;;  %3283 = vrcp.f32 %v1704_v33  ;;  %v2331_v20 = vadd.f32 1.0, %v2267_v40  ;;  %v2240_v19 = vsub.f32 1.0, %v2208_v59  ;;  %v2049_v22 = vmul.f32 %v4583_v46, %v2017_v29 }
 0x3ca   : > { %v1702_v34 = vadd.f32 1.0, %v1670_v2  ;;  %v3276_v26 = vpop.eup %3275  ;;  %v2047_v30 = vmul.f32 %v4592_v13, %v2015_v61  ;;  %v1988_v50 = vmul.f32 %v4631_v44, %v1956_v37  ;;  %v1671_v62 = vmul.f32 0.3275911, %v4747_v21 }
 0x3cb   : > { %v4759_v16 = vadd.f32 %v4700_v27, %v1491_v38  ;;  %v4762_v31 = vmul.f32 %v2333_v17, %v4543_v49  ;;  %v2238_v4 = vsub.f32 1.0, %v2206_v55  ;;  %v1795_v40 = vmul.f32 1.0614054, %v4749_v45 }
 0x3cc   : > { %v1673_v33 = vmul.f32 0.3275911, %v4744_v47  ;;  %v3278_v46 = vpop.eup %3277  ;;  %v1954_v59 = vadd.f32 -0.28449672, %v1922_v3  ;;  %v1829_v29 = vadd.f32 -1.4531521, %v1797_v51  ;;  %v2117_v13 = vmul.f32 %v2085_v24, %v4619_v11  ;;  %v3009_v24 = vpop.f32.mrf.mxu1 }
 0x3cd   : > { %5440 = vst [vmem:[#allocation48_spill] sm:$0xff] %v4759_v16  ;;  %5441 = vst [vmem:[#allocation49_spill] sm:$0xff] %v4762_v31  ;;  %v4768_v2 = vmul.f32 0.5, %v4577_v56  ;;  %v2272_v61 = vmul.f32 %v2240_v19, %v4589_v60  ;;  %v2209_v37 = vmul.f32 %v3276_v26, %v2049_v22  ;;  %3285 = vrcp.f32 %v1702_v34 }
 0x3ce   : > { %v4772_v49 = vmul.f32 0.70710677, %v4759_v16  ;;  %v4775_v17 = vmul.f32 %v2331_v20, %v4554_v41  ;;  %v2207_v55 = vmul.f32 %v3278_v46, %v2047_v30  ;;  %v2020_v38 = vadd.f32 0.2548296, %v1988_v50 }
 0x3cf   : > { %v1703_v31 = vadd.f32 1.0, %v1671_v62  ;;  %v2270_v3 = vmul.f32 %v2238_v4, %v4604_v9  ;;  %v1827_v51 = vadd.f32 -1.4531521, %v1795_v40  ;;  %v1705_v11 = vadd.f32 1.0, %v1673_v33 }
 0x3d0   : > { %v4779_v56 = vand.u32 2147483647, %v4772_v49  ;;  %v3280_v60 = vpop.eup %3279  ;;  %v1986_v19 = vmul.f32 %v4663_v54, %v1954_v59  ;;  %v1861_v22 = vmul.f32 %v4734_v52, %v1829_v29  ;;  %v2168_v34 = vmul.f32 1.442695, %v2117_v13 }
 0x3d1   : > { %v2083_v41 = vsub.f32 0.0, %v4644_v8  ;;  %v2336_v20 = vadd.f32 1.0, %v2272_v61  ;;  %v2241_v26 = vsub.f32 1.0, %v2209_v37  ;;  %vm1571_vm5 = vcmp.ge.f32.partialorder %v4622_v14, 0.0 }
 0x3d2   : > { %v4787_v4 = vadd.f32 %v4700_v27, %v4730_v32  ;;  %v2239_v9 = vsub.f32 1.0, %v2207_v55  ;;  %v2052_v62 = vmul.f32 %v4631_v44, %v2020_v38  ;;  %3287 = vrcp.f32 %v1703_v31 }
 0x3d3   : > { %v4791_v30 = vadd.f32 %v4700_v27, %v3009_v24  ;;  %v3282_v50 = vpop.eup %3281  ;;  %v2334_v40 = vadd.f32 1.0, %v2270_v3  ;;  %v1859_v33 = vmul.f32 %v4749_v45, %v1827_v51  ;;  %3289 = vrcp.f32 %v1705_v11  ;;  %v1494_v11 = vpop.f32.mrf.mxu1 }
 0x3d4   : > { %5442 = vst [vmem:[#allocation50_spill] sm:$0xff] %v4787_v4  ;;  %v1674_v46 = vmul.f32 0.3275911, %v4779_v56  ;;  %v2018_v59 = vadd.f32 0.2548296, %v1986_v19  ;;  %3291 = vpow2.f32 %v2168_v34  ;;  %v2115_v32 = vmul.f32 %v2083_v41, %v4644_v8 }
 0x3d5   : > { %5443 = vst [vmem:[#allocation51_spill] sm:$0xff] %v4791_v30  ;;  %v1893_v29 = vadd.f32 1.4214138, %v1861_v22  ;;  %v4799_v44 = vmul.f32 %v2336_v20, %v4581_v25  ;;  %v2273_v31 = vmul.f32 %v2241_v26, %v4636_v35  ;;  %v4805_v61 = vsel %vm1571_vm5, 1.0, %v5419_v15 }
 0x3d6   : > { %v4796_v13 = vpop.eup %3283  ;;  %v4808_v37 = vmul.f32 0.70710677, %v4787_v4  ;;  %v2271_v55 = vmul.f32 %v2239_v9, %v4649_v0  ;;  %v2212_v38 = vmul.f32 %v3280_v60, %v2052_v62  ;;  %v2088_v8 = vsub.f32 0.0, %v4691_v28 }
 0x3d7   : > { %v4813_v3 = vmul.f32 0.70710677, %v4791_v30  ;;  %v4816_v25 = vmul.f32 %v2334_v40, %v4608_v23  ;;  %v1891_v35 = vadd.f32 1.4214138, %v1859_v33  ;;  %v4819_v51 = vmul.f32 0.5, %v4600_v7 }
 0x3d8   : > { %5444 = vst [vmem:[#allocation52_spill] sm:$0xff] %v4808_v37  ;;  %v1706_v14 = vadd.f32 1.0, %v1674_v46  ;;  %v2050_v24 = vmul.f32 %v4663_v54, %v2018_v59  ;;  %v1925_v19 = vmul.f32 %v4734_v52, %v1893_v29  ;;  %v2164_v0 = vmul.f32 1.442695, %v2115_v32 }
 0x3d9   : > { %5445 = vst [vmem:[#allocation53_spill] sm:$0xff] %v4813_v3  ;;  %v1800_v60 = vmul.f32 1.0614054, %v4796_v13  ;;  %v2337_v22 = vadd.f32 1.0, %v2273_v31  ;;  %vm1576_vm6 = vcmp.ge.f32.partialorder %v4674_v39, 0.0  ;;  %v2335_v41 = vadd.f32 1.0, %v2271_v55 }
 0x3da   : > { %v4826_v34 = vand.u32 2147483647, %v4808_v37  ;;  %v4829_v23 = vand.u32 2147483647, %v4813_v3  ;;  %v4831_v7 = vpop.eup %3285  ;;  %v2244_v20 = vsub.f32 1.0, %v2212_v38  ;;  %v2120_v54 = vmul.f32 %v2088_v8, %v4691_v28 }
 0x3db   : > { %v4835_v26 = vadd.f32 %v4700_v27, %v1494_v11  ;;  %v1923_v9 = vmul.f32 %v4749_v45, %v1891_v35  ;;  %vm1574_vm7 = vcmp.ge.f32.partialorder %v4694_v58, 0.0  ;;  %v2086_v62 = vsub.f32 0.0, %v4718_v10  ;;  %v3012_v11 = vpop.f32.mrf.mxu1 }
 0x3dc   : > { %3293 = vrcp.f32 %v1706_v14  ;;  %v2210_v40 = vmul.f32 %v3282_v50, %v2050_v24  ;;  %v1957_v33 = vadd.f32 -0.28449672, %v1925_v19  ;;  %v1832_v46 = vadd.f32 -1.4531521, %v1800_v60 }
 0x3dd   : > { %5446 = vst [vmem:[#allocation54_spill] sm:$0xff] %v4835_v26  ;;  %v1677_v59 = vmul.f32 0.3275911, %v4829_v23  ;;  %v4842_v29 = vmul.f32 %v2337_v22, %v4625_v63  ;;  %v1798_v28 = vmul.f32 1.0614054, %v4831_v7  ;;  %v4850_v55 = vmul.f32 %v2335_v41, %v4640_v1 }
 0x3de   : > { %v1676_v32 = vmul.f32 0.3275911, %v4826_v34  ;;  %v4847_v31 = vmul.f32 0.70710677, %v4835_v26  ;;  %3295 = vpow2.f32 %v2164_v0  ;;  %v4855_v50 = vsel %vm1576_vm6, 1.0, %v5419_v15 }
 0x3df   : > { %v2174_v38 = vmul.f32 1.442695, %v2120_v54  ;;  %v4857_v8 = vpop.eup %3287  ;;  %v1955_v63 = vadd.f32 -0.28449672, %v1923_v9  ;;  %v4862_v35 = vsel %vm1574_vm7, 1.0, %v5419_v15  ;;  %v2118_v14 = vmul.f32 %v2086_v62, %v4718_v10 }
 0x3e0   : > { %v4866_v1 = vmul.f32 0.5, %v4682_v43  ;;  %v4868_v24 = vpop.eup %3289  ;;  %v2276_v39 = vmul.f32 %v2244_v20, %v4667_v18  ;;  %v2242_v19 = vsub.f32 1.0, %v2210_v40  ;;  %v1989_v0 = vmul.f32 %v4734_v52, %v1957_v33 }
 0x3e1   : > { %v1709_v60 = vadd.f32 1.0, %v1677_v59  ;;  %v3292_v22 = vpop.eup %3291  ;;  %v1864_v41 = vmul.f32 %v4796_v13, %v1832_v46  ;;  %v1830_v58 = vadd.f32 -1.4531521, %v1798_v28  ;;  %v1708_v54 = vadd.f32 1.0, %v1676_v32 }
 0x3e2   : > { %v4874_v9 = vand.u32 2147483647, %v4847_v31  ;;  %3297 = vpow2.f32 %v2174_v38  ;;  %v2089_v43 = vsub.f32 0.0, %v4744_v47  ;;  %v1799_v10 = vmul.f32 1.0614054, %v4857_v8 }
 0x3e3   : > { %v4879_v62 = vadd.f32 %v4700_v27, %v3012_v11  ;;  %v1987_v18 = vmul.f32 %v4749_v45, %v1955_v63  ;;  %v2170_v20 = vmul.f32 1.442695, %v2118_v14  ;;  %v1801_v40 = vmul.f32 1.0614054, %v4868_v24 }
 0x3e4   : > { %v1675_v33 = vmul.f32 0.3275911, %v4874_v9  ;;  %v2274_v46 = vmul.f32 %v2242_v19, %v4708_v6  ;;  %vm1577_vm8 = vcmp.ge.f32.partialorder %v4725_v57, 0.0  ;;  %v4887_v59 = vmul.f32 0.5, %v4703_v36 }
 0x3e5   : > { %5447 = vst [vmem:[#allocation55_spill] sm:$0xff] %v4879_v62  ;;  %3299 = vrcp.f32 %v1709_v60  ;;  %v2021_v28 = vadd.f32 0.2548296, %v1989_v0  ;;  %v1896_v32 = vadd.f32 1.4214138, %v1864_v41  ;;  %v1862_v38 = vmul.f32 %v4831_v7, %v1830_v58 }
 0x3e6   : > { %5448 = vst [vmem:[#allocation56_spill] sm:$0xff] %v4887_v59  ;;  %3301 = vrcp.f32 %v1708_v54  ;;  %v2121_v63 = vmul.f32 %v2089_v43, %v4744_v47  ;;  %v1831_v14 = vadd.f32 -1.4531521, %v1799_v10  ;;  %v1707_v11 = vadd.f32 1.0, %v1675_v33 }
 0x3e7   : > { %v4892_v4 = vmul.f32 0.70710677, %v4879_v62  ;;  %v4894_v30 = vadd.f32 1.0, %v2276_v39  ;;  %v2019_v6 = vadd.f32 0.2548296, %v1987_v18  ;;  %3303 = vpow2.f32 %v2170_v20  ;;  %v1507_v20 = vpop.f32.mrf.mxu1 }
 0x3e8   : > { %v1833_v19 = vadd.f32 -1.4531521, %v1801_v40  ;;  %v2338_v60 = vadd.f32 1.0, %v2274_v46  ;;  %v4901_v0 = vsel %vm1577_vm8, 1.0, %v5419_v15  ;;  %v2087_v47 = vsub.f32 0.0, %v4747_v21 }
 0x3e9   : > { %5449 = vst [vmem:[#allocation57_spill] sm:$0xff] %v4892_v4  ;;  %v4896_v36 = vpop.eup %3293  ;;  %3305 = vrcp.f32 %v1707_v11  ;;  %v2053_v41 = vmul.f32 %v4734_v52, %v2021_v28  ;;  %v1928_v58 = vmul.f32 %v4796_v13, %v1896_v32  ;;  %v1894_v39 = vadd.f32 1.4214138, %v1862_v38 }
 0x3ea   : > { %v4907_v54 = vmul.f32 0.5, %v4728_v42  ;;  %v2176_v43 = vmul.f32 1.442695, %v2121_v63  ;;  %v1863_v10 = vmul.f32 %v4857_v8, %v1831_v14  ;;  %v2092_v18 = vsub.f32 0.0, %v4826_v34 }
 0x3eb   : > { %v4912_v57 = vand.u32 2147483647, %v4892_v4  ;;  %v3296_v40 = vpop.eup %3295  ;;  %v2051_v33 = vmul.f32 %v4749_v45, %v2019_v6  ;;  %v1865_v52 = vmul.f32 %v4868_v24, %v1833_v19  ;;  %v1802_v46 = vmul.f32 1.0614054, %v4896_v36 }
 0x3ec   : > { %v2090_v28 = vsub.f32 0.0, %v4779_v56  ;;  %v4919_v42 = vmul.f32 %v2338_v60, %v4679_v12  ;;  %vm1575_vm9 = vcmp.ge.f32.partialorder %v4738_v53, 0.0  ;;  %v2119_v32 = vmul.f32 %v2087_v47, %v4747_v21  ;;  %v3013_v12 = vpop.f32.mrf.mxu1 }
 0x3ed   : > { %v1680_v38 = vmul.f32 0.3275911, %v4912_v57  ;;  %v2213_v63 = vmul.f32 %v3292_v22, %v2053_v41  ;;  %v1960_v14 = vadd.f32 -0.28449672, %v1928_v58  ;;  %v1926_v11 = vmul.f32 %v4831_v7, %v1894_v39 }
 0x3ee   : > { %v4926_v45 = vadd.f32 %v4700_v27, %v1507_v20  ;;  %3307 = vpow2.f32 %v2176_v43  ;;  %v1895_v6 = vadd.f32 1.4214138, %v1863_v10  ;;  %v2124_v19 = vmul.f32 %v2092_v18, %v4826_v34  ;;  %v1510_v3 = vpop.f32.mrf.mxu1 }
 0x3ef   : > { %v1712_v62 = vadd.f32 1.0, %v1680_v38  ;;  %v4929_v60 = vpop.eup %3297  ;;  %v2211_v4 = vmul.f32 %v3296_v40, %v2051_v33  ;;  %v1897_v59 = vadd.f32 1.4214138, %v1865_v52  ;;  %v1834_v21 = vadd.f32 -1.4531521, %v1802_v46 }
 0x3f0   : > { %5450 = vst [vmem:[#allocation58_spill] sm:$0xff] %v4926_v45  ;;  %v2122_v47 = vmul.f32 %v2090_v28, %v4779_v56  ;;  %v4935_v22 = vsel %vm1575_vm9, 1.0, %v5419_v15  ;;  %v2172_v41 = vmul.f32 1.442695, %v2119_v32  ;;  %v4938_v58 = vmul.f32 0.70710677, %v4926_v45 }
 0x3f1   : > { %3309 = vrcp.f32 %v1712_v62  ;;  %v2245_v39 = vsub.f32 1.0, %v2213_v63  ;;  %v1992_v43 = vmul.f32 %v4796_v13, %v1960_v14  ;;  %v1958_v10 = vadd.f32 -0.28449672, %v1926_v11 }
 0x3f2   : > { %5451 = vst [vmem:[#allocation59_spill] sm:$0xff] %v4938_v58  ;;  %v4940_v34 = vpop.eup %3299  ;;  %v4944_v18 = vadd.f32 %v4700_v27, %v3013_v12  ;;  %v1927_v53 = vmul.f32 %v4857_v8, %v1895_v6  ;;  %v2182_v20 = vmul.f32 1.442695, %v2124_v19  ;;  %vm1578_vm10 = vcmp.ge.f32.partialorder %v4772_v49, 0.0 }
 0x3f3   : > { %v4946_v56 = vpop.eup %3301  ;;  %v4951_v62 = vand.u32 2147483647, %v4938_v58  ;;  %v2243_v40 = vsub.f32 1.0, %v2211_v4  ;;  %v1929_v33 = vmul.f32 %v4868_v24, %v1897_v59  ;;  %v1866_v52 = vmul.f32 %v4896_v36, %v1834_v21 }
 0x3f4   : > { %5452 = vst [vmem:[#allocation60_spill] sm:$0xff] %v4944_v18  ;;  %v2178_v46 = vmul.f32 1.442695, %v2122_v47  ;;  %v3304_v28 = vpop.eup %3303  ;;  %3311 = vpow2.f32 %v2172_v41  ;;  %v1805_v32 = vmul.f32 1.0614054, %v4940_v34  ;;  %v1990_v6 = vmul.f32 %v4831_v7, %v1958_v10 }
 0x3f5   : > { %v1678_v38 = vmul.f32 0.3275911, %v4951_v62  ;;  %v4958_v63 = vmul.f32 0.70710677, %v4944_v18  ;;  %v2024_v11 = vadd.f32 0.2548296, %v1992_v43  ;;  %v2277_v41 = vmul.f32 %v2245_v39, %v4741_v5 }
 0x3f6   : > { %v4960_v14 = vpop.eup %3305  ;;  %v1804_v4 = vmul.f32 1.0614054, %v4946_v56  ;;  %v2091_v59 = vsub.f32 0.0, %v4874_v9  ;;  %v1959_v19 = vadd.f32 -0.28449672, %v1927_v53  ;;  %v4968_v12 = vsel %vm1578_vm10, 1.0, %v5419_v15 }
 0x3f7   : > { %v1803_v21 = vmul.f32 1.0614054, %v4960_v14  ;;  %v1710_v47 = vadd.f32 1.0, %v1678_v38  ;;  %v1961_v18 = vadd.f32 -0.28449672, %v1929_v33  ;;  %v2275_v10 = vmul.f32 %v2243_v40, %v4805_v61 }
 0x3f8   : > { %v1898_v45 = vadd.f32 1.4214138, %v1866_v52  ;;  %v4973_v43 = vand.u32 2147483647, %v4958_v63  ;;  %v1837_v58 = vadd.f32 -1.4531521, %v1805_v32  ;;  %v2123_v49 = vmul.f32 %v2091_v59, %v4874_v9 }
 0x3f9   : > { %v1835_v16 = vadd.f32 -1.4531521, %v1803_v21  ;;  %3313 = vrcp.f32 %v1710_v47  ;;  %v2022_v53 = vadd.f32 0.2548296, %v1990_v6  ;;  %v1836_v26 = vadd.f32 -1.4531521, %v1804_v4 }
 0x3fa   : > { %v1681_v37 = vmul.f32 0.3275911, %v4973_v43  ;;  %v2056_v38 = vmul.f32 %v4796_v13, %v2024_v11  ;;  %v1991_v5 = vmul.f32 %v4857_v8, %v1959_v19  ;;  %v2093_v39 = vsub.f32 0.0, %v4829_v23  ;;  %v5453_v9 = vld [vmem:[#allocation44_spill] sm:$0xff]  ;;  %v5454_v11 = vld [vmem:[#allocation46_spill] sm:$0xff]  ;;  %v5455_v19 = vld [vmem:[#allocation37_spill] sm:$0xff] }
 0x3fb   : > { %v1867_v33 = vmul.f32 %v4960_v14, %v1835_v16  ;;  %v4982_v52 = vpop.eup %3307  ;;  %v1993_v61 = vmul.f32 %v4868_v24, %v1961_v18  ;;  %v1930_v40 = vmul.f32 %v4896_v36, %v1898_v45  ;;  %v2386_v6 = vpack.c.bf16 %v5453_v9, %v4505_v48 }
 0x3fc   : > { %v1713_v32 = vadd.f32 1.0, %v1681_v37  ;;  %v1869_v4 = vmul.f32 %v4940_v34, %v1837_v58  ;;  %v4990_v13 = vadd.f32 %v4700_v27, %v1510_v3  ;;  %v2388_v21 = vpack.c.bf16 %v5455_v19, %v5454_v11  ;;  %v5456_v3 = vld [vmem:[#allocation43_spill] sm:$0xff] }
 0x3fd   : > { %v1899_v59 = vadd.f32 1.4214138, %v1867_v33  ;;  %v2054_v47 = vmul.f32 %v4831_v7, %v2022_v53  ;;  %v1868_v18 = vmul.f32 %v4946_v56, %v1836_v26  ;;  %v2180_v45 = vmul.f32 1.442695, %v2123_v49  ;;  %3030 = vmatprep.mubr.bf16.mxu0 %v2386_v6  ;;  %v5457_v33 = vld [vmem:[#allocation42_spill] sm:$0xff] }
 0x3fe   : > { %v4994_v16 = vpop.eup %3309  ;;  %3315 = vrcp.f32 %v1713_v32  ;;  %v2023_v37 = vadd.f32 0.2548296, %v1991_v5  ;;  %v5001_v27 = vmul.f32 0.70710677, %v4990_v13  ;;  %v5458_v9 = vpack.c.bf16 %v5456_v3, %v5457_v33 }
 0x3ff   : > { %v1931_v48 = vmul.f32 %v4960_v14, %v1899_v59  ;;  %v1808_v58 = vmul.f32 1.0614054, %v4994_v16  ;;  %v5006_v11 = vadd.f32 1.0, %v2277_v41  ;;  %v2025_v7 = vadd.f32 0.2548296, %v1993_v61 }
 0x400   : > { %3031 = vmatmul.mubr.bf16.vlgmr.msra.gmra.mxu0 %v5458_v9  ;;  %3317 = vpow2.f32 %v2182_v20  ;;  %v2125_v26 = vmul.f32 %v2093_v39, %v4829_v23  ;;  %v1962_v53 = vadd.f32 -0.28449672, %v1930_v40  ;;  %v1901_v49 = vadd.f32 1.4214138, %v1869_v4  ;;  %v5459_v40 = vld [vmem:[#allocation40_spill] sm:$0xff] }
 0x401   : > { %3034 = vmatprep.mubr.bf16.mxu0 %v2388_v21  ;;  %3319 = vpow2.f32 %v2178_v46  ;;  %v1963_v5 = vadd.f32 -0.28449672, %v1931_v48  ;;  %v3312_v32 = vpop.eup %3311  ;;  %v2214_v6 = vmul.f32 %v3304_v28, %v2054_v47  ;;  %v1900_v59 = vadd.f32 1.4214138, %v1868_v18  ;;  %v5460_v47 = vld [vmem:[#allocation45_spill] sm:$0xff] }
 0x402   : > { %3321 = vpow2.f32 %v2180_v45  ;;  %v5010_v19 = vand.u32 2147483647, %v5001_v27  ;;  %v2339_v3 = vadd.f32 1.0, %v2275_v10  ;;  %v5013_v41 = vmul.f32 %v4929_v60, %v2056_v38  ;;  %v5461_v60 = vld [vmem:[#allocation47_spill] sm:$0xff] }
 0x403   : > { %v2055_v20 = vmul.f32 %v4857_v8, %v2023_v37  ;;  %v1840_v61 = vadd.f32 -1.4531521, %v1808_v58  ;;  %v2184_v23 = vmul.f32 1.442695, %v2125_v26  ;;  %v1995_v39 = vmul.f32 %v4960_v14, %v1963_v5 }
 0x404   : > { %v1679_v46 = vmul.f32 0.3275911, %v5010_v19  ;;  %v2390_v28 = vpack.c.bf16 %v4775_v17, %v5459_v40  ;;  %v2057_v4 = vmul.f32 %v4868_v24, %v2025_v7  ;;  %v1994_v21 = vmul.f32 %v4896_v36, %v1962_v53 }
 0x405   : > { %v1933_v10 = vmul.f32 %v4940_v34, %v1901_v49  ;;  %v2389_v38 = vpack.c.bf16 %v5461_v60, %v5460_v47  ;;  %v2246_v8 = vsub.f32 1.0, %v2214_v6  ;;  %v1932_v45 = vmul.f32 %v4946_v56, %v1900_v59 }
 0x406   : > { %v5025_v18 = vpop.eup %3313  ;;  %v2094_v37 = vsub.f32 0.0, %v4951_v62  ;;  %v1711_v48 = vadd.f32 1.0, %v1679_v46  ;;  %v2215_v58 = vmul.f32 %v3312_v32, %v2055_v20  ;;  %v1872_v17 = vmul.f32 %v4994_v16, %v1840_v61 }
 0x407   : > { %v1806_v24 = vmul.f32 1.0614054, %v5025_v18  ;;  %v2097_v33 = vsub.f32 0.0, %v4973_v43  ;;  %v5033_v9 = vmul.f32 %v2339_v3, %v4819_v51  ;;  %v2027_v7 = vadd.f32 0.2548296, %v1995_v39 }
 0x408   : > { %3035 = vmatmul.mubr.bf16.gmra.mxu0 %v2389_v38  ;;  %v2096_v26 = vsub.f32 0.0, %v4912_v57  ;;  %3323 = vrcp.f32 %v1711_v48  ;;  %v2026_v53 = vadd.f32 0.2548296, %v1994_v21  ;;  %v1965_v49 = vadd.f32 -0.28449672, %v1933_v10  ;;  %v5462_v10 = vld [vmem:[#allocation39_spill] sm:$0xff] }
 0x409   : > { %3038 = vmatprep.mubr.bf16.mxu0 %v2390_v28  ;;  %3325 = vpow2.f32 %v2184_v23  ;;  %v1838_v5 = vadd.f32 -1.4531521, %v1806_v24  ;;  %v2278_v32 = vmul.f32 %v2246_v8, %v4862_v35  ;;  %v5038_v6 = vmul.f32 %v4982_v52, %v2057_v4 }
 0x40a   : > { %v1964_v59 = vadd.f32 -0.28449672, %v1932_v45  ;;  %v2126_v20 = vmul.f32 %v2094_v37, %v4951_v62  ;;  %v2247_v51 = vsub.f32 1.0, %v2215_v58  ;;  %v1904_v3 = vadd.f32 1.4214138, %v1872_v17 }
 0x40b   : > { %v5041_v61 = vpop.eup %3315  ;;  %v1870_v39 = vmul.f32 %v5025_v18, %v1838_v5  ;;  %v2129_v46 = vmul.f32 %v2097_v33, %v4973_v43  ;;  %vm1579_vm11 = vcmp.ge.f32.partialorder %v4847_v31, 0.0  ;;  %v2059_v23 = vmul.f32 %v4960_v14, %v2027_v7  ;;  %v5463_v43 = vld [vmem:[#allocation49_spill] sm:$0xff] }
 0x40c   : > { %v2128_v35 = vmul.f32 %v2096_v26, %v4912_v57  ;;  %v1809_v52 = vmul.f32 1.0614054, %v5041_v61  ;;  %v2392_v40 = vpack.c.bf16 %v4850_v55, %v4816_v25  ;;  %v2058_v28 = vmul.f32 %v4896_v36, %v2026_v53 }
 0x40d   : > { %v5051_v62 = vpop.eup %3317  ;;  %v1997_v4 = vmul.f32 %v4940_v34, %v1965_v49  ;;  %v1902_v21 = vadd.f32 1.4214138, %v1870_v39  ;;  %v2391_v47 = vpack.c.bf16 %v5463_v43, %v5462_v10  ;;  %v1996_v14 = vmul.f32 %v4946_v56, %v1964_v59 }
 0x40e   : > { %v3320_v60 = vpop.eup %3319  ;;  %v2186_v38 = vmul.f32 1.442695, %v2126_v20  ;;  %v1841_v57 = vadd.f32 -1.4531521, %v1809_v52  ;;  %v2095_v8 = vsub.f32 0.0, %v5010_v19  ;;  %v2279_v25 = vmul.f32 %v2247_v51, %v4935_v22  ;;  %v5464_v52 = vld [vmem:[#allocation38_spill] sm:$0xff] }
 0x40f   : > { %v3322_v45 = vpop.eup %3321  ;;  %v1936_v55 = vmul.f32 %v4994_v16, %v1904_v3  ;;  %v1934_v36 = vmul.f32 %v5025_v18, %v1902_v21  ;;  %v2192_v37 = vmul.f32 1.442695, %v2129_v46  ;;  %v2248_v48 = vsub.f32 1.0, %v5013_v41 }
 0x410   : > { %3039 = vmatmul.mubr.bf16.gmra.mxu0 %v2391_v47  ;;  %v2249_v58 = vsub.f32 1.0, %v5038_v6  ;;  %v2219_v17 = vmul.f32 %v3322_v45, %v2059_v23  ;;  %v1873_v24 = vmul.f32 %v5041_v61, %v1841_v57  ;;  %v2218_v33 = vmul.f32 %v3320_v60, %v2058_v28  ;;  %v5465_v45 = vld [vmem:[#allocation53_spill] sm:$0xff] }
 0x411   : > { %3042 = vmatprep.mubr.bf16.mxu0 %v2392_v40  ;;  %v2029_v7 = vadd.f32 0.2548296, %v1997_v4  ;;  %v2190_v26 = vmul.f32 1.442695, %v2128_v35  ;;  %v1966_v53 = vadd.f32 -0.28449672, %v1934_v36  ;;  %3327 = vpow2.f32 %v2186_v38 }
 0x412   : > { %v2342_v49 = vadd.f32 1.0, %v2278_v32  ;;  %v1905_v22 = vadd.f32 1.4214138, %v1873_v24  ;;  %v2127_v5 = vmul.f32 %v2095_v8, %v5010_v19  ;;  %v2343_v59 = vadd.f32 1.0, %v2279_v25  ;;  %v5467_v24 = vld [vmem:[#allocation54_spill] sm:$0xff] }
 0x413   : > { %v2028_v20 = vadd.f32 0.2548296, %v1996_v14  ;;  %v1968_v51 = vadd.f32 -0.28449672, %v1936_v55  ;;  %3329 = vpow2.f32 %v2192_v37  ;;  %v2251_v41 = vsub.f32 1.0, %v2219_v17 }
 0x414   : > { %v1998_v6 = vmul.f32 %v5025_v18, %v1966_v53  ;;  %v1937_v3 = vmul.f32 %v5041_v61, %v1905_v22  ;;  %v2394_v39 = vpack.c.bf16 %v5033_v9, %v4919_v42  ;;  %v2250_v23 = vsub.f32 1.0, %v2218_v33 }
 0x415   : > { %v5070_v46 = vpop.eup %3323  ;;  %v2061_v32 = vmul.f32 %v4940_v34, %v2029_v7  ;;  %3331 = vpow2.f32 %v2190_v26  ;;  %v2393_v19 = vpack.c.bf16 %v4842_v29, %v4799_v44  ;;  %v2372_v40 = vmul.f32 %v4894_v30, %v5464_v52  ;;  %v5468_v26 = vld [vmem:[#allocation48_spill] sm:$0xff] }
 0x416   : > { %v3326_v35 = vpop.eup %3325  ;;  %v1969_v28 = vadd.f32 -0.28449672, %v1937_v3  ;;  %v1807_v4 = vmul.f32 1.0614054, %v5070_v46  ;;  %v2188_v21 = vmul.f32 1.442695, %v2127_v5  ;;  %v2375_v10 = vmul.f32 %v2343_v59, %v4907_v54 }
 0x417   : > { %v2060_v42 = vmul.f32 %v4946_v56, %v2028_v20  ;;  %v1611_v34 = vsel %vm1579_vm11, 1.0, %v5419_v15  ;;  %v2000_v9 = vmul.f32 %v4994_v16, %v1968_v51  ;;  %v2030_v29 = vadd.f32 0.2548296, %v1998_v6  ;;  %v5469_v20 = vld [vmem:[#allocation41_spill] sm:$0xff] }
 0x418   : > { %3043 = vmatmul.mubr.bf16.gmra.mxu0 %v2393_v19  ;;  %v2283_v44 = vmul.f32 %v2251_v41, %v1611_v34  ;;  %v2001_v43 = vmul.f32 %v5041_v61, %v1969_v28  ;;  %v1839_v30 = vadd.f32 -1.4531521, %v1807_v4  ;;  %v2373_v47 = vmul.f32 %v5006_v11, %v4768_v2  ;;  %v5470_v41 = vld [vmem:[#allocation56_spill] sm:$0xff]  ;;  %v5471_v28 = vld [vmem:[#allocation59_spill] sm:$0xff] }
 0x419   : > { %3046 = vmatprep.mubr.bf16.mxu0 %v2394_v39  ;;  %v2374_v54 = vmul.f32 %v2342_v49, %v4866_v1  ;;  %v2281_v56 = vmul.f32 %v2249_v58, %v4901_v0  ;;  %v2221_v60 = vmul.f32 %v3326_v35, %v2061_v32  ;;  %v2282_v31 = vmul.f32 %v2250_v23, %v4968_v12  ;;  %v5466_v58 = vld [vmem:[#allocation52_spill] sm:$0xff] }
 0x41a   : > { %v2033_v14 = vadd.f32 0.2548296, %v2001_v43  ;;  %v1871_v38 = vmul.f32 %v5070_v46, %v1839_v30  ;;  %3333 = vpow2.f32 %v2188_v21  ;;  %v2280_v57 = vmul.f32 %v2248_v48, %v4855_v50 }
 0x41b   : > { %v2220_v8 = vmul.f32 %v5051_v62, %v2060_v42  ;;  %vm1581_vm12 = vcmp.ge.f32.partialorder %v5465_v45, 0.0  ;;  %v2032_v25 = vadd.f32 0.2548296, %v2000_v9  ;;  %v2347_v55 = vadd.f32 1.0, %v2283_v44  ;;  %v5472_v44 = vld [vmem:[#allocation51_spill] sm:$0xff] }
 0x41c   : > { %v2062_v2 = vmul.f32 %v5025_v18, %v2030_v29  ;;  %v1903_v1 = vadd.f32 1.4214138, %v1871_v38  ;;  %v2396_v11 = vpack.c.bf16 %v2375_v10, %v2374_v54  ;;  %v2345_v0 = vadd.f32 1.0, %v2281_v56  ;;  %v5473_v54 = vld [vmem:[#allocation57_spill] sm:$0xff]  ;;  %v5474_v38 = vld [vmem:[#allocation50_spill] sm:$0xff] }
 0x41d   : > { %v2253_v36 = vsub.f32 1.0, %v2221_v60  ;;  %v2065_v12 = vmul.f32 %v5041_v61, %v2033_v14  ;;  %v2395_v37 = vpack.c.bf16 %v2373_v47, %v2372_v40  ;;  %vm1580_vm13 = vcmp.ge.f32.partialorder %v5466_v58, 0.0 }
 0x41e   : > { %v2346_v17 = vadd.f32 1.0, %v2282_v31  ;;  %v2315_v50 = vmul.f32 0.5, %v5467_v24  ;;  %v1935_v62 = vmul.f32 %v5070_v46, %v1903_v1  ;;  %v3328_v48 = vpop.eup %3327  ;;  %v2344_v33 = vadd.f32 1.0, %v2280_v57 }
 0x41f   : > { %v2252_v7 = vsub.f32 1.0, %v2220_v8  ;;  %v2314_v53 = vmul.f32 0.5, %v5468_v26  ;;  %v2064_v18 = vmul.f32 %v4994_v16, %v2032_v25  ;;  %v1613_v61 = vsel %vm1581_vm12, 1.0, %v5419_v15 }
 0x420   : > { %3047 = vmatmul.mubr.bf16.gmra.mxu0 %v2395_v37  ;;  %v3330_v49 = vpop.eup %3329  ;;  %v2379_v22 = vmul.f32 %v2347_v55, %v2315_v50  ;;  %v2222_v5 = vmul.f32 %v3328_v48, %v2062_v2  ;;  %v1967_v59 = vadd.f32 -0.28449672, %v1935_v62  ;;  %v2312_v51 = vmul.f32 0.5, %v5469_v20  ;;  %v5475_v37 = vld [vmem:[#allocation58_spill] sm:$0xff]  ;;  %v5476_v50 = vld [vmem:[#allocation60_spill] sm:$0xff] }
 0x421   : > { %3050 = vmatprep.mubr.bf16.mxu0 %v2396_v11  ;;  %v2377_v6 = vmul.f32 %v2345_v0, %v5470_v41  ;;  %v2285_v3 = vmul.f32 %v2253_v36, %v1613_v61  ;;  %v2225_v39 = vmul.f32 %v3330_v49, %v2065_v12  ;;  %v1612_v16 = vsel %vm1580_vm13, 1.0, %v5419_v15 }
 0x422   : > { %v3332_v23 = vpop.eup %3331  ;;  %v2378_v32 = vmul.f32 %v2346_v17, %v2314_v53  ;;  %v1999_v19 = vmul.f32 %v5070_v46, %v1967_v59  ;;  %v2376_v35 = vmul.f32 %v2344_v33, %v2312_v51  ;;  %v2284_v52 = vmul.f32 %v2252_v7, %v1612_v16  ;;  %v5477_v7 = vld [vmem:[#allocation55_spill] sm:$0xff]  ;;  %v5478_v59 = vld [vmem:[#allocation6_spill] sm:$0xff]  ;;  %v5480_v16 = vld [vmem:[#allocation8_spill] sm:$0xff] }
 0x423   : > { %v2224_v40 = vmul.f32 %v3332_v23, %v2064_v18  ;;  %vm1582_vm14 = vcmp.ge.f32.partialorder %v5471_v28, 0.0  ;;  %v2254_v4 = vsub.f32 1.0, %v2222_v5  ;;  %v2349_v42 = vadd.f32 1.0, %v2285_v3 }
 0x424   : > { %v2031_v21 = vadd.f32 0.2548296, %v1999_v19  ;;  %v2398_v10 = vpack.c.bf16 %v2379_v22, %v2378_v32  ;;  %vm1585_vm15 = vcmp.ge.f32.partialorder %v4958_v63, 0.0  ;;  %v2257_v34 = vsub.f32 1.0, %v2225_v39 }
 0x425   : > { %v2397_v9 = vpack.c.bf16 %v2377_v6, %v2376_v35  ;;  %v2317_v29 = vmul.f32 0.5, %v5472_v44  ;;  %v2348_v47 = vadd.f32 1.0, %v2284_v52  ;;  %vm1584_vm1 = vcmp.ge.f32.partialorder %v5473_v54, 0.0  ;;  %v5479_v6 = vld [vmem:[#allocation5_spill] sm:$0xff]  ;;  %v5481_v52 = vld [vmem:[#allocation7_spill] sm:$0xff] }
 0x426   : > { %v2063_v43 = vmul.f32 %v5070_v46, %v2031_v21  ;;  %v2256_v56 = vsub.f32 1.0, %v2224_v40  ;;  %v1614_v60 = vsel %vm1582_vm14, 1.0, %v5419_v15  ;;  %v1617_v14 = vsel %vm1585_vm15, 1.0, %v5419_v15  ;;  %v5482_v21 = vld [vmem:[#allocation10_spill] sm:$0xff] }
 0x427   : > { %v3334_v30 = vpop.eup %3333  ;;  %v2286_v31 = vmul.f32 %v2254_v4, %v1614_v60  ;;  %vm1583_vm2 = vcmp.ge.f32.partialorder %v5001_v27, 0.0  ;;  %v2316_v57 = vmul.f32 0.5, %v5474_v38  ;;  %v2381_v8 = vmul.f32 %v2349_v42, %v2317_v29  ;;  %v5485_v60 = vld [vmem:[#allocation11_spill] sm:$0xff]  ;;  %v5486_v38 = vld [vmem:[#allocation14_spill] sm:$0xff] }
 0x428   : > { %3051 = vmatmul.mubr.bf16.gmra.mxu0 %v2397_v9  ;;  %v2223_v63 = vmul.f32 %v3334_v30, %v2063_v43  ;;  %v2289_v45 = vmul.f32 %v2257_v34, %v1617_v14  ;;  %v1616_v46 = vsel %vm1584_vm1, 1.0, %v5419_v15  ;;  %v1615_v1 = vsel %vm1583_vm2, 1.0, %v5419_v15  ;;  %v5483_v9 = vld [vmem:[#allocation9_spill] sm:$0xff]  ;;  %v5484_v30 = vld [vmem:[#allocation12_spill] sm:$0xff] }
 0x429   : > { %3054 = vmatprep.mubr.bf16.mxu0 %v2398_v10  ;;  %v2380_v55 = vmul.f32 %v2348_v47, %v2316_v57  ;;  %v2288_v2 = vmul.f32 %v2256_v56, %v1616_v46  ;;  %v2350_v11 = vadd.f32 1.0, %v2286_v31  ;;  %v2318_v27 = vmul.f32 0.5, %v5475_v37  ;;  %v5487_v46 = vld [vmem:[#allocation13_spill] sm:$0xff] }
 0x42a   : > { %v2255_v25 = vsub.f32 1.0, %v2223_v63  ;;  %v2353_v36 = vadd.f32 1.0, %v2289_v45  ;;  %v2319_v58 = vmul.f32 0.5, %v4990_v13  ;;  %v2321_v62 = vmul.f32 0.5, %v5476_v50  ;;  %v5129_v13 = vld [vmem:[%s5328_s9] ss:$0 sm:$0xff] }
 0x42b   : > { %v2399_v12 = vpack.c.bf16 %v2381_v8, %v2380_v55  ;;  %v2352_v24 = vadd.f32 1.0, %v2288_v2  ;;  %v2382_v48 = vmul.f32 %v2350_v11, %v2318_v27  ;;  %v2320_v26 = vmul.f32 0.5, %v5477_v7 }
 0x42c   : > { %v2287_v0 = vmul.f32 %v2255_v25, %v1615_v1  ;;  %v2385_v15 = vmul.f32 %v2353_v36, %v2321_v62  ;;  %v5488_v1 = vld [vmem:[#allocation16_spill] sm:$0xff] }
 0x42d   : > { %v2384_v18 = vmul.f32 %v2352_v24, %v2320_v26 }
 0x42e   : > { %v2351_v17 = vadd.f32 1.0, %v2287_v0 }
 0x42f   : > { %v2401_v49 = vpack.c.bf16 %v2385_v15, %v2384_v18  ;;  %v5492_v15 = vld [vmem:[#allocation22_spill] sm:$0xff] }
 0x430   : > { %3055 = vmatmul.mubr.bf16.gmra.mxu0 %v2399_v12  ;;  %v2383_v33 = vmul.f32 %v2351_v17, %v2319_v58  ;;  %v5489_v12 = vld [vmem:[#allocation15_spill] sm:$0xff]  ;;  %v5490_v17 = vld [vmem:[#allocation18_spill] sm:$0xff] }
 0x432   : > { %v2400_v53 = vpack.c.bf16 %v2383_v33, %v2382_v48  ;;  %v5491_v48 = vld [vmem:[#allocation17_spill] sm:$0xff] }
 0x434   : > { %3058 = vmatprep.mubr.bf16.mxu0 %v2400_v53 }
 0x438   : > { %3059 = vmatmul.mubr.bf16.gmra.mxu0 %v2401_v49 }
 0x4c0   : > { %v3032_v61 = vpop.f32.mrf.mxu0 }
 0x4c1   : > { %v2516_v22 = vadd.f32 %v3032_v61, %v5129_v13  ;;  %v5493_v61 = vld [vmem:[#allocation19_spill] sm:$0xff] }
 0x4c2   : > { %v2507_v5 = vpop.f32.mrf.mxu0 }
 0x4c3   : > { %v2636_v20 = vadd.f32 %v2516_v22, %v5478_v59  ;;  %v2508_v51 = vadd.f32 %v5129_v13, %v2507_v5 }
 0x4c4   : > { %v3033_v41 = vpop.f32.mrf.mxu0 }
 0x4c5   : > { %2668 = vst.msk [vmem:[%s5136_s20 + $0x10] sm:$0xff] %vm505_vm0, %v2636_v20  ;;  %v2634_v3 = vadd.f32 %v2508_v51, %v5479_v6  ;;  %v2519_v39 = vadd.f32 %v3033_v41, %v5129_v13  ;;  %v5494_v20 = vld [vmem:[#allocation23_spill] sm:$0xff] }
 0x4c6   : > { %v2510_v23 = vpop.f32.mrf.mxu0 }
 0x4c7   : > { %2666 = vst.msk [vmem:[%s5136_s20] sm:$0xff] %vm505_vm0, %v2634_v3  ;;  %v2637_v32 = vadd.f32 %v2519_v39, %v5480_v16  ;;  %v2511_v19 = vadd.f32 %v5129_v13, %v2510_v23  ;;  %v5495_v3 = vld [vmem:[#allocation21_spill] sm:$0xff] }
 0x4c8   : > { %v3036_v35 = vpop.f32.mrf.mxu0 }
 0x4c9   : > { %2669 = vst.msk [vmem:[%s5136_s20 + $0x18] sm:$0xff] %vm505_vm0, %v2637_v32  ;;  %v2635_v40 = vadd.f32 %v2511_v19, %v5481_v52  ;;  %v2532_v28 = vadd.f32 %v3036_v35, %v5129_v13  ;;  %v5496_v32 = vld [vmem:[#allocation25_spill] sm:$0xff] }
 0x4ca   : > { %v2523_v4 = vpop.f32.mrf.mxu0 }
 0x4cb   : > { %2667 = vst.msk [vmem:[%s5136_s20 + $0x8] sm:$0xff] %vm505_vm0, %v2635_v40  ;;  %v2640_v10 = vadd.f32 %v2532_v28, %v5482_v21  ;;  %v2524_v42 = vadd.f32 %v5129_v13, %v2523_v4  ;;  %v5497_v40 = vld [vmem:[#allocation24_spill] sm:$0xff] }
 0x4cc   : > { %v3037_v34 = vpop.f32.mrf.mxu0 }
 0x4cd   : > { %2672 = vst.msk [vmem:[%s5136_s20 + $0x30] sm:$0xff] %vm505_vm0, %v2640_v10  ;;  %v2638_v44 = vadd.f32 %v2524_v42, %v5483_v9  ;;  %v2535_v29 = vadd.f32 %v3037_v34, %v5129_v13  ;;  %v5498_v10 = vld [vmem:[#allocation27_spill] sm:$0xff] }
 0x4ce   : > { %v2526_v43 = vpop.f32.mrf.mxu0 }
 0x4cf   : > { %2670 = vst.msk [vmem:[%s5136_s20 + $0x20] sm:$0xff] %vm505_vm0, %v2638_v44  ;;  %v2641_v47 = vadd.f32 %v2535_v29, %v5484_v30  ;;  %v2527_v54 = vadd.f32 %v5129_v13, %v2526_v43  ;;  %v5499_v44 = vld [vmem:[#allocation26_spill] sm:$0xff] }
 0x4d0   : > { %v3040_v56 = vpop.f32.mrf.mxu0 }
 0x4d1   : > { %2673 = vst.msk [vmem:[%s5136_s20 + $0x38] sm:$0xff] %vm505_vm0, %v2641_v47  ;;  %v2639_v31 = vadd.f32 %v2527_v54, %v5485_v60  ;;  %v2548_v14 = vadd.f32 %v3040_v56, %v5129_v13  ;;  %v5500_v47 = vld [vmem:[#allocation29_spill] sm:$0xff] }
 0x4d2   : > { %v2539_v63 = vpop.f32.mrf.mxu0 }
 0x4d3   : > { %2671 = vst.msk [vmem:[%s5136_s20 + $0x28] sm:$0xff] %vm505_vm0, %v2639_v31  ;;  %v2644_v57 = vadd.f32 %v2548_v14, %v5486_v38  ;;  %v2540_v8 = vadd.f32 %v5129_v13, %v2539_v63  ;;  %v5501_v31 = vld [vmem:[#allocation28_spill] sm:$0xff] }
 0x4d4   : > { %v3041_v45 = vpop.f32.mrf.mxu0 }
 0x4d5   : > { %2676 = vst.msk [vmem:[%s5136_s20 + $0x50] sm:$0xff] %vm505_vm0, %v2644_v57  ;;  %v2642_v25 = vadd.f32 %v2540_v8, %v5487_v46  ;;  %v2551_v55 = vadd.f32 %v3041_v45, %v5129_v13  ;;  %v5502_v57 = vld [vmem:[#allocation31_spill] sm:$0xff] }
 0x4d6   : > { %v2542_v2 = vpop.f32.mrf.mxu0 }
 0x4d7   : > { %2674 = vst.msk [vmem:[%s5136_s20 + $0x40] sm:$0xff] %vm505_vm0, %v2642_v25  ;;  %v2645_v11 = vadd.f32 %v2551_v55, %v5488_v1  ;;  %v2543_v0 = vadd.f32 %v5129_v13, %v2542_v2  ;;  %v5503_v25 = vld [vmem:[#allocation30_spill] sm:$0xff] }
 0x4d8   : > { %v3044_v36 = vpop.f32.mrf.mxu0 }
 0x4d9   : > { %2677 = vst.msk [vmem:[%s5136_s20 + $0x58] sm:$0xff] %vm505_vm0, %v2645_v11  ;;  %v2643_v37 = vadd.f32 %v2543_v0, %v5489_v12  ;;  %v2564_v27 = vadd.f32 %v3044_v36, %v5129_v13  ;;  %v5504_v11 = vld [vmem:[#allocation33_spill] sm:$0xff] }
 0x4da   : > { %v2555_v58 = vpop.f32.mrf.mxu0 }
 0x4db   : > { %2675 = vst.msk [vmem:[%s5136_s20 + $0x48] sm:$0xff] %vm505_vm0, %v2643_v37  ;;  %v2648_v24 = vadd.f32 %v2564_v27, %v5490_v17  ;;  %v2556_v50 = vadd.f32 %v5129_v13, %v2555_v58  ;;  %v5505_v37 = vld [vmem:[#allocation32_spill] sm:$0xff] }
 0x4dc   : > { %v3045_v62 = vpop.f32.mrf.mxu0 }
 0x4dd   : > { %2680 = vst.msk [vmem:[%s5136_s20 + $0x70] sm:$0xff] %vm505_vm0, %v2648_v24  ;;  %v2646_v33 = vadd.f32 %v2556_v50, %v5491_v48  ;;  %v2567_v7 = vadd.f32 %v3045_v62, %v5129_v13  ;;  %v5506_v24 = vld [vmem:[#allocation35_spill] sm:$0xff] }
 0x4de   : > { %v2558_v26 = vpop.f32.mrf.mxu0 }
 0x4df   : > { %2678 = vst.msk [vmem:[%s5136_s20 + $0x60] sm:$0xff] %vm505_vm0, %v2646_v33  ;;  %v2649_v53 = vadd.f32 %v2567_v7, %v5492_v15  ;;  %v2559_v18 = vadd.f32 %v5129_v13, %v2558_v26  ;;  %v5507_v33 = vld [vmem:[#allocation34_spill] sm:$0xff] }
 0x4e0   : > { %v3048_v49 = vpop.f32.mrf.mxu0 }
 0x4e1   : > { %2681 = vst.msk [vmem:[%s5136_s20 + $0x78] sm:$0xff] %vm505_vm0, %v2649_v53  ;;  %v2647_v22 = vadd.f32 %v2559_v18, %v5493_v61  ;;  %v2580_v5 = vadd.f32 %v3048_v49, %v5129_v13  ;;  %v5508_v53 = vld [vmem:[#allocation20_spill] sm:$0xff] }
 0x4e2   : > { %v2571_v59 = vpop.f32.mrf.mxu0  ;;  %v5509_v61 = vld [vmem:[#allocation36_spill] sm:$0xff] }
 0x4e3   : > { %2679 = vst.msk [vmem:[%s5136_s20 + $0x68] sm:$0xff] %vm505_vm0, %v2647_v22  ;;  %v2652_v51 = vadd.f32 %v2580_v5, %v5494_v20  ;;  %v2572_v41 = vadd.f32 %v5129_v13, %v2571_v59 }
 0x4e4   : > { %v3049_v6 = vpop.f32.mrf.mxu0 }
 0x4e5   : > { %2684 = vst.msk [vmem:[%s5136_s20 + $0x90] sm:$0xff] %vm505_vm0, %v2652_v51  ;;  %v2650_v39 = vadd.f32 %v2572_v41, %v5495_v3  ;;  %v2583_v23 = vadd.f32 %v3049_v6, %v5129_v13 }
 0x4e6   : > { %v2574_v16 = vpop.f32.mrf.mxu0 }
 0x4e7   : > { %2682 = vst.msk [vmem:[%s5136_s20 + $0x80] sm:$0xff] %vm505_vm0, %v2650_v39  ;;  %v2653_v19 = vadd.f32 %v2583_v23, %v5496_v32  ;;  %v2575_v35 = vadd.f32 %v5129_v13, %v2574_v16 }
 0x4e8   : > { %v3052_v52 = vpop.f32.mrf.mxu0 }
 0x4e9   : > { %2685 = vst.msk [vmem:[%s5136_s20 + $0x98] sm:$0xff] %vm505_vm0, %v2653_v19  ;;  %v2651_v28 = vadd.f32 %v2575_v35, %v5497_v40  ;;  %v2596_v4 = vadd.f32 %v3052_v52, %v5129_v13 }
 0x4ea   : > { %v2587_v21 = vpop.f32.mrf.mxu0 }
 0x4eb   : > { %2683 = vst.msk [vmem:[%s5136_s20 + $0x88] sm:$0xff] %vm505_vm0, %v2651_v28  ;;  %v2656_v42 = vadd.f32 %v2596_v4, %v5498_v10  ;;  %v2588_v34 = vadd.f32 %v5129_v13, %v2587_v21 }
 0x4ec   : > { %v3053_v9 = vpop.f32.mrf.mxu0 }
 0x4ed   : > { %2688 = vst.msk [vmem:[%s5136_s20 + $0xb0] sm:$0xff] %vm505_vm0, %v2656_v42  ;;  %v2654_v29 = vadd.f32 %v2588_v34, %v5499_v44  ;;  %v2599_v43 = vadd.f32 %v3053_v9, %v5129_v13 }
 0x4ee   : > { %v2590_v30 = vpop.f32.mrf.mxu0 }
 0x4ef   : > { %2686 = vst.msk [vmem:[%s5136_s20 + $0xa0] sm:$0xff] %vm505_vm0, %v2654_v29  ;;  %v2657_v54 = vadd.f32 %v2599_v43, %v5500_v47  ;;  %v2591_v56 = vadd.f32 %v5129_v13, %v2590_v30 }
 0x4f0   : > { %v3056_v60 = vpop.f32.mrf.mxu0 }
 0x4f1   : > { %2689 = vst.msk [vmem:[%s5136_s20 + $0xb8] sm:$0xff] %vm505_vm0, %v2657_v54  ;;  %v2655_v14 = vadd.f32 %v2591_v56, %v5501_v31  ;;  %v2612_v63 = vadd.f32 %v3056_v60, %v5129_v13 }
 0x4f2   : > { %v2603_v38 = vpop.f32.mrf.mxu0 }
 0x4f3   : > { %2687 = vst.msk [vmem:[%s5136_s20 + $0xa8] sm:$0xff] %vm505_vm0, %v2655_v14  ;;  %v2660_v8 = vadd.f32 %v2612_v63, %v5502_v57  ;;  %v2604_v45 = vadd.f32 %v5129_v13, %v2603_v38 }
 0x4f4   : > { %v3057_v46 = vpop.f32.mrf.mxu0 }
 0x4f5   : > { %2692 = vst.msk [vmem:[%s5136_s20 + $0xd0] sm:$0xff] %vm505_vm0, %v2660_v8  ;;  %v2658_v55 = vadd.f32 %v2604_v45, %v5503_v25  ;;  %v2615_v2 = vadd.f32 %v3057_v46, %v5129_v13 }
 0x4f6   : > { %v2606_v1 = vpop.f32.mrf.mxu0 }
 0x4f7   : > { %2690 = vst.msk [vmem:[%s5136_s20 + $0xc0] sm:$0xff] %vm505_vm0, %v2658_v55  ;;  %v2661_v0 = vadd.f32 %v2615_v2, %v5504_v11  ;;  %v2607_v36 = vadd.f32 %v5129_v13, %v2606_v1 }
 0x4f8   : > { %v3060_v12 = vpop.f32.mrf.mxu0 }
 0x4f9   : > { %2693 = vst.msk [vmem:[%s5136_s20 + $0xd8] sm:$0xff] %vm505_vm0, %v2661_v0  ;;  %v2659_v27 = vadd.f32 %v2607_v36, %v5505_v37  ;;  %v2628_v58 = vadd.f32 %v3060_v12, %v5129_v13 }
 0x4fa   : > { %v2619_v17 = vpop.f32.mrf.mxu0 }
 0x4fb   : > { %2691 = vst.msk [vmem:[%s5136_s20 + $0xc8] sm:$0xff] %vm505_vm0, %v2659_v27  ;;  %v2664_v50 = vadd.f32 %v2628_v58, %v5506_v24  ;;  %v2620_v62 = vadd.f32 %v5129_v13, %v2619_v17 }
 0x4fc   : > { %v3061_v48 = vpop.f32.mrf.mxu0 }
 0x4fd   : > { %2696 = vst.msk [vmem:[%s5136_s20 + $0xf0] sm:$0xff] %vm505_vm0, %v2664_v50  ;;  %v2662_v7 = vadd.f32 %v2620_v62, %v5507_v33  ;;  %v2631_v26 = vadd.f32 %v3061_v48, %v5129_v13 }
 0x4fe   : > { %v2622_v15 = vpop.f32.mrf.mxu0 }
 0x4ff   : > { %2694 = vst.msk [vmem:[%s5136_s20 + $0xe0] sm:$0xff] %vm505_vm0, %v2662_v7  ;;  %v2665_v18 = vadd.f32 %v2631_v26, %v5508_v53  ;;  %v2623_v49 = vadd.f32 %v5129_v13, %v2622_v15 }
 0x501   : > { %2697 = vst.msk [vmem:[%s5136_s20 + $0xf8] sm:$0xff] %vm505_vm0, %v2665_v18  ;;  %v2663_v22 = vadd.f32 %v2623_v49, %v5509_v61 }
 0x503   : > { %2695 = vst.msk [vmem:[%s5136_s20 + $0xe8] sm:$0xff] %vm505_vm0, %v2663_v22 }
 0x504   : > { %3349 = shalt.err (!%p3346_p5)
}
 0x505   : > { %s3350_s11 = scalar_lea.hbm %s5263_s30, 4096  ;;  %s3354_s28 = scalar_lea.hbm %s5329_s10, 8192 }
 0x506   : > { %p3351_p6 = scmp.ne.s32.totalorder %s5263_s30, %s3350_s11  ;;  %p3355_p10 = scmp.lt.s32.totalorder %s5263_s30, %s5329_s10 }
 0x507   : > { %p3356_p11 = scmp.lt.s32.totalorder %s3354_s28, %s3350_s11 }
 0x508   : > { %p3352_p7 = pnand %p3351_p6, %p3513_p4 }
 0x509   : > { %p3357_p12 = por %p3356_p11, %p3355_p10 }
 0x50a   : > { %p3353_p9 = pneg %p3352_p7 }
 0x50c   : > { %p3358_p13 = pnand %p3357_p12, %p3353_p9 }
 0x50e   : > { %3361 = shalt.err (!%p3358_p13)
}
 0x50f   : > { %s3416_s12 = smov 128   ;;  %s3417_s19 = smov 8  }
 0x510   : > { %3066 = dma.vmem_to_hbm [thread:$0]  (%p3513_p4), %s5265_s24, 4096, %s5263_s30, %s5274_s16, %s3416_s12, %s3416_s12, %s3417_s19  }
 0x511 PF: > { %p3072_p0 = scmp.ge.s32.totalorder %s3412_s18, 2  ;;  %s2729_s22 = sand.u32 1, %s3392_s13  }
 0x512   : > { %s2730_s0 = scalar_lea.sflag [#allocation3], %s2729_s22 }
 0x513   : > { %p3069_p1 = pnand %p3072_p0, %p3520_p8 }
 0x515   : > { %p3070_p2 = pneg %p3069_p1 }
 0x517   : > { %3387 = dma.done.wait (%p3070_p2), %s2730_s0, 4096  }
 0x518   : > { %3389 = vsyncadd (%p3070_p2), %s2730_s0, 4294963200  ;;  %s23_s18 = sadd.s32 1, %s3412_s18   ;;  %s5510_s13 = smov %s3396_s14 }
 0x519   : > { %p20_p3 = scmp.ge.s32.totalorder %s23_s18, 4   ;;  %s5511_s14 = smov %s3400_s15 }
 0x51a   : > { %s5512_s15 = smov %s3526_s26  ;;  %s5513_s16 = smov %s3408_s17 }
 0x51b   : > { %s5514_s17 = smov %s5516_s21  ;;  %22 = sbr.rel (!%p20_p3) target bundleno = 6 (0x6), region = 98 }
 0x520   :  { %2735 = vsyncpa [#allocation3], 1 }
 0x521   :  { %2737 = vsyncpa [#allocation3 + $0x1], 1 }

</bundles_post_ra>
